<compile_context>
chip_gen: v5e
topology: v5e:2x2
jax: 0.10.0
libtpu: 0.0.40
codegen_flags: <defaults>
</compile_context>

<pallas_src>
import functools
import math

import jax
import jax.numpy as jnp
from jax import lax
from jax.experimental import pallas as pl
from jax.experimental.pallas import tpu as pltpu


_NEG_BIG = -1e30                      # large finite negative (NaN-safe masking)
_TILE_LADDER = (1024, 768, 512, 384, 256, 128)


@functools.lru_cache(maxsize=None)
def _vmem_budget():
    """Scoped-VMEM budget: ~3/4 of the per-core VMEM capacity.

    Falls back to 48 MiB (safe on every generation, incl. v7x's 64 MiB/TC)
    when the capacity cannot be queried.
    """
    cap = None
    try:
        cap = getattr(pltpu.get_tpu_info(), "vmem_capacity_bytes", None)
    except Exception:
        cap = None
    if not cap:
        cap = 64 * 1024 * 1024
    return min(int(cap) * 3 // 4, 112 * 1024 * 1024)


def _pick_tile(dim, max_tile):
    """Largest ladder tile <= max_tile that divides `dim`; else the full dim."""
    for c in _TILE_LADDER:
        if c <= max_tile and c <= dim and dim % c == 0:
            return c
    return dim


def _default_linear_tiles(budget):
    if budget >= 96 * 2**20:       # v5e / v6e: 128 MiB VMEM -> big tiles
        return 1024, 1024, 768
    if budget >= 44 * 2**20:       # v7x: 64 MiB per TensorCore
        return 1024, 512, 512
    return 512, 512, 512


# ---------------------------------------------------------------------------
# Tiled linear:  y = x @ w + b   (weights stored as (in_features, out_features))
# ---------------------------------------------------------------------------

def _linear_kernel(x_ref, w_ref, b_ref, o_ref, acc_ref, *, red_axis):
    # The grid axis `red_axis` is the innermost ("arbitrary") reduction axis.
    @pl.when(pl.program_id(red_axis) == 0)
    def _():
        acc_ref[...] = jnp.zeros_like(acc_ref)

    # Force the bf16 MXU fast path even for f32 callers; accumulate in f32.
    acc_ref[...] += jnp.dot(x_ref[...].astype(jnp.bfloat16),
                            w_ref[...].astype(jnp.bfloat16),
                            preferred_element_type=jnp.float32)

    @pl.when(pl.program_id(red_axis) == pl.num_programs(red_axis) - 1)
    def _():
        o_ref[...] = (acc_ref[...] + b_ref[...].astype(jnp.float32)
                      ).astype(o_ref.dtype)


def linear(x2d, w, b, *, max_tm=None, max_tn=None, max_tk=None):
    """y = x2d @ w + b with a K-tiled f32 accumulator."""
    M, K = x2d.shape
    K2, N = w.shape
    assert K == K2 and b.shape == (N,)
    assert M % 8 == 0 and N % 128 == 0, (
        f"linear: M={M} must be a multiple of 8 and N={N} of 128 "
        "(no remainder handling)")

    budget = _vmem_budget()
    d_tm, d_tn, d_tk = _default_linear_tiles(budget)
    tm = _pick_tile(M, max_tm or d_tm)
    tn = _pick_tile(N, max_tn or d_tn)
    tk = _pick_tile(K, max_tk or d_tk)
    grid = (M // tm, N // tn, K // tk)

    return pl.pallas_call(
        functools.partial(_linear_kernel, red_axis=2),
        grid=grid,
        in_specs=[
            pl.BlockSpec((tm, tk), lambda i, j, k: (i, k)),
            pl.BlockSpec((tk, tn), lambda i, j, k: (k, j)),
            pl.BlockSpec((1, tn), lambda i, j, k: (0, j)),
        ],
        out_specs=pl.BlockSpec((tm, tn), lambda i, j, k: (i, j)),
        out_shape=jax.ShapeDtypeStruct((M, N), x2d.dtype),
        scratch_shapes=[pltpu.VMEM((tm, tn), jnp.float32)],
        compiler_params=pltpu.CompilerParams(
            dimension_semantics=("parallel", "parallel", "arbitrary"),
            vmem_limit_bytes=budget),
    )(x2d, w, b.reshape(1, N))


def linear_headmerge(y, w, b):
    """out[b,t,:] = concat_h(y[b,h,t,:]) @ w + b  without materializing the merge.

    `y` is (B, H, T, Dh) head-major attention output; the head axis becomes an
    extra reduction grid axis of the projection, so no transpose / reshape of
    y ever touches HBM and the output stays 128-lane dense.
    """
    B, H, T, Dh = y.shape
    K, N = w.shape
    assert K == H * Dh and b.shape == (N,)
    assert T % 8 == 0 and N % 128 == 0

    budget = _vmem_budget()
    _, d_tn, _ = _default_linear_tiles(budget)
    tm = _pick_tile(T, 512)
    tn = _pick_tile(N, d_tn)
    grid = (B, T // tm, N // tn, H)          # reduction over heads is last
    w3 = w.reshape(H, Dh, N)                 # feature index = h*Dh + d

    return pl.pallas_call(
        functools.partial(_linear_kernel, red_axis=3),
        grid=grid,
        in_specs=[
            pl.BlockSpec((None, None, tm, Dh), lambda bb, i, j, h: (bb, h, i, 0)),
            pl.BlockSpec((None, Dh, tn), lambda bb, i, j, h: (h, 0, j)),
            pl.BlockSpec((1, tn), lambda bb, i, j, h: (0, j)),
        ],
        out_specs=pl.BlockSpec((None, tm, tn), lambda bb, i, j, h: (bb, i, j)),
        out_shape=jax.ShapeDtypeStruct((B, T, N), y.dtype),
        scratch_shapes=[pltpu.VMEM((tm, tn), jnp.float32)],
        compiler_params=pltpu.CompilerParams(
            dimension_semantics=("parallel", "parallel", "parallel", "arbitrary"),
            vmem_limit_bytes=budget),
    )(y, w3, b.reshape(1, N))


# ---------------------------------------------------------------------------
# Flash attention (causal, online softmax)
# ---------------------------------------------------------------------------

def _flash_attn_kernel(q_ref, k_ref, v_ref, o_ref, m_sc, l_sc, acc_sc, q_sc,
                       *, scale):
    # Refs are (blk, Dh) tiles of one (batch, head) slice.
    # grid = (B, H, q_tiles, kv_tiles); kv is innermost + "arbitrary".
    qi = pl.program_id(2)
    ki = pl.program_id(3)

    @pl.when(ki == 0)
    def _():
        m_sc[...] = jnp.full_like(m_sc, -jnp.inf)
        l_sc[...] = jnp.zeros_like(l_sc)
        acc_sc[...] = jnp.zeros_like(acc_sc)
        # Scale + cast Q once per q-tile (Q block is resident over the kv loop).
        q_sc[...] = (q_ref[...].astype(jnp.float32) * scale).astype(q_sc.dtype)

    def tile(masked):
        q = q_sc[...]                                   # bf16, pre-scaled
        k = k_ref[...].astype(q_sc.dtype)
        # QK^T by contracting the shared last dim -- no k.T / XLU transpose.
        s = lax.dot_general(q, k, (((1,), (1,)), ((), ())),
                            preferred_element_type=jnp.float32)
        if masked:
            # Only reached on the diagonal tile (q_start == kv_start), so the
            # mask depends purely on local indices.
            blk_q, blk_k = s.shape
            row = lax.broadcasted_iota(jnp.int32, (blk_q, blk_k), 0)
            col = lax.broadcasted_iota(jnp.int32, (blk_q, blk_k), 1)
            s = jnp.where(col <= row, s, _NEG_BIG)
        m_prev = m_sc[...]
        m_new = jnp.maximum(m_prev, jnp.max(s, axis=-1, keepdims=True))
        alpha = jnp.exp(m_prev - m_new)
        p = jnp.exp(s - m_new)
        l_sc[...] = alpha * l_sc[...] + jnp.sum(p, axis=-1, keepdims=True)
        acc_sc[...] = alpha * acc_sc[...] + jnp.dot(
            p.astype(q_sc.dtype), v_ref[...].astype(q_sc.dtype),
            preferred_element_type=jnp.float32)
        m_sc[...] = m_new

    @pl.when(ki < qi)            # strictly below the diagonal: no mask needed
    def _():
        tile(masked=False)

    @pl.when(ki == qi)           # diagonal tile: mask, then finalize + store
    def _():
        tile(masked=True)
        inv_l = pl.reciprocal(l_sc[...], approx=True)   # EUP, not VPU divide
        o_ref[...] = (acc_sc[...] * inv_l).astype(o_ref.dtype)
    # ki > qi: nothing executes, and the clamped K/V index_maps mean nothing
    # is DMA'd either.


def causal_attention(qkv, n_head, *, blk=256):
    """Causal MHA over a fused (B, T, 3C) qkv tensor.

    Returns (B, T, C) when Dh % 128 == 0 (fused lane-dense path) and
    (B, H, T, Dh) otherwise (head-major path; merge folds into c_proj).
    """
    B, T, C3 = qkv.shape
    C = C3 // 3
    H = n_head
    assert C3 == 3 * C and C % H == 0
    Dh = C // H
    assert T % 128 == 0, f"sequence length T={T} must be a multiple of 128"

    blk = _pick_tile(T, blk)          # same q/kv tile -> diagonal block is qi==ki
    nblk = T // blk
    grid = (B, H, nblk, nblk)
    budget = _vmem_budget()
    kernel = functools.partial(_flash_attn_kernel, scale=1.0 / math.sqrt(Dh))
    scratch = [pltpu.VMEM((blk, 1), jnp.float32),        # running max m
               pltpu.VMEM((blk, 1), jnp.float32),        # running sum l
               pltpu.VMEM((blk, Dh), jnp.float32),       # output accumulator
               pltpu.VMEM((blk, Dh), jnp.bfloat16)]      # pre-scaled Q cache
    cparams = pltpu.CompilerParams(
        dimension_semantics=("parallel", "parallel", "parallel", "arbitrary"),
        vmem_limit_bytes=budget)

    if Dh % 128 == 0:
        # Lane-aligned heads: slice q/k/v head columns straight out of the fused
        # (B, T, 3C) buffer and write lane-dense into (B, T, C).  The kv block
        # index is clamped to min(j, i) so skipped upper-triangular K/V tiles
        # are never DMA'd (same block index as the previous step -> copy elided).
        q_spec = pl.BlockSpec((None, blk, Dh), lambda b, h, i, j: (b, i, h))
        k_spec = pl.BlockSpec((None, blk, Dh),
                              lambda b, h, i, j: (b, jnp.minimum(j, i), H + h))
        v_spec = pl.BlockSpec((None, blk, Dh),
                              lambda b, h, i, j: (b, jnp.minimum(j, i), 2 * H + h))
        o_spec = pl.BlockSpec((None, blk, Dh), lambda b, h, i, j: (b, i, h))
        return pl.pallas_call(
            kernel,
            grid=grid,
            in_specs=[q_spec, k_spec, v_spec],
            out_specs=o_spec,
            out_shape=jax.ShapeDtypeStruct((B, T, C), qkv.dtype),
            scratch_shapes=scratch,
            compiler_params=cparams,
        )(qkv, qkv, qkv)

    # Head dims that are not 128-lane aligned (e.g. GPT-2's 64): one relayout
    # of the fused qkv buffer into head-major (3, B, H, T, Dh); the attention
    # output stays (B, H, T, Dh) and the head merge is folded into c_proj.
    qkv5 = jnp.transpose(qkv.reshape(B, T, 3, H, Dh), (2, 0, 3, 1, 4))
    q_spec = pl.BlockSpec((None, None, None, blk, Dh),
                          lambda b, h, i, j: (0, b, h, i, 0))
    k_spec = pl.BlockSpec((None, None, None, blk, Dh),
                          lambda b, h, i, j: (1, b, h, jnp.minimum(j, i), 0))
    v_spec = pl.BlockSpec((None, None, None, blk, Dh),
                          lambda b, h, i, j: (2, b, h, jnp.minimum(j, i), 0))
    o_spec = pl.BlockSpec((None, None, blk, Dh), lambda b, h, i, j: (b, h, i, 0))
    return pl.pallas_call(
        kernel,
        grid=grid,
        in_specs=[q_spec, k_spec, v_spec],
        out_specs=o_spec,
        out_shape=jax.ShapeDtypeStruct((B, H, T, Dh), qkv.dtype),
        scratch_shapes=scratch,
        compiler_params=cparams,
    )(qkv5, qkv5, qkv5)


# ---------------------------------------------------------------------------
# Module forward
# ---------------------------------------------------------------------------

def causal_self_attention(x, params, n_head):
    """Forward pass of the nanoGPT CausalSelfAttention block."""
    B, T, C = x.shape
    assert C % n_head == 0
    qkv = linear(x.reshape(B * T, C), params["w_attn"], params["b_attn"])
    y = causal_attention(qkv.reshape(B, T, 3 * C), n_head)
    if y.ndim == 3:
        # Fused lane-aligned path: y is already (B, T, C).
        out = linear(y.reshape(B * T, C), params["w_proj"], params["b_proj"])
        return out.reshape(B, T, C)
    # Head-major path: y is (B, H, T, Dh); fold the head merge into c_proj.
    return linear_headmerge(y, params["w_proj"], params["b_proj"])


# ---------------------------------------------------------------------------
# Pure-JAX reference
# ---------------------------------------------------------------------------

def reference(x, params, n_head):
    B, T, C = x.shape
    Dh = C // n_head
    qkv = x @ params["w_attn"] + params["b_attn"]
    q, k, v = jnp.split(qkv, 3, axis=2)
    q = q.reshape(B, T, n_head, Dh).transpose(0, 2, 1, 3)
    k = k.reshape(B, T, n_head, Dh).transpose(0, 2, 1, 3)
    v = v.reshape(B, T, n_head, Dh).transpose(0, 2, 1, 3)
    s = jnp.einsum("bhqd,bhkd->bhqk", q, k) / math.sqrt(Dh)
    mask = jnp.tril(jnp.ones((T, T), dtype=bool))
    s = jnp.where(mask, s, -jnp.inf)
    p = jax.nn.softmax(s, axis=-1)
    y = jnp.einsum("bhqk,bhkd->bhqd", p, v)
    y = y.transpose(0, 2, 1, 3).reshape(B, T, C)
    return y @ params["w_proj"] + params["b_proj"]


# ---------------------------------------------------------------------------
# main
# ---------------------------------------------------------------------------

if __name__ == "__main__":
    # Small config consistent with the module (n_embd % n_head == 0), sized so
    # the flash grid has several q/kv tiles (T=512, blk=256) and both the
    # fused (Dh=128) and head-major (Dh=64, GPT-2-style) paths are exercised.
    Bsz, T, C = 2, 512, 256

    key = jax.random.PRNGKey(0)
    kx, k1, k2, k3, k4 = jax.random.split(key, 5)
    x = jax.random.normal(kx, (Bsz, T, C), dtype=jnp.float32)

    # PyTorch nn.Linear(C, 3C) weight is (3C, C); we store the transpose (C, 3C).
    params = {
        "w_attn": 0.02 * jax.random.normal(k1, (C, 3 * C), dtype=jnp.float32),
        "b_attn": 0.01 * jax.random.normal(k2, (3 * C,), dtype=jnp.float32),
        "w_proj": 0.02 * jax.random.normal(k3, (C, C), dtype=jnp.float32),
        "b_proj": 0.01 * jax.random.normal(k4, (C,), dtype=jnp.float32),
    }

    # 1) f32 inputs, lane-aligned heads (H=2 -> Dh=128): fused no-transpose path.
    y2 = jax.block_until_ready(causal_self_attention(x, params, n_head=2))
    y2_ref = reference(x, params, 2)
    assert y2.shape == (Bsz, T, C)
    assert jnp.allclose(y2, y2_ref, atol=2e-2, rtol=2e-2), "fused path mismatch"

    # 2) f32 inputs, GPT-2-style heads (H=4 -> Dh=64): head-major path with the
    #    head merge folded into the output projection.
    y4 = jax.block_until_ready(causal_self_attention(x, params, n_head=4))
    y4_ref = reference(x, params, 4)
    assert y4.shape == (Bsz, T, C)
    assert jnp.allclose(y4, y4_ref, atol=2e-2, rtol=2e-2), "head-major path mismatch"

    # 3) bf16 activations/weights through the head-major path (f32 accumulation
    #    and softmax inside the kernels); checked loosely vs the f32 reference.
    params_bf16 = {kk: vv.astype(jnp.bfloat16) for kk, vv in params.items()}
    y_bf16 = jax.block_until_ready(
        causal_self_attention(x.astype(jnp.bfloat16), params_bf16, n_head=4))
    assert jnp.allclose(y_bf16.astype(jnp.float32), y4_ref, atol=1e-1, rtol=1e-1), \
        "bf16 path mismatch"

    print("KERNEL_OK")
</pallas_src>

<mosaic_0001>
module attributes {stable_mosaic.version = 11 : i64} {
  func.func @_linear_kernel(%arg0: i32, %arg1: i32, %arg2: i32, %arg3: memref<1024x256xf32, #tpu.memory_space<vmem>>, %arg4: memref<256x384xf32, #tpu.memory_space<vmem>>, %arg5: memref<1x384xf32, #tpu.memory_space<vmem>>, %arg6: memref<1024x384xf32, #tpu.memory_space<vmem>>, %arg7: memref<1024x384xf32, #tpu.memory_space<vmem>>) attributes {dimension_semantics = [#tpu.dimension_semantics<parallel>, #tpu.dimension_semantics<parallel>, #tpu.dimension_semantics<arbitrary>], iteration_bounds = array<i64: 1, 2, 1>, scalar_prefetch = 0 : i64, scratch_operands = 1 : i64, tpu.core_type = #tpu.core_type<tc>, window_params = [{transform_indices = @transform_0, window_bounds = array<i64: 1024, 256>}, {transform_indices = @transform_1, window_bounds = array<i64: 256, 384>}, {transform_indices = @transform_2, window_bounds = array<i64: 1, 384>}, {transform_indices = @transform_3, window_bounds = array<i64: 1024, 384>}]} {
    %c0_i32 = arith.constant 0 : i32
    %0 = arith.cmpi eq, %arg2, %c0_i32 : i32
    %1 = arith.extui %0 : i1 to i32
    %c0_i32_0 = arith.constant 0 : i32
    %2 = arith.cmpi ne, %1, %c0_i32_0 : i32
    scf.if %2 {
      %cst_10 = arith.constant 0.000000e+00 : f32
      %14 = vector.broadcast %cst_10 : f32 to vector<1024x384xf32>
      %c0_11 = arith.constant 0 : index
      %c0_12 = arith.constant 0 : index
      %15 = vector.load %arg7[%c0_11, %c0_12] : memref<1024x384xf32, #tpu.memory_space<vmem>>, vector<1024x384xf32>
      tpu.vector_store %arg7[%c0_11, %c0_12], %14 {strides = array<i32>} : memref<1024x384xf32, #tpu.memory_space<vmem>>, vector<1024x384xf32>,
    } else {
    }
    %c0 = arith.constant 0 : index
    %c0_1 = arith.constant 0 : index
    %3 = vector.load %arg7[%c0, %c0_1] : memref<1024x384xf32, #tpu.memory_space<vmem>>, vector<1024x384xf32>
    %c0_2 = arith.constant 0 : index
    %c0_3 = arith.constant 0 : index
    %4 = vector.load %arg3[%c0_2, %c0_3] : memref<1024x256xf32, #tpu.memory_space<vmem>>, vector<1024x256xf32>
    %5 = arith.truncf %4 : vector<1024x256xf32> to vector<1024x256xbf16>
    %c0_4 = arith.constant 0 : index
    %c0_5 = arith.constant 0 : index
    %6 = vector.load %arg4[%c0_4, %c0_5] : memref<256x384xf32, #tpu.memory_space<vmem>>, vector<256x384xf32>
    %7 = arith.truncf %6 : vector<256x384xf32> to vector<256x384xbf16>
    %cst = arith.constant dense<0.000000e+00> : vector<1024x384xf32>
    %8 = tpu.matmul %5, %7, %cst {dimension_numbers = #tpu.dot_dimension_numbers<[1], [0], [0], [1], [0, 0, 1, 1], [], []>} : vector<1024x256xbf16>, vector<256x384xbf16>, vector<1024x384xf32> -> vector<1024x384xf32>
    %9 = arith.addf %3, %8 : vector<1024x384xf32>
    %c0_6 = arith.constant 0 : index
    %c0_7 = arith.constant 0 : index
    %10 = vector.load %arg7[%c0_6, %c0_7] : memref<1024x384xf32, #tpu.memory_space<vmem>>, vector<1024x384xf32>
    tpu.vector_store %arg7[%c0_6, %c0_7], %9 {strides = array<i32>} : memref<1024x384xf32, #tpu.memory_space<vmem>>, vector<1024x384xf32>,
    %c0_i32_8 = arith.constant 0 : i32
    %11 = arith.cmpi eq, %arg2, %c0_i32_8 : i32
    %12 = arith.extui %11 : i1 to i32
    %c0_i32_9 = arith.constant 0 : i32
    %13 = arith.cmpi ne, %12, %c0_i32_9 : i32
    scf.if %13 {
      %c0_10 = arith.constant 0 : index
      %c0_11 = arith.constant 0 : index
      %14 = vector.load %arg7[%c0_10, %c0_11] : memref<1024x384xf32, #tpu.memory_space<vmem>>, vector<1024x384xf32>
      %c0_12 = arith.constant 0 : index
      %c0_13 = arith.constant 0 : index
      %15 = vector.load %arg5[%c0_12, %c0_13] : memref<1x384xf32, #tpu.memory_space<vmem>>, vector<1x384xf32>
      %16 = vector.broadcast %15 : vector<1x384xf32> to vector<1024x384xf32>
      %17 = arith.addf %14, %16 : vector<1024x384xf32>
      %c0_14 = arith.constant 0 : index
      %c0_15 = arith.constant 0 : index
      %18 = vector.load %arg6[%c0_14, %c0_15] : memref<1024x384xf32, #tpu.memory_space<vmem>>, vector<1024x384xf32>
      tpu.vector_store %arg6[%c0_14, %c0_15], %17 {strides = array<i32>} : memref<1024x384xf32, #tpu.memory_space<vmem>>, vector<1024x384xf32>,
    } else {
    }
    return
  }
  func.func @transform_0(%arg0: i32, %arg1: i32, %arg2: i32) -> (i32, i32) {
    %c0_i32 = arith.constant 0 : i32
    return %arg0, %arg2 : i32, i32
  }
  func.func @transform_1(%arg0: i32, %arg1: i32, %arg2: i32) -> (i32, i32) {
    %c0_i32 = arith.constant 0 : i32
    return %arg2, %arg1 : i32, i32
  }
  func.func @transform_2(%arg0: i32, %arg1: i32, %arg2: i32) -> (i32, i32) {
    %c0_i32 = arith.constant 0 : i32
    %c0_i32_0 = arith.constant 0 : i32
    return %c0_i32, %arg1 : i32, i32
  }
  func.func @transform_3(%arg0: i32, %arg1: i32, %arg2: i32) -> (i32, i32) {
    %c0_i32 = arith.constant 0 : i32
    return %arg0, %arg1 : i32, i32
  }
}

</mosaic_0001>

<bundles_post_ra>
// kernel: tpu_custom_call.1
= control target key start
LH: loop header
LB: loop body
LE: loop exit
PB: predicated region body
PF: predicated region fallthrough
CT: control target
= control target key end

     0   :  { %s7654_s0 = inlined_call_operand.hbm [shape: f32[1024,256], index: 0, kind: input, shape index: {}]   ;;  %s7655_s1 = inlined_call_operand.hbm [shape: f32[256,768], index: 1, kind: input, shape index: {}]   ;;  %s7656_s2 = inlined_call_operand.hbm [shape: f32[1,768], index: 2, kind: input, shape index: {}]   ;;  %s7657_s3 = inlined_call_operand.hbm [shape: f32[1024,768], index: 3, kind: output, shape index: {}]  }
   0x1   :  { %7820 = sst [smem:[#allocation94_spill]] %s7654_s0 }
   0x2   :  { %7821 = sst [smem:[#allocation95_spill]] %s7655_s1 }
   0x3   :  { %8 = vsyncpa [#allocation4], 0 }
   0x4   :  { %9 = vsyncpa [#allocation7], 0 }
   0x5   :  { %11 = vsyncpa [#allocation7 + $0x1], 0 }
   0x6   :  { %12 = vsyncpa [#allocation5], 0 }
   0x7   :  { %14 = vsyncpa [#allocation5 + $0x1], 0  ;;  %s5969_s12 = smov 0   ;;  %s5971_s13 = smov 0  }
   0x8   :  { %s5973_s14 = smov 0   ;;  %s5975_s15 = smov 0  }
   0x9   :  { %s5977_s16 = smov 0   ;;  %s5979_s17 = smov 0  }
   0xa LB: > { %s35_s18 = sadd.s32 1, %s5934_s16  ;;  %s76_s19 = sadd.s32 1, %s5926_s14  ;;  %s5938_s17 = sphi %s5979_s17, %s20_s17   ;;  %s5934_s16 = sphi %s5977_s16, %s7995_s16   ;;  %s5930_s15 = sphi %s5975_s15, %s7994_s15   ;;  %s5926_s14 = sphi %s5973_s14, %s7993_s14   ;;  %s5922_s13 = sphi %s5971_s13, %s7992_s13   ;;  %s5918_s12 = sphi %s5969_s12, %s7991_s12  }
   0xb   : > { %p37_p0 = scmp.ge.s32.totalorder %s35_s18, 2  ;;  %p83_p1 = scmp.ne.s32.totalorder %s5926_s14, %s5922_s13 }
   0xc   : > { %p84_p2 = scmp.eq.s32.totalorder %s5938_s17, 0  ;;  %p5645_p3 = scmp.ge.s32.totalorder %s5938_s17, 2 }
   0xd   : > { %s7997_s18 = smov (%p37_p0, %s35_s18), 0  ;;  %p5701_p5 = scmp.lt.s32.totalorder %s5938_s17, 2 }
   0xe   : > { %p85_p4 = por %p84_p2, %p83_p1  ;;  %s72_s20 = ssub.s32 %s5934_s16, %s7997_s18 }
   0xf   : > { %s187_s21 = sand.u32 1, %s5938_s17   ;;  %p74_p6 = scmp.eq.s32.totalorder %s72_s20, 0 }
  0x10   : > { %s189_s22 = sand.u32 1, %s5926_s14   ;;  %s5652_s23 = smul.u32 24, %s5934_s16 }
  0x11   : > { %s6017_s24 = scalar_select %p74_p6, %s5926_s14, %s76_s19  }
  0x12   : > { %s5670_s25 = smul.u32 768, %s189_s22  ;;  %s7822_s1 = sld [smem:[#allocation95_spill]] }
  0x13   : > { %p6024_p7 = pnand %p5701_p5, %p85_p4  ;;  %s6028_s6 = scalar_lea.sflag [#allocation7], %s187_s21 }
  0x14   : > { %s191_s4 = scalar_lea.vmem [#allocation6], %s5670_s25  ;;  %s5940_s7 = smov 768  }
  0x15   : > { %s202_s5 = sshll.u32 %s191_s4, 4  ;;  %s5941_s8 = smov 384   ;;  %s203_s5 = int_to_ptr.vmem [resolvable:$true] %s202_s5 }
  0x16   : > { %s5942_s9 = smov 24   ;;  %s6034_s10 = sadd.s32 4294967295, %s5938_s17  }
  0x17   : > { %s5642_s11 = sadd.s32 4294967294, %s5938_s17   ;;  %p89_p8 = scmp.ne.s32.totalorder %s5922_s13, %s5918_s12 }
  0x18   : > { %s199_s28 = scalar_lea.hbm %s7822_s1, %s5652_s23  ;;  %p90_p9 = scmp.eq.s32.totalorder %s6034_s10, 0 }
  0x19   : > { %s200_s29 = sshll.u32 %s199_s28, 4  ;;  %p141_p10 = scmp.eq.s32.totalorder %s6034_s10, 1  ;;  %s201_s29 = int_to_ptr.hbm [resolvable:$true] %s200_s29 }
  0x1a   : > { %5692 = dma.hbm_to_vmem [thread:$0]  (!%p6024_p7), %s201_s29, 12288, %s203_s5, %s6028_s6, %s5940_s7, %s5941_s8, %s5942_s9  }
  0x1b   : > { %p147_p11 = scmp.eq.s32.totalorder %s5642_s11, 1  ;;  %p6043_p12 = por %p90_p9, %p89_p8 }
  0x1c   : > { %p5643_p13 = scmp.ge.s32.totalorder %s5938_s17, 1  ;;  %p6051_p0 = por %p141_p10, %p83_p1 }
  0x1d   : > { %p6055_p2 = por %p147_p11, %p89_p8  ;;  %p154_p4 = scmp.lt.s32.totalorder %s5938_s17, 3 }
  0x1e   : > { %s7827_s0 = sld [smem:[#allocation94_spill]]  ;;  %s5943_s28 = smov [#allocation3]  }
  0x1f   : > { %p6063_p5 = pnand %p5643_p13, %p154_p4  ;;  %s173_s29 = sshll.u32 %s5943_s28, 4  ;;  %s174_s29 = int_to_ptr.vmem [resolvable:$true] %s173_s29 }
  0x20   : > { %s5671_s4 = smul.u32 3, %s189_s22  ;;  %s5944_s11 = smov 256  }
  0x21   : > { %p5685_p1 = pneg %p6063_p5  ;;  %s217_s5 = smul.u32 3, %s5934_s16 }
  0x22   : > { %s5945_s23 = smov 16  }
  0x23   : > { %p5686_p6 = pnand %p5685_p1, %p90_p9  ;;  %s220_s9 = scalar_lea.hbm %s7656_s2, %s217_s5 }
  0x24   : > { %s171_s26 = sshll.u32 %s7827_s0, 4  ;;  %s222_s25 = sshll.u32 %s220_s9, 4  ;;  %s172_s26 = int_to_ptr.hbm [resolvable:$true] %s171_s26  ;;  %s223_s25 = int_to_ptr.hbm [resolvable:$true] %s222_s25 }
  0x25   : > { %5688 = dma.hbm_to_vmem [thread:$0]  (!%p5686_p6), %s172_s26, 32768, %s174_s29, [#allocation4], %s5944_s11, %s5944_s11, %s5945_s23  }
  0x26   : > { %s216_s0 = scalar_lea.vmem [#allocation8], %s5671_s4  ;;  %233 = sbr.rel (%p6063_p5) target bundleno = 1755 (0x6db), region = 32 }
  0x27   : > { %s224_s1 = sshll.u32 %s216_s0, 4  ;;  %s225_s1 = int_to_ptr.vmem [resolvable:$true] %s224_s1 }
  0x28   : > { %5695 = dma.hbm_to_vmem [thread:$0]  (!%p6024_p7), %s223_s25, 48, %s225_s1, %s6028_s6  }
  0x2b   : > { %5905 = dma.done.wait (%p90_p9), [#allocation4], 32768  }
  0x2c   : > { %5907 = vsyncadd (%p90_p9), [#allocation4], 4294934528  ;;  %s240_s22 = sand.u32 1, %s6034_s10   ;;  %s6088_s26 = sand.u32 1, %s5922_s13  }
  0x2d   : > { %s5672_s0 = smul.u32 768, %s6088_s26  ;;  %s241_s28 = scalar_lea.sflag [#allocation7], %s240_s22 }
  0x2f   : > { %s6091_s30 = scalar_lea.vmem [#allocation6], %s5672_s0 }
  0x30   : > { %5909 = dma.done.wait (%p6043_p12), %s241_s28, 12336  }
  0x31   : > { %5911 = vsyncadd (%p6043_p12), %s241_s28, 4294954960  ;;  %v1488_v0 = vld [vmem:[%s6091_s30 + $0x150] sm:$0xff]  ;;  %v1491_v1 = vld [vmem:[%s6091_s30 + $0x168] sm:$0xff]  ;;  %s5673_s1 = smul.u32 3, %s6088_s26  ;;  %s5496_s8 = scalar_lea.sflag [#allocation5], %s6088_s26 }
  0x32   : > { %v1536_v2 = vld [vmem:[%s6091_s30 + $0x2d0] sm:$0xff]  ;;  %v1563_v3 = vpack.c.bf16 %v1491_v1, %v1488_v0  ;;  %v1539_v4 = vld [vmem:[%s6091_s30 + $0x2e8] sm:$0xff]  ;;  %v1482_v5 = vld [vmem:[%s6091_s30 + $0x120] sm:$0xff]  ;;  %s5674_s10 = smul.u32 3072, %s6088_s26  ;;  %s5872_s22 = scalar_lea.hbm %s7657_s3, 6144 }
  0x33   : > { %v1485_v6 = vld [vmem:[%s6091_s30 + $0x138] sm:$0xff]  ;;  %v1587_v7 = vpack.c.bf16 %v1539_v4, %v1536_v2  ;;  %v1530_v8 = vld [vmem:[%s6091_s30 + $0x2a0] sm:$0xff]  ;;  %v1476_v12 = vld [vmem:[%s6091_s30 + $0xf0] sm:$0xff]  ;;  %s6250_s6 = scalar_lea.vmem [#allocation8], %s5673_s1  ;;  %s5653_s27 = smul.u32 24, %s5930_s15 }
  0x34   : > { %v1533_v9 = vld [vmem:[%s6091_s30 + $0x2b8] sm:$0xff]  ;;  %1590 = vmatpush.bf16.msra.mxu0 %v1563_v3  ;;  %5654 = vmatpush.bf16.msra.mxu2 %v1563_v3  ;;  %v1560_v10 = vpack.c.bf16 %v1485_v6, %v1482_v5  ;;  %v1479_v13 = vld [vmem:[%s6091_s30 + $0x108] sm:$0xff]  ;;  %v1524_v14 = vld [vmem:[%s6091_s30 + $0x270] sm:$0xff]  ;;  %s6269_s19 = scalar_lea.vmem [#allocation9], %s5674_s10 }
  0x35   : > { %1919 = vmatpush.bf16.msra.mxu1 %v1587_v7  ;;  %5662 = vmatpush.bf16.msra.mxu3 %v1587_v7  ;;  %v1584_v11 = vpack.c.bf16 %v1533_v9, %v1530_v8  ;;  %v1527_v15 = vld [vmem:[%s6091_s30 + $0x288] sm:$0xff]  ;;  %v1557_v16 = vpack.c.bf16 %v1479_v13, %v1476_v12  ;;  %v1470_v18 = vld [vmem:[%s6091_s30 + $0xc0] sm:$0xff]  ;;  %v1473_v19 = vld [vmem:[%s6091_s30 + $0xd8] sm:$0xff]  ;;  %s5510_s5 = scalar_lea.hbm %s7657_s3, %s5653_s27  ;;  %s5511_s7 = sshll.u32 %s6269_s19, 4  ;;  %s5512_s7 = int_to_ptr.vmem [resolvable:$true] %s5511_s7 }
  0x36   : > { %v1581_v17 = vpack.c.bf16 %v1527_v15, %v1524_v14  ;;  %v1518_v20 = vld [vmem:[%s6091_s30 + $0x240] sm:$0xff]  ;;  %v1521_v21 = vld [vmem:[%s6091_s30 + $0x258] sm:$0xff]  ;;  %v1554_v22 = vpack.c.bf16 %v1473_v19, %v1470_v18  ;;  %v1464_v24 = vld [vmem:[%s6091_s30 + $0x90] sm:$0xff]  ;;  %s5513_s15 = sshll.u32 %s5510_s5, 4  ;;  %s5514_s15 = int_to_ptr.hbm [resolvable:$true] %s5513_s15 }
  0x37   : > { %v1578_v23 = vpack.c.bf16 %v1521_v21, %v1518_v20  ;;  %v1467_v25 = vld [vmem:[%s6091_s30 + $0xa8] sm:$0xff]  ;;  %v1512_v26 = vld [vmem:[%s6091_s30 + $0x210] sm:$0xff]  ;;  %v1458_v30 = vld [vmem:[%s6091_s30 + $0x60] sm:$0xff]  ;;  %s5866_s9 = sshra.s32 %s5514_s15, 4  ;;  %s5867_s9 = int_to_ptr.hbm [resolvable:$true] %s5866_s9 }
  0x38   : > { %1591 = vmatpush.bf16.msra.mxu0 %v1560_v10  ;;  %5655 = vmatpush.bf16.msra.mxu2 %v1560_v10  ;;  %v1515_v27 = vld [vmem:[%s6091_s30 + $0x228] sm:$0xff]  ;;  %v1551_v28 = vpack.c.bf16 %v1467_v25, %v1464_v24  ;;  %v1461_v31 = vld [vmem:[%s6091_s30 + $0x78] sm:$0xff]  ;;  %v1506_v32 = vld [vmem:[%s6091_s30 + $0x1e0] sm:$0xff]  ;;  %s5868_s11 = scalar_lea.hbm %s5867_s9, 3072  ;;  %p5873_p10 = scmp.lt.s32.totalorder %s5867_s9, %s7657_s3 }
  0x39   : > { %1920 = vmatpush.bf16.msra.mxu1 %v1584_v11  ;;  %5663 = vmatpush.bf16.msra.mxu3 %v1584_v11  ;;  %v1575_v29 = vpack.c.bf16 %v1515_v27, %v1512_v26  ;;  %v1509_v33 = vld [vmem:[%s6091_s30 + $0x1f8] sm:$0xff]  ;;  %v1548_v34 = vpack.c.bf16 %v1461_v31, %v1458_v30  ;;  %v1452_v36 = vld [vmem:[%s6091_s30 + $0x30] sm:$0xff]  ;;  %v1455_v37 = vld [vmem:[%s6091_s30 + $0x48] sm:$0xff]  ;;  %p5869_p7 = scmp.ne.s32.totalorder %s5867_s9, %s5868_s11  ;;  %p5874_p11 = scmp.lt.s32.totalorder %s5872_s22, %s5868_s11 }
  0x3a   : > { %v1572_v35 = vpack.c.bf16 %v1509_v33, %v1506_v32  ;;  %v1500_v38 = vld [vmem:[%s6091_s30 + $0x1b0] sm:$0xff]  ;;  %v1503_v39 = vld [vmem:[%s6091_s30 + $0x1c8] sm:$0xff]  ;;  %v1545_v40 = vpack.c.bf16 %v1455_v37, %v1452_v36  ;;  %v1446_v41 = vld [vmem:[%s6091_s30] sm:$0xff] }
  0x3b   : > { %v1569_v42 = vpack.c.bf16 %v1503_v39, %v1500_v38  ;;  %v1449_v43 = vld [vmem:[%s6091_s30 + $0x18] sm:$0xff]  ;;  %v1494_v44 = vld [vmem:[%s6091_s30 + $0x180] sm:$0xff]  ;;  %v1064_v47 = vld [vmem:[#allocation3 + $0x10] sm:$0xff]  ;;  %p5870_p8 = pnand %p5869_p7, %p6051_p0  ;;  %p5875_p12 = por %p5874_p11, %p5873_p10 }
  0x3c   : > { %1592 = vmatpush.bf16.msra.mxu0 %v1557_v16  ;;  %5656 = vmatpush.bf16.msra.mxu2 %v1557_v16  ;;  %v1497_v45 = vld [vmem:[%s6091_s30 + $0x198] sm:$0xff]  ;;  %v1062_v46 = vld [vmem:[#allocation3] sm:$0xff]  ;;  %v1492_v50 = vld [vmem:[%s6091_s30 + $0x170] sm:$0xff]  ;;  %v1542_v53 = vpack.c.bf16 %v1449_v43, %v1446_v41 }
  0x3d   : > { %1921 = vmatpush.bf16.msra.mxu1 %v1581_v17  ;;  %5664 = vmatpush.bf16.msra.mxu3 %v1581_v17  ;;  %v1190_v48 = vld [vmem:[#allocation3 + $0x400] sm:$0xff]  ;;  %v1489_v49 = vld [vmem:[%s6091_s30 + $0x158] sm:$0xff]  ;;  %v1540_v52 = vld [vmem:[%s6091_s30 + $0x2f0] sm:$0xff]  ;;  %v1566_v57 = vpack.c.bf16 %v1497_v45, %v1494_v44  ;;  %v6137_v2 = vpack.c.bf16 %v1064_v47, %v1062_v46  ;;  %p5871_p9 = pneg %p5870_p8 }
  0x3e   : > { %v1537_v51 = vld [vmem:[%s6091_s30 + $0x2d8] sm:$0xff]  ;;  %v1192_v54 = vld [vmem:[#allocation3 + $0x410] sm:$0xff]  ;;  %v1063_v55 = vld [vmem:[#allocation3 + $0x8] sm:$0xff]  ;;  %v1564_v61 = vpack.c.bf16 %v1492_v50, %v1489_v49 }
  0x3f   : > { %v1065_v56 = vld [vmem:[#allocation3 + $0x18] sm:$0xff]  ;;  %v1191_v58 = vld [vmem:[#allocation3 + $0x408] sm:$0xff]  ;;  %v1490_v60 = vld [vmem:[%s6091_s30 + $0x160] sm:$0xff]  ;;  %v1588_v62 = vpack.c.bf16 %v1540_v52, %v1537_v51  ;;  %v6139_v3 = vpack.c.bf16 %v1192_v54, %v1190_v48  ;;  %p5876_p13 = pnand %p5875_p12, %p5871_p9 }
  0x40   : > { %1593 = vmatpush.bf16.msra.mxu0 %v1554_v22  ;;  %5657 = vmatpush.bf16.msra.mxu2 %v1554_v22  ;;  %v1193_v59 = vld [vmem:[#allocation3 + $0x418] sm:$0xff]  ;;  %v1538_v0 = vld [vmem:[%s6091_s30 + $0x2e0] sm:$0xff]  ;;  %v6141_v4 = vpack.c.bf16 %v1065_v56, %v1063_v55  ;;  %v1068_v9 = vld [vmem:[#allocation3 + $0x30] sm:$0xff] }
  0x41   : > { %1922 = vmatpush.bf16.msra.mxu1 %v1578_v23  ;;  %5665 = vmatpush.bf16.msra.mxu3 %v1578_v23  ;;  %v1493_v63 = vld [vmem:[%s6091_s30 + $0x178] sm:$0xff]  ;;  %7829 = vst [vmem:[#allocation13_spill] sm:$0xff] %v6139_v3  ;;  %v6143_v5 = vpack.c.bf16 %v1193_v59, %v1191_v58  ;;  %v1066_v8 = vld [vmem:[#allocation3 + $0x20] sm:$0xff]  ;;  %v1196_v11 = vld [vmem:[#allocation3 + $0x430] sm:$0xff] }
  0x42   : > { %v1541_v1 = vld [vmem:[%s6091_s30 + $0x2f8] sm:$0xff]  ;;  %v1565_v6 = vpack.c.bf16 %v1493_v63, %v1490_v60  ;;  %v1194_v10 = vld [vmem:[#allocation3 + $0x420] sm:$0xff]  ;;  %v1067_v12 = vld [vmem:[#allocation3 + $0x28] sm:$0xff]  ;;  %v6149_v16 = vpack.c.bf16 %v1068_v9, %v1066_v8 }
  0x43   : > { %7830 = vst [vmem:[#allocation14_spill] sm:$0xff] %v6143_v5  ;;  %v1589_v7 = vpack.c.bf16 %v1541_v1, %v1538_v0  ;;  %v1069_v13 = vld [vmem:[#allocation3 + $0x38] sm:$0xff]  ;;  %v1195_v14 = vld [vmem:[#allocation3 + $0x428] sm:$0xff]  ;;  %v6151_v17 = vpack.c.bf16 %v1196_v11, %v1194_v10  ;;  %v1070_v20 = vld [vmem:[#allocation3 + $0x40] sm:$0xff] }
  0x44   : > { %1594 = vmatpush.bf16.msra.mxu0 %v1551_v28  ;;  %5658 = vmatpush.bf16.msra.mxu2 %v1551_v28  ;;  %v1197_v15 = vld [vmem:[#allocation3 + $0x438] sm:$0xff]  ;;  %v6153_v18 = vpack.c.bf16 %v1069_v13, %v1067_v12  ;;  %v1072_v21 = vld [vmem:[#allocation3 + $0x50] sm:$0xff]  ;;  %v1198_v22 = vld [vmem:[#allocation3 + $0x440] sm:$0xff] }
  0x45   : > { %1923 = vmatpush.bf16.msra.mxu1 %v1575_v29  ;;  %5666 = vmatpush.bf16.msra.mxu3 %v1575_v29  ;;  %7831 = vst [vmem:[#allocation15_spill] sm:$0xff] %v6151_v17  ;;  %v6155_v19 = vpack.c.bf16 %v1197_v15, %v1195_v14  ;;  %v1200_v23 = vld [vmem:[#allocation3 + $0x450] sm:$0xff]  ;;  %v1071_v24 = vld [vmem:[#allocation3 + $0x48] sm:$0xff]  ;;  %v1073_v25 = vld [vmem:[#allocation3 + $0x58] sm:$0xff]  ;;  %v6161_v28 = vpack.c.bf16 %v1072_v21, %v1070_v20 }
  0x46   : > { %v1199_v26 = vld [vmem:[#allocation3 + $0x448] sm:$0xff]  ;;  %v1201_v27 = vld [vmem:[#allocation3 + $0x458] sm:$0xff]  ;;  %v6163_v29 = vpack.c.bf16 %v1200_v23, %v1198_v22  ;;  %v6165_v30 = vpack.c.bf16 %v1073_v25, %v1071_v24  ;;  %v1486_v33 = vld [vmem:[%s6091_s30 + $0x140] sm:$0xff] }
  0x47   : > { %7832 = vst [vmem:[#allocation16_spill] sm:$0xff] %v6155_v19  ;;  %v6167_v31 = vpack.c.bf16 %v1201_v27, %v1199_v26  ;;  %v1483_v32 = vld [vmem:[%s6091_s30 + $0x128] sm:$0xff]  ;;  %v1534_v36 = vld [vmem:[%s6091_s30 + $0x2c0] sm:$0xff]  ;;  %v1484_v37 = vld [vmem:[%s6091_s30 + $0x130] sm:$0xff] }
  0x48   : > { %1595 = vmatpush.bf16.msra.mxu0 %v1548_v34  ;;  %5659 = vmatpush.bf16.msra.mxu2 %v1548_v34  ;;  %7833 = vst [vmem:[#allocation17_spill] sm:$0xff] %v6163_v29  ;;  %v1531_v34 = vld [vmem:[%s6091_s30 + $0x2a8] sm:$0xff]  ;;  %v1532_v41 = vld [vmem:[%s6091_s30 + $0x2b0] sm:$0xff]  ;;  %v1074_v44 = vld [vmem:[#allocation3 + $0x60] sm:$0xff] }
  0x49   : > { %1924 = vmatpush.bf16.msra.mxu1 %v1572_v35  ;;  %5667 = vmatpush.bf16.msra.mxu3 %v1572_v35  ;;  %7834 = vst [vmem:[#allocation18_spill] sm:$0xff] %v6167_v31  ;;  %v1561_v35 = vpack.c.bf16 %v1486_v33, %v1483_v32  ;;  %v1487_v38 = vld [vmem:[%s6091_s30 + $0x148] sm:$0xff]  ;;  %v1585_v39 = vpack.c.bf16 %v1534_v36, %v1531_v34  ;;  %v1076_v45 = vld [vmem:[#allocation3 + $0x70] sm:$0xff]  ;;  %v1202_v46 = vld [vmem:[#allocation3 + $0x460] sm:$0xff] }
  0x4a   : > { %v1204_v47 = vld [vmem:[#allocation3 + $0x470] sm:$0xff]  ;;  %v1075_v48 = vld [vmem:[#allocation3 + $0x68] sm:$0xff]  ;;  %v1077_v49 = vld [vmem:[#allocation3 + $0x78] sm:$0xff]  ;;  %v6181_v52 = vpack.c.bf16 %v1076_v45, %v1074_v44 }
  0x4b   : > { %v1203_v50 = vld [vmem:[#allocation3 + $0x468] sm:$0xff]  ;;  %v1205_v51 = vld [vmem:[#allocation3 + $0x478] sm:$0xff]  ;;  %v6185_v54 = vpack.c.bf16 %v1077_v49, %v1075_v48  ;;  %v1078_v56 = vld [vmem:[#allocation3 + $0x80] sm:$0xff] }
  0x4c   : > { %1596 = vmatpush.bf16.msra.mxu0 %v1545_v40  ;;  %5660 = vmatpush.bf16.msra.mxu2 %v1545_v40  ;;  %v1562_v40 = vpack.c.bf16 %v1487_v38, %v1484_v37  ;;  %v6187_v55 = vpack.c.bf16 %v1205_v51, %v1203_v50  ;;  %v1206_v58 = vld [vmem:[#allocation3 + $0x480] sm:$0xff]  ;;  %v1208_v59 = vld [vmem:[#allocation3 + $0x490] sm:$0xff]  ;;  %v1079_v60 = vld [vmem:[#allocation3 + $0x88] sm:$0xff] }
  0x4d   : > { %1925 = vmatpush.bf16.msra.mxu1 %v1569_v42  ;;  %5668 = vmatpush.bf16.msra.mxu3 %v1569_v42  ;;  %v1535_v42 = vld [vmem:[%s6091_s30 + $0x2c8] sm:$0xff]  ;;  %v1209_v63 = vld [vmem:[#allocation3 + $0x498] sm:$0xff]  ;;  %v6195_v1 = vpack.c.bf16 %v1208_v59, %v1206_v58  ;;  %v1082_v8 = vld [vmem:[#allocation3 + $0xa0] sm:$0xff] }
  0x4e   : > { %v1586_v43 = vpack.c.bf16 %v1535_v42, %v1532_v41  ;;  %7836 = vst [vmem:[#allocation20_spill] sm:$0xff] %v6187_v55  ;;  %v1084_v9 = vld [vmem:[#allocation3 + $0xb0] sm:$0xff]  ;;  %v1210_v10 = vld [vmem:[#allocation3 + $0x4a0] sm:$0xff]  ;;  %v1083_v12 = vld [vmem:[#allocation3 + $0xa8] sm:$0xff] }
  0x4f   : > { %7837 = vst [vmem:[#allocation21_spill] sm:$0xff] %v6195_v1  ;;  %v1212_v11 = vld [vmem:[#allocation3 + $0x4b0] sm:$0xff]  ;;  %v1085_v13 = vld [vmem:[#allocation3 + $0xb8] sm:$0xff]  ;;  %v1211_v14 = vld [vmem:[#allocation3 + $0x4a8] sm:$0xff]  ;;  %v6205_v20 = vpack.c.bf16 %v1084_v9, %v1082_v8 }
  0x50   : > { %1597 = vmatpush.bf16.msra.mxu0 %v1542_v53  ;;  %5661 = vmatpush.bf16.msra.mxu2 %v1542_v53  ;;  %v6183_v53 = vpack.c.bf16 %v1204_v47, %v1202_v46  ;;  %v1213_v15 = vld [vmem:[#allocation3 + $0x4b8] sm:$0xff]  ;;  %v6207_v21 = vpack.c.bf16 %v1212_v11, %v1210_v10  ;;  %v6209_v22 = vpack.c.bf16 %v1085_v13, %v1083_v12  ;;  %v1086_v24 = vld [vmem:[#allocation3 + $0xc0] sm:$0xff]  ;;  %v1088_v25 = vld [vmem:[#allocation3 + $0xd0] sm:$0xff] }
  0x51   : > { %1926 = vmatpush.bf16.msra.mxu1 %v1566_v57  ;;  %5669 = vmatpush.bf16.msra.mxu3 %v1566_v57  ;;  %v1080_v57 = vld [vmem:[#allocation3 + $0x90] sm:$0xff]  ;;  %v6211_v23 = vpack.c.bf16 %v1213_v15, %v1211_v14  ;;  %v1214_v26 = vld [vmem:[#allocation3 + $0x4c0] sm:$0xff]  ;;  %v1087_v32 = vld [vmem:[#allocation3 + $0xc8] sm:$0xff]  ;;  %v6217_v36 = vpack.c.bf16 %v1088_v25, %v1086_v24 }
  0x52   : > { %7835 = vst [vmem:[#allocation19_spill] sm:$0xff] %v6183_v53  ;;  %v6193_v0 = vpack.c.bf16 %v1080_v57, %v1078_v56  ;;  %v1216_v27 = vld [vmem:[#allocation3 + $0x4d0] sm:$0xff]  ;;  %v1089_v33 = vld [vmem:[#allocation3 + $0xd8] sm:$0xff]  ;;  %v1215_v34 = vld [vmem:[#allocation3 + $0x4c8] sm:$0xff] }
  0x53   : > { %1598 = vmatmul.bf16.vlgmr.msra.gmra.mxu0 %v6137_v2  ;;  %1758 = vmatmul.bf16.vlgmr.msra.gmra.mxu2 %v6139_v3  ;;  %7839 = vst [vmem:[#allocation23_spill] sm:$0xff] %v6207_v21  ;;  %v6219_v37 = vpack.c.bf16 %v1216_v27, %v1214_v26  ;;  %v6221_v38 = vpack.c.bf16 %v1089_v33, %v1087_v32  ;;  %v1480_v41 = vld [vmem:[%s6091_s30 + $0x110] sm:$0xff]  ;;  %v1525_v42 = vld [vmem:[%s6091_s30 + $0x278] sm:$0xff]  ;;  %v1090_v46 = vld [vmem:[#allocation3 + $0xe0] sm:$0xff] }
  0x54   : > { %2248 = vmatpush.bf16.msrb.mxu2 %v1564_v61  ;;  %1927 = vmatmul.bf16.vlgmr.msra.gmra.mxu1 %v6141_v4  ;;  %v1081_v61 = vld [vmem:[#allocation3 + $0x98] sm:$0xff]  ;;  %7840 = vst [vmem:[#allocation24_spill] sm:$0xff] %v6211_v23  ;;  %v1528_v44 = vld [vmem:[%s6091_s30 + $0x290] sm:$0xff]  ;;  %v1218_v48 = vld [vmem:[#allocation3 + $0x4e0] sm:$0xff] }
  0x55   : > { %2577 = vmatpush.bf16.msrb.mxu3 %v1588_v62  ;;  %2906 = vmatpush.bf16.msrb.mxu0 %v1565_v6  ;;  %v1207_v62 = vld [vmem:[#allocation3 + $0x488] sm:$0xff]  ;;  %v6197_v6 = vpack.c.bf16 %v1081_v61, %v1079_v60  ;;  %7841 = vst [vmem:[#allocation25_spill] sm:$0xff] %v6219_v37  ;;  %v1582_v45 = vpack.c.bf16 %v1528_v44, %v1525_v42  ;;  %v1092_v47 = vld [vmem:[#allocation3 + $0xf0] sm:$0xff]  ;;  %v1093_v51 = vld [vmem:[#allocation3 + $0xf8] sm:$0xff] }
  0x56   : > { %2087 = vmatmul.bf16.vlgmr.msra.gmra.mxu3 %v6143_v5  ;;  %3235 = vmatpush.bf16.msrb.mxu1 %v1589_v7  ;;  %v6199_v7 = vpack.c.bf16 %v1209_v63, %v1207_v62  ;;  %v1220_v49 = vld [vmem:[#allocation3 + $0x4f0] sm:$0xff]  ;;  %v1091_v50 = vld [vmem:[#allocation3 + $0xe8] sm:$0xff]  ;;  %v1221_v57 = vld [vmem:[#allocation3 + $0x4f8] sm:$0xff]  ;;  %v6236_v61 = vpack.c.bf16 %v1092_v47, %v1090_v46 }
  0x57   : > { %v1219_v56 = vld [vmem:[#allocation3 + $0x4e8] sm:$0xff]  ;;  %v1478_v58 = vld [vmem:[%s6091_s30 + $0x100] sm:$0xff]  ;;  %v1481_v59 = vld [vmem:[%s6091_s30 + $0x118] sm:$0xff]  ;;  %v6238_v62 = vpack.c.bf16 %v1220_v49, %v1218_v48  ;;  %v6241_v9 = vpack.c.bf16 %v1093_v51, %v1091_v50 }
  0x58   : > { %2249 = vmatpush.bf16.msrb.mxu2 %v1561_v35  ;;  %7838 = vst [vmem:[#allocation22_spill] sm:$0xff] %v6199_v7  ;;  %v1217_v35 = vld [vmem:[#allocation3 + $0x4d8] sm:$0xff]  ;;  %v1526_v60 = vld [vmem:[%s6091_s30 + $0x280] sm:$0xff]  ;;  %v1559_v63 = vpack.c.bf16 %v1481_v59, %v1478_v58  ;;  %v6243_v10 = vpack.c.bf16 %v1221_v57, %v1219_v56  ;;  %v1096_v13 = vld [vmem:[#allocation3 + $0x110] sm:$0xff] }
  0x59   : > { %2578 = vmatpush.bf16.msrb.mxu3 %v1585_v39  ;;  %2907 = vmatpush.bf16.msrb.mxu0 %v1562_v40  ;;  %v6223_v39 = vpack.c.bf16 %v1217_v35, %v1215_v34  ;;  %v1477_v40 = vld [vmem:[%s6091_s30 + $0xf8] sm:$0xff]  ;;  %7843 = vst [vmem:[#allocation27_spill] sm:$0xff] %v6238_v62  ;;  %v1094_v12 = vld [vmem:[#allocation3 + $0x100] sm:$0xff]  ;;  %v1224_v24 = vld [vmem:[#allocation3 + $0x510] sm:$0xff] }
  0x5a   : > { %3236 = vmatpush.bf16.msrb.mxu1 %v1586_v43  ;;  %v1558_v43 = vpack.c.bf16 %v1480_v41, %v1477_v40  ;;  %v1529_v8 = vld [vmem:[%s6091_s30 + $0x298] sm:$0xff]  ;;  %7844 = vst [vmem:[#allocation28_spill] sm:$0xff] %v6243_v10  ;;  %v1222_v14 = vld [vmem:[#allocation3 + $0x500] sm:$0xff]  ;;  %v1095_v25 = vld [vmem:[#allocation3 + $0x108] sm:$0xff]  ;;  %v6254_v33 = vpack.c.bf16 %v1096_v13, %v1094_v12 }
  0x5b   : > { %7842 = vst [vmem:[#allocation26_spill] sm:$0xff] %v6223_v39  ;;  %v1583_v11 = vpack.c.bf16 %v1529_v8, %v1526_v60  ;;  %v4719_v15 = vld [vmem:[%s6250_s6] sm:$0x7]  ;;  %v1097_v26 = vld [vmem:[#allocation3 + $0x118] sm:$0xff]  ;;  %v1223_v27 = vld [vmem:[#allocation3 + $0x508] sm:$0xff]  ;;  %v6256_v34 = vpack.c.bf16 %v1224_v24, %v1222_v14 }
  0x5c   : > { %2250 = vmatpush.bf16.msrb.mxu2 %v1558_v43  ;;  %v1225_v32 = vld [vmem:[#allocation3 + $0x518] sm:$0xff]  ;;  %v6258_v40 = vperm.slane %v4719_v15, 0  ;;  %v6260_v41 = vpack.c.bf16 %v1097_v26, %v1095_v25  ;;  %v1098_v57 = vld [vmem:[#allocation3 + $0x120] sm:$0xff]  ;;  %v1100_v58 = vld [vmem:[#allocation3 + $0x130] sm:$0xff] }
  0x5d   : > { %2579 = vmatpush.bf16.msrb.mxu3 %v1582_v45  ;;  %2908 = vmatpush.bf16.msrb.mxu0 %v1559_v63  ;;  %7845 = vst [vmem:[#allocation29_spill] sm:$0xff] %v6256_v34  ;;  %v6262_v42 = vpack.c.bf16 %v1225_v32, %v1223_v27  ;;  %v1226_v60 = vld [vmem:[#allocation3 + $0x520] sm:$0xff]  ;;  %v1228_v63 = vld [vmem:[#allocation3 + $0x530] sm:$0xff]  ;;  %v1099_v8 = vld [vmem:[#allocation3 + $0x128] sm:$0xff]  ;;  %v6276_v24 = vpack.c.bf16 %v1100_v58, %v1098_v57 }
  0x5e   : > { %3237 = vmatpush.bf16.msrb.mxu1 %v1583_v11  ;;  %v1101_v11 = vld [vmem:[#allocation3 + $0x138] sm:$0xff]  ;;  %v1227_v12 = vld [vmem:[#allocation3 + $0x528] sm:$0xff]  ;;  %v6278_v25 = vpack.c.bf16 %v1228_v63, %v1226_v60  ;;  %v1102_v58 = vld [vmem:[#allocation3 + $0x140] sm:$0xff] }
  0x5f   : > { %7846 = vst [vmem:[#allocation30_spill] sm:$0xff] %v6262_v42  ;;  %v1229_v13 = vld [vmem:[#allocation3 + $0x538] sm:$0xff]  ;;  %v6280_v32 = vpack.c.bf16 %v1101_v11, %v1099_v8  ;;  %v1230_v63 = vld [vmem:[#allocation3 + $0x540] sm:$0xff]  ;;  %v1232_v8 = vld [vmem:[#allocation3 + $0x550] sm:$0xff] }
  0x60   : > { %7847 = vst [vmem:[#allocation31_spill] sm:$0xff] %v6278_v25  ;;  %v1103_v11 = vld [vmem:[#allocation3 + $0x148] sm:$0xff] }
  0x63   : > { %1603 = vmatmul.bf16.gmra.mxu0 %v6149_v16  ;;  %1763 = vmatmul.bf16.gmra.mxu2 %v6151_v17 }
  0x64   : > { %1932 = vmatmul.bf16.gmra.mxu1 %v6153_v18 }
  0x66   : > { %2092 = vmatmul.bf16.gmra.mxu3 %v6155_v19 }
  0x73   : > { %1608 = vmatmul.bf16.gmra.mxu0 %v6161_v28  ;;  %1768 = vmatmul.bf16.gmra.mxu2 %v6163_v29 }
  0x74   : > { %1937 = vmatmul.bf16.gmra.mxu1 %v6165_v30 }
  0x76   : > { %2097 = vmatmul.bf16.gmra.mxu3 %v6167_v31 }
  0x83   : > { %1613 = vmatmul.bf16.gmra.mxu0 %v6181_v52  ;;  %1773 = vmatmul.bf16.gmra.mxu2 %v6183_v53 }
  0x84   : > { %1942 = vmatmul.bf16.gmra.mxu1 %v6185_v54 }
  0x86   : > { %2102 = vmatmul.bf16.gmra.mxu3 %v6187_v55  ;;  %v1508_v55 = vld [vmem:[%s6091_s30 + $0x1f0] sm:$0xff] }
  0x93   : > { %1618 = vmatmul.bf16.gmra.mxu0 %v6193_v0  ;;  %1778 = vmatmul.bf16.gmra.mxu2 %v6195_v1 }
  0x94   : > { %1947 = vmatmul.bf16.gmra.mxu1 %v6197_v6 }
  0x96   : > { %2107 = vmatmul.bf16.gmra.mxu3 %v6199_v7 }
  0xa3   : > { %1623 = vmatmul.bf16.gmra.mxu0 %v6205_v20  ;;  %1783 = vmatmul.bf16.gmra.mxu2 %v6207_v21 }
  0xa4   : > { %1952 = vmatmul.bf16.gmra.mxu1 %v6209_v22 }
  0xa6   : > { %2112 = vmatmul.bf16.gmra.mxu3 %v6211_v23 }
  0xb3   : > { %1628 = vmatmul.bf16.gmra.mxu0 %v6217_v36  ;;  %1788 = vmatmul.bf16.gmra.mxu2 %v6219_v37 }
  0xb4   : > { %1957 = vmatmul.bf16.gmra.mxu1 %v6221_v38 }
  0xb6   : > { %2117 = vmatmul.bf16.gmra.mxu3 %v6223_v39 }
  0xc3   : > { %1633 = vmatmul.bf16.gmra.mxu0 %v6236_v61  ;;  %1793 = vmatmul.bf16.gmra.mxu2 %v6238_v62 }
  0xc4   : > { %1962 = vmatmul.bf16.gmra.mxu1 %v6241_v9 }
  0xc6   : > { %2122 = vmatmul.bf16.gmra.mxu3 %v6243_v10  ;;  %v1514_v10 = vld [vmem:[%s6091_s30 + $0x220] sm:$0xff] }
  0xd0   : > { %v1599_v35 = vpop.f32.mrf.mxu0 }
  0xd1   : > { %v1928_v43 = vpop.f32.mrf.mxu1 }
  0xd2   : > { %v1929_v44 = vadd.f32 %v1928_v43, %v1599_v35  ;;  %v6282_v35 = vpack.c.bf16 %v1229_v13, %v1227_v12  ;;  %v1105_v12 = vld [vmem:[#allocation3 + $0x158] sm:$0xff]  ;;  %v1231_v13 = vld [vmem:[#allocation3 + $0x548] sm:$0xff] }
  0xd3   : > { %1638 = vmatmul.bf16.gmra.mxu0 %v6254_v33  ;;  %1798 = vmatmul.bf16.gmra.mxu2 %v6256_v34 }
  0xd4   : > { %v4727_v45 = vadd.f32 %v6258_v40, %v1929_v44  ;;  %1967 = vmatmul.bf16.gmra.mxu1 %v6260_v41  ;;  %7848 = vst [vmem:[#allocation32_spill] sm:$0xff] %v6282_v35 }
  0xd6   : > { %2127 = vmatmul.bf16.gmra.mxu3 %v6262_v42  ;;  %5111 = vst [vmem:[%s6269_s19] sm:$0xff] %v4727_v45  ;;  %v1759_v46 = vpop.f32.mrf.mxu2 }
  0xd8   : > { %v1601_v49 = vpop.f32.mrf.mxu0 }
  0xd9   : > { %v2088_v47 = vpop.f32.mrf.mxu3  ;;  %v1930_v50 = vpop.f32.mrf.mxu1 }
  0xda   : > { %v2089_v48 = vadd.f32 %v2088_v47, %v1759_v46  ;;  %v1931_v56 = vadd.f32 %v1930_v50, %v1601_v49 }
  0xdc   : > { %v4919_v51 = vadd.f32 %v6258_v40, %v2089_v48  ;;  %v4730_v59 = vadd.f32 %v6258_v40, %v1931_v56 }
  0xde   : > { %5303 = vst [vmem:[%s6269_s19 + $0x600] sm:$0xff] %v4919_v51  ;;  %v1761_v14 = vpop.f32.mrf.mxu2 }
  0xdf   : > { %5114 = vst [vmem:[%s6269_s19 + $0x18] sm:$0xff] %v4730_v59  ;;  %v1104_v59 = vld [vmem:[#allocation3 + $0x150] sm:$0xff] }
  0xe0   : > { %v1604_v27 = vpop.f32.mrf.mxu0 }
  0xe1   : > { %v2090_v15 = vpop.f32.mrf.mxu3  ;;  %v1933_v43 = vpop.f32.mrf.mxu1 }
  0xe2   : > { %v2091_v26 = vadd.f32 %v2090_v15, %v1761_v14  ;;  %v1934_v45 = vadd.f32 %v1933_v43, %v1604_v27  ;;  %v1233_v14 = vld [vmem:[#allocation3 + $0x558] sm:$0xff]  ;;  %v6296_v27 = vpack.c.bf16 %v1104_v59, %v1102_v58  ;;  %v6298_v43 = vpack.c.bf16 %v1232_v8, %v1230_v63  ;;  %v1474_v58 = vld [vmem:[%s6091_s30 + $0xe0] sm:$0xff]  ;;  %v1519_v59 = vld [vmem:[%s6091_s30 + $0x248] sm:$0xff] }
  0xe3   : > { %1643 = vmatmul.bf16.gmra.mxu0 %v6276_v24  ;;  %1803 = vmatmul.bf16.gmra.mxu2 %v6278_v25  ;;  %v1522_v8 = vld [vmem:[%s6091_s30 + $0x260] sm:$0xff] }
  0xe4   : > { %v4922_v44 = vadd.f32 %v6258_v40, %v2091_v26  ;;  %v4733_v46 = vadd.f32 %v6258_v40, %v1934_v45  ;;  %1972 = vmatmul.bf16.gmra.mxu1 %v6280_v32  ;;  %7849 = vst [vmem:[#allocation33_spill] sm:$0xff] %v6298_v43 }
  0xe6   : > { %5306 = vst [vmem:[%s6269_s19 + $0x618] sm:$0xff] %v4922_v44  ;;  %2132 = vmatmul.bf16.gmra.mxu3 %v6282_v35  ;;  %v1764_v47 = vpop.f32.mrf.mxu2 }
  0xe7   : > { %5117 = vst [vmem:[%s6269_s19 + $0x30] sm:$0xff] %v4733_v46  ;;  %v6300_v46 = vpack.c.bf16 %v1105_v12, %v1103_v11 }
  0xe8   : > { %v1606_v50 = vpop.f32.mrf.mxu0 }
  0xe9   : > { %v2093_v48 = vpop.f32.mrf.mxu3  ;;  %v1935_v51 = vpop.f32.mrf.mxu1 }
  0xea   : > { %v2094_v49 = vadd.f32 %v2093_v48, %v1764_v47  ;;  %v1936_v57 = vadd.f32 %v1935_v51, %v1606_v50  ;;  %v6302_v47 = vpack.c.bf16 %v1233_v14, %v1231_v13  ;;  %v1579_v13 = vpack.c.bf16 %v1522_v8, %v1519_v59  ;;  %v1520_v8 = vld [vmem:[%s6091_s30 + $0x250] sm:$0xff] }
  0xec   : > { %v4925_v56 = vadd.f32 %v6258_v40, %v2094_v49  ;;  %v4736_v60 = vadd.f32 %v6258_v40, %v1936_v57  ;;  %7850 = vst [vmem:[#allocation34_spill] sm:$0xff] %v6302_v47  ;;  %v1471_v57 = vld [vmem:[%s6091_s30 + $0xc8] sm:$0xff]  ;;  %2580 = vmatpush.bf16.msrb.mxu3 %v1579_v13 }
  0xed   : > { %v1555_v63 = vpack.c.bf16 %v1474_v58, %v1471_v57  ;;  %v1235_v57 = vld [vmem:[#allocation3 + $0x568] sm:$0xff]  ;;  %v1237_v58 = vld [vmem:[#allocation3 + $0x578] sm:$0xff] }
  0xee   : > { %5309 = vst [vmem:[%s6269_s19 + $0x630] sm:$0xff] %v4925_v56  ;;  %v1766_v15 = vpop.f32.mrf.mxu2  ;;  %v6330_v35 = vpack.c.bf16 %v1237_v58, %v1235_v57  ;;  %v1110_v57 = vld [vmem:[#allocation3 + $0x180] sm:$0xff]  ;;  %v1112_v58 = vld [vmem:[#allocation3 + $0x190] sm:$0xff] }
  0xef   : > { %5120 = vst [vmem:[%s6269_s19 + $0x48] sm:$0xff] %v4736_v60  ;;  %2251 = vmatpush.bf16.msrb.mxu2 %v1555_v63  ;;  %v1475_v63 = vld [vmem:[%s6091_s30 + $0xe8] sm:$0xff] }
  0xf0   : > { %v1609_v45 = vpop.f32.mrf.mxu0  ;;  %7852 = vst [vmem:[#allocation36_spill] sm:$0xff] %v6330_v35 }
  0xf1   : > { %v2095_v26 = vpop.f32.mrf.mxu3  ;;  %v1938_v48 = vpop.f32.mrf.mxu1 }
  0xf2   : > { %v2096_v44 = vadd.f32 %v2095_v26, %v1766_v15  ;;  %v1939_v50 = vadd.f32 %v1938_v48, %v1609_v45  ;;  %v1108_v45 = vld [vmem:[#allocation3 + $0x170] sm:$0xff] }
  0xf3   : > { %1648 = vmatmul.bf16.gmra.mxu0 %v6296_v27  ;;  %1808 = vmatmul.bf16.gmra.mxu2 %v6298_v43 }
  0xf4   : > { %v4928_v49 = vadd.f32 %v6258_v40, %v2096_v44  ;;  %v4739_v51 = vadd.f32 %v6258_v40, %v1939_v50  ;;  %1977 = vmatmul.bf16.gmra.mxu1 %v6300_v46  ;;  %v1106_v44 = vld [vmem:[#allocation3 + $0x160] sm:$0xff]  ;;  %v1236_v50 = vld [vmem:[#allocation3 + $0x570] sm:$0xff] }
  0xf6   : > { %5312 = vst [vmem:[%s6269_s19 + $0x648] sm:$0xff] %v4928_v49  ;;  %2137 = vmatmul.bf16.gmra.mxu3 %v6302_v47  ;;  %v1769_v56 = vpop.f32.mrf.mxu2  ;;  %v1234_v49 = vld [vmem:[#allocation3 + $0x560] sm:$0xff] }
  0xf7   : > { %5123 = vst [vmem:[%s6269_s19 + $0x60] sm:$0xff] %v4739_v51  ;;  %v1107_v51 = vld [vmem:[#allocation3 + $0x168] sm:$0xff]  ;;  %v6325_v13 = vpack.c.bf16 %v1236_v50, %v1234_v49 }
  0xf8   : > { %v1611_v12 = vpop.f32.mrf.mxu0 }
  0xf9   : > { %v2098_v60 = vpop.f32.mrf.mxu3  ;;  %v1940_v14 = vpop.f32.mrf.mxu1  ;;  %7851 = vst [vmem:[#allocation35_spill] sm:$0xff] %v6325_v13 }
  0xfa   : > { %v2099_v11 = vadd.f32 %v2098_v60, %v1769_v56  ;;  %v1941_v26 = vadd.f32 %v1940_v14, %v1611_v12  ;;  %v1109_v56 = vld [vmem:[#allocation3 + $0x178] sm:$0xff]  ;;  %v1472_v60 = vld [vmem:[%s6091_s30 + $0xd0] sm:$0xff]  ;;  %v6323_v12 = vpack.c.bf16 %v1108_v45, %v1106_v44 }
  0xfb   : > { %v1556_v14 = vpack.c.bf16 %v1475_v63, %v1472_v60  ;;  %v6328_v43 = vpack.c.bf16 %v1109_v56, %v1107_v51  ;;  %v1111_v60 = vld [vmem:[#allocation3 + $0x188] sm:$0xff]  ;;  %v1113_v63 = vld [vmem:[#allocation3 + $0x198] sm:$0xff] }
  0xfc   : > { %v4931_v15 = vadd.f32 %v6258_v40, %v2099_v11  ;;  %v4742_v48 = vadd.f32 %v6258_v40, %v1941_v26 }
  0xfd   : > { %2909 = vmatpush.bf16.msrb.mxu0 %v1556_v14 }
  0xfe   : > { %5315 = vst [vmem:[%s6269_s19 + $0x660] sm:$0xff] %v4931_v15  ;;  %v1771_v59 = vpop.f32.mrf.mxu2  ;;  %v1523_v15 = vld [vmem:[%s6091_s30 + $0x268] sm:$0xff] }
  0xff   : > { %5126 = vst [vmem:[%s6269_s19 + $0x78] sm:$0xff] %v4742_v48  ;;  %v1580_v48 = vpack.c.bf16 %v1523_v15, %v1520_v8  ;;  %v1239_v8 = vld [vmem:[#allocation3 + $0x588] sm:$0xff] }
 0x100   : > { %v1614_v47 = vpop.f32.mrf.mxu0 }
 0x101   : > { %v2100_v11 = vpop.f32.mrf.mxu3  ;;  %v1943_v25 = vpop.f32.mrf.mxu1  ;;  %3238 = vmatpush.bf16.msrb.mxu1 %v1580_v48 }
 0x102   : > { %v2101_v26 = vadd.f32 %v2100_v11, %v1771_v59  ;;  %v1944_v34 = vadd.f32 %v1943_v25, %v1614_v47  ;;  %v1240_v59 = vld [vmem:[#allocation3 + $0x590] sm:$0xff]  ;;  %v1241_v11 = vld [vmem:[#allocation3 + $0x598] sm:$0xff] }
 0x103   : > { %1653 = vmatmul.bf16.gmra.mxu0 %v6323_v12  ;;  %1813 = vmatmul.bf16.gmra.mxu2 %v6325_v13 }
 0x104   : > { %v4934_v42 = vadd.f32 %v6258_v40, %v2101_v26  ;;  %v4745_v44 = vadd.f32 %v6258_v40, %v1944_v34  ;;  %1982 = vmatmul.bf16.gmra.mxu1 %v6328_v43  ;;  %v1238_v34 = vld [vmem:[#allocation3 + $0x580] sm:$0xff]  ;;  %v6344_v26 = vpack.c.bf16 %v1112_v58, %v1110_v57 }
 0x105   : > { %v6346_v48 = vpack.c.bf16 %v1240_v59, %v1238_v34 }
 0x106   : > { %5318 = vst [vmem:[%s6269_s19 + $0x678] sm:$0xff] %v4934_v42  ;;  %2142 = vmatmul.bf16.gmra.mxu3 %v6330_v35  ;;  %v1774_v45 = vpop.f32.mrf.mxu2 }
 0x107   : > { %5129 = vst [vmem:[%s6269_s19 + $0x90] sm:$0xff] %v4745_v44 }
 0x108   : > { %v1616_v51 = vpop.f32.mrf.mxu0  ;;  %7853 = vst [vmem:[#allocation37_spill] sm:$0xff] %v6346_v48 }
 0x109   : > { %v2103_v49 = vpop.f32.mrf.mxu3  ;;  %v1945_v25 = vpop.f32.mrf.mxu1 }
 0x10a   : > { %v2104_v50 = vadd.f32 %v2103_v49, %v1774_v45  ;;  %v1946_v56 = vadd.f32 %v1945_v25, %v1616_v51  ;;  %v6348_v49 = vpack.c.bf16 %v1113_v63, %v1111_v60 }
 0x10c   : > { %v4937_v47 = vadd.f32 %v6258_v40, %v2104_v50  ;;  %v4748_v42 = vadd.f32 %v6258_v40, %v1946_v56  ;;  %v6350_v50 = vpack.c.bf16 %v1241_v11, %v1239_v8  ;;  %v1114_v8 = vld [vmem:[#allocation3 + $0x1a0] sm:$0xff]  ;;  %v1116_v11 = vld [vmem:[#allocation3 + $0x1b0] sm:$0xff] }
 0x10e   : > { %5321 = vst [vmem:[%s6269_s19 + $0x690] sm:$0xff] %v4937_v47  ;;  %v1776_v14 = vpop.f32.mrf.mxu2 }
 0x10f   : > { %5132 = vst [vmem:[%s6269_s19 + $0xa8] sm:$0xff] %v4748_v42 }
 0x110   : > { %v1619_v45 = vpop.f32.mrf.mxu0  ;;  %7854 = vst [vmem:[#allocation38_spill] sm:$0xff] %v6350_v50 }
 0x111   : > { %v2105_v15 = vpop.f32.mrf.mxu3  ;;  %v1948_v51 = vpop.f32.mrf.mxu1 }
 0x112   : > { %v2106_v44 = vadd.f32 %v2105_v15, %v1776_v14  ;;  %v1949_v47 = vadd.f32 %v1948_v51, %v1619_v45  ;;  %v1242_v15 = vld [vmem:[#allocation3 + $0x5a0] sm:$0xff]  ;;  %v1115_v45 = vld [vmem:[#allocation3 + $0x1a8] sm:$0xff]  ;;  %v1117_v51 = vld [vmem:[#allocation3 + $0x1b8] sm:$0xff] }
 0x113   : > { %1658 = vmatmul.bf16.gmra.mxu0 %v6344_v26  ;;  %1818 = vmatmul.bf16.gmra.mxu2 %v6346_v48 }
 0x114   : > { %v4940_v25 = vadd.f32 %v6258_v40, %v2106_v44  ;;  %v4751_v56 = vadd.f32 %v6258_v40, %v1949_v47  ;;  %1987 = vmatmul.bf16.gmra.mxu1 %v6348_v49  ;;  %v1244_v44 = vld [vmem:[#allocation3 + $0x5b0] sm:$0xff]  ;;  %v1245_v47 = vld [vmem:[#allocation3 + $0x5b8] sm:$0xff] }
 0x116   : > { %5324 = vst [vmem:[%s6269_s19 + $0x6a8] sm:$0xff] %v4940_v25  ;;  %2147 = vmatmul.bf16.gmra.mxu3 %v6350_v50  ;;  %v1779_v57 = vpop.f32.mrf.mxu2  ;;  %v1243_v25 = vld [vmem:[#allocation3 + $0x5a8] sm:$0xff] }
 0x117   : > { %5135 = vst [vmem:[%s6269_s19 + $0xc0] sm:$0xff] %v4751_v56 }
 0x118   : > { %v1621_v34 = vpop.f32.mrf.mxu0 }
 0x119   : > { %v2108_v58 = vpop.f32.mrf.mxu3  ;;  %v1950_v59 = vpop.f32.mrf.mxu1 }
 0x11a   : > { %v2109_v42 = vadd.f32 %v2108_v58, %v1779_v57  ;;  %v1951_v63 = vadd.f32 %v1950_v59, %v1621_v34  ;;  %v6364_v58 = vpack.c.bf16 %v1116_v11, %v1114_v8 }
 0x11c   : > { %v4943_v60 = vadd.f32 %v6258_v40, %v2109_v42  ;;  %v4754_v14 = vadd.f32 %v6258_v40, %v1951_v63  ;;  %v6366_v42 = vpack.c.bf16 %v1244_v44, %v1242_v15  ;;  %v6370_v63 = vpack.c.bf16 %v1245_v47, %v1243_v25  ;;  %v1118_v25 = vld [vmem:[#allocation3 + $0x1c0] sm:$0xff]  ;;  %v1120_v47 = vld [vmem:[#allocation3 + $0x1d0] sm:$0xff] }
 0x11e   : > { %5327 = vst [vmem:[%s6269_s19 + $0x6c0] sm:$0xff] %v4943_v60  ;;  %v1781_v56 = vpop.f32.mrf.mxu2  ;;  %v6368_v60 = vpack.c.bf16 %v1117_v51, %v1115_v45 }
 0x11f   : > { %5138 = vst [vmem:[%s6269_s19 + $0xd8] sm:$0xff] %v4754_v14 }
 0x120   : > { %7855 = vst [vmem:[#allocation39_spill] sm:$0xff] %v6366_v42  ;;  %v1624_v59 = vpop.f32.mrf.mxu0 }
 0x121   : > { %v2110_v57 = vpop.f32.mrf.mxu3  ;;  %7856 = vst [vmem:[#allocation40_spill] sm:$0xff] %v6370_v63  ;;  %v1953_v50 = vpop.f32.mrf.mxu1 }
 0x122   : > { %v2111_v34 = vadd.f32 %v2110_v57, %v1781_v56  ;;  %v1954_v35 = vadd.f32 %v1953_v50, %v1624_v59  ;;  %v1248_v56 = vld [vmem:[#allocation3 + $0x5d0] sm:$0xff]  ;;  %v1119_v57 = vld [vmem:[#allocation3 + $0x1c8] sm:$0xff] }
 0x123   : > { %1663 = vmatmul.bf16.gmra.mxu0 %v6364_v58  ;;  %1823 = vmatmul.bf16.gmra.mxu2 %v6366_v42  ;;  %v1247_v59 = vld [vmem:[#allocation3 + $0x5c8] sm:$0xff] }
 0x124   : > { %v4946_v48 = vadd.f32 %v6258_v40, %v2111_v34  ;;  %v4757_v8 = vadd.f32 %v6258_v40, %v1954_v35  ;;  %1992 = vmatmul.bf16.gmra.mxu1 %v6368_v60  ;;  %v1246_v35 = vld [vmem:[#allocation3 + $0x5c0] sm:$0xff]  ;;  %v1121_v34 = vld [vmem:[#allocation3 + $0x1d8] sm:$0xff] }
 0x126   : > { %5330 = vst [vmem:[%s6269_s19 + $0x6d8] sm:$0xff] %v4946_v48  ;;  %2152 = vmatmul.bf16.gmra.mxu3 %v6370_v63  ;;  %v1784_v11 = vpop.f32.mrf.mxu2 }
 0x127   : > { %5141 = vst [vmem:[%s6269_s19 + $0xf0] sm:$0xff] %v4757_v8  ;;  %v1249_v8 = vld [vmem:[#allocation3 + $0x5d8] sm:$0xff] }
 0x128   : > { %v1626_v44 = vpop.f32.mrf.mxu0 }
 0x129   : > { %v2113_v14 = vpop.f32.mrf.mxu3  ;;  %v1955_v45 = vpop.f32.mrf.mxu1 }
 0x12a   : > { %v2114_v15 = vadd.f32 %v2113_v14, %v1784_v11  ;;  %v1956_v51 = vadd.f32 %v1955_v45, %v1626_v44  ;;  %v6384_v14 = vpack.c.bf16 %v1120_v47, %v1118_v25  ;;  %v1465_v47 = vld [vmem:[%s6091_s30 + $0x98] sm:$0xff] }
 0x12c   : > { %v4949_v50 = vadd.f32 %v6258_v40, %v2114_v15  ;;  %v4760_v48 = vadd.f32 %v6258_v40, %v1956_v51  ;;  %v6386_v15 = vpack.c.bf16 %v1248_v56, %v1246_v35  ;;  %v6390_v51 = vpack.c.bf16 %v1249_v8, %v1247_v59  ;;  %v1468_v35 = vld [vmem:[%s6091_s30 + $0xb0] sm:$0xff]  ;;  %v1513_v56 = vld [vmem:[%s6091_s30 + $0x218] sm:$0xff] }
 0x12e   : > { %5333 = vst [vmem:[%s6269_s19 + $0x6f0] sm:$0xff] %v4949_v50  ;;  %v1786_v63 = vpop.f32.mrf.mxu2  ;;  %v6388_v50 = vpack.c.bf16 %v1121_v34, %v1119_v57  ;;  %v1552_v34 = vpack.c.bf16 %v1468_v35, %v1465_v47  ;;  %v1250_v47 = vld [vmem:[#allocation3 + $0x5e0] sm:$0xff]  ;;  %v1123_v35 = vld [vmem:[#allocation3 + $0x1e8] sm:$0xff] }
 0x12f   : > { %5144 = vst [vmem:[%s6269_s19 + $0x108] sm:$0xff] %v4760_v48 }
 0x130   : > { %7857 = vst [vmem:[#allocation41_spill] sm:$0xff] %v6386_v15  ;;  %v1629_v45 = vpop.f32.mrf.mxu0  ;;  %2252 = vmatpush.bf16.msrb.mxu2 %v1552_v34 }
 0x131   : > { %v2115_v11 = vpop.f32.mrf.mxu3  ;;  %7858 = vst [vmem:[#allocation42_spill] sm:$0xff] %v6390_v51  ;;  %v1958_v42 = vpop.f32.mrf.mxu1 }
 0x132   : > { %v2116_v44 = vadd.f32 %v2115_v11, %v1786_v63  ;;  %v1959_v13 = vadd.f32 %v1958_v42, %v1629_v45  ;;  %v1516_v42 = vld [vmem:[%s6091_s30 + $0x230] sm:$0xff] }
 0x133   : > { %1668 = vmatmul.bf16.gmra.mxu0 %v6384_v14  ;;  %1828 = vmatmul.bf16.gmra.mxu2 %v6386_v15  ;;  %v1576_v11 = vpack.c.bf16 %v1516_v42, %v1513_v56  ;;  %v1125_v56 = vld [vmem:[#allocation3 + $0x1f8] sm:$0xff]  ;;  %v1466_v15 = vld [vmem:[%s6091_s30 + $0xa0] sm:$0xff] }
 0x134   : > { %v4952_v48 = vadd.f32 %v6258_v40, %v2116_v44  ;;  %v4763_v25 = vadd.f32 %v6258_v40, %v1959_v13  ;;  %1997 = vmatmul.bf16.gmra.mxu1 %v6388_v50  ;;  %v1253_v42 = vld [vmem:[#allocation3 + $0x5f8] sm:$0xff]  ;;  %v6416_v37 = vpack.c.bf16 %v1125_v56, %v1123_v35  ;;  %v1128_v35 = vld [vmem:[#allocation3 + $0x210] sm:$0xff] }
 0x135   : > { %2581 = vmatpush.bf16.msrb.mxu3 %v1576_v11  ;;  %v1256_v56 = vld [vmem:[#allocation3 + $0x610] sm:$0xff] }
 0x136   : > { %5336 = vst [vmem:[%s6269_s19 + $0x708] sm:$0xff] %v4952_v48  ;;  %2157 = vmatmul.bf16.gmra.mxu3 %v6390_v51  ;;  %v1789_v63 = vpop.f32.mrf.mxu2  ;;  %v1122_v48 = vld [vmem:[#allocation3 + $0x1e0] sm:$0xff] }
 0x137   : > { %5147 = vst [vmem:[%s6269_s19 + $0x120] sm:$0xff] %v4763_v25  ;;  %v1124_v25 = vld [vmem:[#allocation3 + $0x1f0] sm:$0xff] }
 0x138   : > { %v1631_v8 = vpop.f32.mrf.mxu0 }
 0x139   : > { %v2118_v57 = vpop.f32.mrf.mxu3  ;;  %v1960_v44 = vpop.f32.mrf.mxu1 }
 0x13a   : > { %v2119_v59 = vadd.f32 %v2118_v57, %v1789_v63  ;;  %v1961_v45 = vadd.f32 %v1960_v44, %v1631_v8  ;;  %v1252_v63 = vld [vmem:[#allocation3 + $0x5f0] sm:$0xff]  ;;  %v1251_v57 = vld [vmem:[#allocation3 + $0x5e8] sm:$0xff]  ;;  %v6411_v44 = vpack.c.bf16 %v1124_v25, %v1122_v48 }
 0x13b   : > { %v6413_v11 = vpack.c.bf16 %v1252_v63, %v1250_v47  ;;  %v6418_v23 = vpack.c.bf16 %v1253_v42, %v1251_v57  ;;  %v1126_v63 = vld [vmem:[#allocation3 + $0x200] sm:$0xff]  ;;  %v1127_v57 = vld [vmem:[#allocation3 + $0x208] sm:$0xff]  ;;  %v1129_v42 = vld [vmem:[#allocation3 + $0x218] sm:$0xff] }
 0x13c   : > { %v4955_v13 = vadd.f32 %v6258_v40, %v2119_v59  ;;  %v4766_v51 = vadd.f32 %v6258_v40, %v1961_v45  ;;  %v1469_v59 = vld [vmem:[%s6091_s30 + $0xb8] sm:$0xff] }
 0x13d   : > { %7859 = vst [vmem:[#allocation43_spill] sm:$0xff] %v6413_v11  ;;  %v1517_v45 = vld [vmem:[%s6091_s30 + $0x238] sm:$0xff] }
 0x13e   : > { %5339 = vst [vmem:[%s6269_s19 + $0x720] sm:$0xff] %v4955_v13  ;;  %v1791_v34 = vpop.f32.mrf.mxu2  ;;  %v1553_v13 = vpack.c.bf16 %v1469_v59, %v1466_v15  ;;  %v1257_v59 = vld [vmem:[#allocation3 + $0x618] sm:$0xff] }
 0x13f   : > { %5150 = vst [vmem:[%s6269_s19 + $0x138] sm:$0xff] %v4766_v51  ;;  %v1577_v51 = vpack.c.bf16 %v1517_v45, %v1514_v10  ;;  %v6432_v45 = vpack.c.bf16 %v1128_v35, %v1126_v63 }
 0x140   : > { %v1634_v39 = vpop.f32.mrf.mxu0  ;;  %7860 = vst [vmem:[#allocation44_spill] sm:$0xff] %v6418_v23  ;;  %2910 = vmatpush.bf16.msrb.mxu0 %v1553_v13 }
 0x141   : > { %v2120_v8 = vpop.f32.mrf.mxu3  ;;  %v1963_v21 = vpop.f32.mrf.mxu1  ;;  %3239 = vmatpush.bf16.msrb.mxu1 %v1577_v51 }
 0x142   : > { %v2121_v62 = vadd.f32 %v2120_v8, %v1791_v34  ;;  %v1964_v1 = vadd.f32 %v1963_v21, %v1634_v39  ;;  %v1255_v34 = vld [vmem:[#allocation3 + $0x608] sm:$0xff] }
 0x143   : > { %1673 = vmatmul.bf16.gmra.mxu0 %v6411_v44  ;;  %1833 = vmatmul.bf16.gmra.mxu2 %v6413_v11 }
 0x144   : > { %v4958_v7 = vadd.f32 %v6258_v40, %v2121_v62  ;;  %v4769_v15 = vadd.f32 %v6258_v40, %v1964_v1  ;;  %2002 = vmatmul.bf16.gmra.mxu1 %v6416_v37  ;;  %v1254_v1 = vld [vmem:[#allocation3 + $0x600] sm:$0xff] }
 0x145   : > { %v6434_v51 = vpack.c.bf16 %v1256_v56, %v1254_v1 }
 0x146   : > { %5342 = vst [vmem:[%s6269_s19 + $0x738] sm:$0xff] %v4958_v7  ;;  %2162 = vmatmul.bf16.gmra.mxu3 %v6418_v23  ;;  %v1794_v10 = vpop.f32.mrf.mxu2 }
 0x147   : > { %5153 = vst [vmem:[%s6269_s19 + $0x150] sm:$0xff] %v4769_v15 }
 0x148   : > { %v1636_v62 = vpop.f32.mrf.mxu0  ;;  %7861 = vst [vmem:[#allocation45_spill] sm:$0xff] %v6434_v51 }
 0x149   : > { %v2123_v48 = vpop.f32.mrf.mxu3  ;;  %v1965_v21 = vpop.f32.mrf.mxu1 }
 0x14a   : > { %v2124_v25 = vadd.f32 %v2123_v48, %v1794_v10  ;;  %v1966_v47 = vadd.f32 %v1965_v21, %v1636_v62  ;;  %v6436_v48 = vpack.c.bf16 %v1129_v42, %v1127_v57 }
 0x14c   : > { %v4961_v39 = vadd.f32 %v6258_v40, %v2124_v25  ;;  %v4772_v7 = vadd.f32 %v6258_v40, %v1966_v47  ;;  %v6438_v25 = vpack.c.bf16 %v1257_v59, %v1255_v34  ;;  %v1130_v34 = vld [vmem:[#allocation3 + $0x220] sm:$0xff]  ;;  %v1132_v59 = vld [vmem:[#allocation3 + $0x230] sm:$0xff] }
 0x14e   : > { %5345 = vst [vmem:[%s6269_s19 + $0x750] sm:$0xff] %v4961_v39  ;;  %v1796_v8 = vpop.f32.mrf.mxu2 }
 0x14f   : > { %5156 = vst [vmem:[%s6269_s19 + $0x168] sm:$0xff] %v4772_v7 }
 0x150   : > { %v1639_v10 = vpop.f32.mrf.mxu0  ;;  %7862 = vst [vmem:[#allocation46_spill] sm:$0xff] %v6438_v25 }
 0x151   : > { %v2125_v13 = vpop.f32.mrf.mxu3  ;;  %v1968_v62 = vpop.f32.mrf.mxu1 }
 0x152   : > { %v2126_v15 = vadd.f32 %v2125_v13, %v1796_v8  ;;  %v1969_v39 = vadd.f32 %v1968_v62, %v1639_v10  ;;  %v1258_v13 = vld [vmem:[#allocation3 + $0x620] sm:$0xff]  ;;  %v1131_v10 = vld [vmem:[#allocation3 + $0x228] sm:$0xff]  ;;  %v1133_v62 = vld [vmem:[#allocation3 + $0x238] sm:$0xff] }
 0x153   : > { %1678 = vmatmul.bf16.gmra.mxu0 %v6432_v45  ;;  %1838 = vmatmul.bf16.gmra.mxu2 %v6434_v51 }
 0x154   : > { %v4964_v21 = vadd.f32 %v6258_v40, %v2126_v15  ;;  %v4775_v47 = vadd.f32 %v6258_v40, %v1969_v39  ;;  %2007 = vmatmul.bf16.gmra.mxu1 %v6436_v48  ;;  %v1260_v15 = vld [vmem:[#allocation3 + $0x630] sm:$0xff]  ;;  %v1261_v39 = vld [vmem:[#allocation3 + $0x638] sm:$0xff] }
 0x156   : > { %5348 = vst [vmem:[%s6269_s19 + $0x768] sm:$0xff] %v4964_v21  ;;  %2167 = vmatmul.bf16.gmra.mxu3 %v6438_v25  ;;  %v1799_v63 = vpop.f32.mrf.mxu2  ;;  %v1259_v21 = vld [vmem:[#allocation3 + $0x628] sm:$0xff] }
 0x157   : > { %5159 = vst [vmem:[%s6269_s19 + $0x180] sm:$0xff] %v4775_v47 }
 0x158   : > { %v1641_v1 = vpop.f32.mrf.mxu0 }
 0x159   : > { %v2128_v35 = vpop.f32.mrf.mxu3  ;;  %v1970_v56 = vpop.f32.mrf.mxu1 }
 0x15a   : > { %v2129_v7 = vadd.f32 %v2128_v35, %v1799_v63  ;;  %v1971_v42 = vadd.f32 %v1970_v56, %v1641_v1  ;;  %v6452_v35 = vpack.c.bf16 %v1132_v59, %v1130_v34 }
 0x15c   : > { %v4967_v57 = vadd.f32 %v6258_v40, %v2129_v7  ;;  %v4778_v8 = vadd.f32 %v6258_v40, %v1971_v42  ;;  %v6454_v7 = vpack.c.bf16 %v1260_v15, %v1258_v13  ;;  %v6458_v42 = vpack.c.bf16 %v1261_v39, %v1259_v21  ;;  %v1134_v21 = vld [vmem:[#allocation3 + $0x240] sm:$0xff]  ;;  %v1136_v39 = vld [vmem:[#allocation3 + $0x250] sm:$0xff] }
 0x15e   : > { %5351 = vst [vmem:[%s6269_s19 + $0x780] sm:$0xff] %v4967_v57  ;;  %v1801_v47 = vpop.f32.mrf.mxu2  ;;  %v6456_v57 = vpack.c.bf16 %v1133_v62, %v1131_v10 }
 0x15f   : > { %5162 = vst [vmem:[%s6269_s19 + $0x198] sm:$0xff] %v4778_v8 }
 0x160   : > { %7863 = vst [vmem:[#allocation47_spill] sm:$0xff] %v6454_v7  ;;  %v1644_v56 = vpop.f32.mrf.mxu0 }
 0x161   : > { %v2130_v63 = vpop.f32.mrf.mxu3  ;;  %7864 = vst [vmem:[#allocation48_spill] sm:$0xff] %v6458_v42  ;;  %v1973_v25 = vpop.f32.mrf.mxu1 }
 0x162   : > { %v2131_v1 = vadd.f32 %v2130_v63, %v1801_v47  ;;  %v1974_v23 = vadd.f32 %v1973_v25, %v1644_v56  ;;  %v1264_v47 = vld [vmem:[#allocation3 + $0x650] sm:$0xff]  ;;  %v1135_v63 = vld [vmem:[#allocation3 + $0x248] sm:$0xff] }
 0x163   : > { %1683 = vmatmul.bf16.gmra.mxu0 %v6452_v35  ;;  %1843 = vmatmul.bf16.gmra.mxu2 %v6454_v7  ;;  %v1263_v56 = vld [vmem:[#allocation3 + $0x648] sm:$0xff] }
 0x164   : > { %v4970_v51 = vadd.f32 %v6258_v40, %v2131_v1  ;;  %v4781_v34 = vadd.f32 %v6258_v40, %v1974_v23  ;;  %2012 = vmatmul.bf16.gmra.mxu1 %v6456_v57  ;;  %v1262_v23 = vld [vmem:[#allocation3 + $0x640] sm:$0xff]  ;;  %v1137_v1 = vld [vmem:[#allocation3 + $0x258] sm:$0xff] }
 0x166   : > { %5354 = vst [vmem:[%s6269_s19 + $0x798] sm:$0xff] %v4970_v51  ;;  %2172 = vmatmul.bf16.gmra.mxu3 %v6458_v42  ;;  %v1804_v59 = vpop.f32.mrf.mxu2 }
 0x167   : > { %5165 = vst [vmem:[%s6269_s19 + $0x1b0] sm:$0xff] %v4781_v34  ;;  %v1265_v34 = vld [vmem:[#allocation3 + $0x658] sm:$0xff] }
 0x168   : > { %v1646_v15 = vpop.f32.mrf.mxu0 }
 0x169   : > { %v2133_v8 = vpop.f32.mrf.mxu3  ;;  %v1975_v10 = vpop.f32.mrf.mxu1 }
 0x16a   : > { %v2134_v13 = vadd.f32 %v2133_v8, %v1804_v59  ;;  %v1976_v62 = vadd.f32 %v1975_v10, %v1646_v15  ;;  %v6472_v8 = vpack.c.bf16 %v1136_v39, %v1134_v21  ;;  %v1459_v39 = vld [vmem:[%s6091_s30 + $0x68] sm:$0xff] }
 0x16c   : > { %v4973_v25 = vadd.f32 %v6258_v40, %v2134_v13  ;;  %v4784_v51 = vadd.f32 %v6258_v40, %v1976_v62  ;;  %v6474_v13 = vpack.c.bf16 %v1264_v47, %v1262_v23  ;;  %v6478_v62 = vpack.c.bf16 %v1265_v34, %v1263_v56  ;;  %v1462_v23 = vld [vmem:[%s6091_s30 + $0x80] sm:$0xff]  ;;  %v1507_v47 = vld [vmem:[%s6091_s30 + $0x1e8] sm:$0xff] }
 0x16e   : > { %5357 = vst [vmem:[%s6269_s19 + $0x7b0] sm:$0xff] %v4973_v25  ;;  %v1806_v42 = vpop.f32.mrf.mxu2  ;;  %v6476_v25 = vpack.c.bf16 %v1137_v1, %v1135_v63  ;;  %v1549_v1 = vpack.c.bf16 %v1462_v23, %v1459_v39  ;;  %v1266_v39 = vld [vmem:[#allocation3 + $0x660] sm:$0xff]  ;;  %v1139_v23 = vld [vmem:[#allocation3 + $0x268] sm:$0xff] }
 0x16f   : > { %5168 = vst [vmem:[%s6269_s19 + $0x1c8] sm:$0xff] %v4784_v51 }
 0x170   : > { %7865 = vst [vmem:[#allocation49_spill] sm:$0xff] %v6474_v13  ;;  %v1649_v10 = vpop.f32.mrf.mxu0  ;;  %2253 = vmatpush.bf16.msrb.mxu2 %v1549_v1 }
 0x171   : > { %v2135_v59 = vpop.f32.mrf.mxu3  ;;  %7866 = vst [vmem:[#allocation50_spill] sm:$0xff] %v6478_v62  ;;  %v1978_v7 = vpop.f32.mrf.mxu1 }
 0x172   : > { %v2136_v15 = vadd.f32 %v2135_v59, %v1806_v42  ;;  %v1979_v11 = vadd.f32 %v1978_v7, %v1649_v10  ;;  %v1510_v7 = vld [vmem:[%s6091_s30 + $0x200] sm:$0xff] }
 0x173   : > { %1688 = vmatmul.bf16.gmra.mxu0 %v6472_v8  ;;  %1848 = vmatmul.bf16.gmra.mxu2 %v6474_v13  ;;  %v1573_v59 = vpack.c.bf16 %v1510_v7, %v1507_v47  ;;  %v1141_v47 = vld [vmem:[#allocation3 + $0x278] sm:$0xff]  ;;  %v1460_v13 = vld [vmem:[%s6091_s30 + $0x70] sm:$0xff] }
 0x174   : > { %v4976_v51 = vadd.f32 %v6258_v40, %v2136_v15  ;;  %v4787_v21 = vadd.f32 %v6258_v40, %v1979_v11  ;;  %2017 = vmatmul.bf16.gmra.mxu1 %v6476_v25  ;;  %v1269_v7 = vld [vmem:[#allocation3 + $0x678] sm:$0xff]  ;;  %v6504_v29 = vpack.c.bf16 %v1141_v47, %v1139_v23  ;;  %v1144_v23 = vld [vmem:[#allocation3 + $0x290] sm:$0xff] }
 0x175   : > { %2582 = vmatpush.bf16.msrb.mxu3 %v1573_v59  ;;  %v1272_v47 = vld [vmem:[#allocation3 + $0x690] sm:$0xff] }
 0x176   : > { %5360 = vst [vmem:[%s6269_s19 + $0x7c8] sm:$0xff] %v4976_v51  ;;  %2177 = vmatmul.bf16.gmra.mxu3 %v6478_v62  ;;  %v1809_v42 = vpop.f32.mrf.mxu2  ;;  %v1138_v51 = vld [vmem:[#allocation3 + $0x260] sm:$0xff] }
 0x177   : > { %5171 = vst [vmem:[%s6269_s19 + $0x1e0] sm:$0xff] %v4787_v21  ;;  %v1140_v21 = vld [vmem:[#allocation3 + $0x270] sm:$0xff] }
 0x178   : > { %v1651_v34 = vpop.f32.mrf.mxu0  ;;  %7869 = vst [vmem:[#allocation53_spill] sm:$0xff] %v6504_v29 }
 0x179   : > { %v2138_v63 = vpop.f32.mrf.mxu3  ;;  %v1980_v15 = vpop.f32.mrf.mxu1 }
 0x17a   : > { %v2139_v56 = vadd.f32 %v2138_v63, %v1809_v42  ;;  %v1981_v10 = vadd.f32 %v1980_v15, %v1651_v34  ;;  %v1268_v42 = vld [vmem:[#allocation3 + $0x670] sm:$0xff]  ;;  %v1267_v63 = vld [vmem:[#allocation3 + $0x668] sm:$0xff]  ;;  %v6499_v15 = vpack.c.bf16 %v1140_v21, %v1138_v51 }
 0x17b   : > { %v6501_v59 = vpack.c.bf16 %v1268_v42, %v1266_v39  ;;  %v6506_v19 = vpack.c.bf16 %v1269_v7, %v1267_v63  ;;  %v1142_v42 = vld [vmem:[#allocation3 + $0x280] sm:$0xff]  ;;  %v1143_v63 = vld [vmem:[#allocation3 + $0x288] sm:$0xff]  ;;  %v1145_v7 = vld [vmem:[#allocation3 + $0x298] sm:$0xff] }
 0x17c   : > { %v4979_v11 = vadd.f32 %v6258_v40, %v2139_v56  ;;  %v4790_v62 = vadd.f32 %v6258_v40, %v1981_v10  ;;  %v1463_v56 = vld [vmem:[%s6091_s30 + $0x88] sm:$0xff]  ;;  %7867 = vst [vmem:[#allocation51_spill] sm:$0xff] %v6499_v15 }
 0x17d   : > { %7868 = vst [vmem:[#allocation52_spill] sm:$0xff] %v6501_v59  ;;  %v1511_v10 = vld [vmem:[%s6091_s30 + $0x208] sm:$0xff] }
 0x17e   : > { %5363 = vst [vmem:[%s6269_s19 + $0x7e0] sm:$0xff] %v4979_v11  ;;  %v1811_v1 = vpop.f32.mrf.mxu2  ;;  %v1550_v11 = vpack.c.bf16 %v1463_v56, %v1460_v13  ;;  %v1273_v56 = vld [vmem:[#allocation3 + $0x698] sm:$0xff] }
 0x17f   : > { %5174 = vst [vmem:[%s6269_s19 + $0x1f8] sm:$0xff] %v4790_v62  ;;  %v1574_v62 = vpack.c.bf16 %v1511_v10, %v1508_v55  ;;  %v6520_v10 = vpack.c.bf16 %v1144_v23, %v1142_v42 }
 0x180   : > { %v1654_v31 = vpop.f32.mrf.mxu0  ;;  %7870 = vst [vmem:[#allocation54_spill] sm:$0xff] %v6506_v19  ;;  %2911 = vmatpush.bf16.msrb.mxu0 %v1550_v11 }
 0x181   : > { %v2140_v34 = vpop.f32.mrf.mxu3  ;;  %v1983_v17 = vpop.f32.mrf.mxu1  ;;  %3240 = vmatpush.bf16.msrb.mxu1 %v1574_v62  ;;  %7871 = vst [vmem:[#allocation55_spill] sm:$0xff] %v6520_v10 }
 0x182   : > { %v2141_v53 = vadd.f32 %v2140_v34, %v1811_v1  ;;  %v1984_v3 = vadd.f32 %v1983_v17, %v1654_v31  ;;  %v1271_v1 = vld [vmem:[#allocation3 + $0x688] sm:$0xff] }
 0x183   : > { %1693 = vmatmul.bf16.gmra.mxu0 %v6499_v15  ;;  %1853 = vmatmul.bf16.gmra.mxu2 %v6501_v59 }
 0x184   : > { %v4982_v5 = vadd.f32 %v6258_v40, %v2141_v53  ;;  %v4793_v13 = vadd.f32 %v6258_v40, %v1984_v3  ;;  %2022 = vmatmul.bf16.gmra.mxu1 %v6504_v29  ;;  %v1270_v3 = vld [vmem:[#allocation3 + $0x680] sm:$0xff] }
 0x185   : > { %v6522_v62 = vpack.c.bf16 %v1272_v47, %v1270_v3 }
 0x186   : > { %5366 = vst [vmem:[%s6269_s19 + $0x7f8] sm:$0xff] %v4982_v5  ;;  %2182 = vmatmul.bf16.gmra.mxu3 %v6506_v19  ;;  %v1814_v55 = vpop.f32.mrf.mxu2 }
 0x187   : > { %5177 = vst [vmem:[%s6269_s19 + $0x210] sm:$0xff] %v4793_v13 }
 0x188   : > { %v1656_v53 = vpop.f32.mrf.mxu0  ;;  %7872 = vst [vmem:[#allocation56_spill] sm:$0xff] %v6522_v62 }
 0x189   : > { %v2143_v51 = vpop.f32.mrf.mxu3  ;;  %v1985_v17 = vpop.f32.mrf.mxu1 }
 0x18a   : > { %v2144_v21 = vadd.f32 %v2143_v51, %v1814_v55  ;;  %v1986_v39 = vadd.f32 %v1985_v17, %v1656_v53  ;;  %v6524_v51 = vpack.c.bf16 %v1145_v7, %v1143_v63 }
 0x18c   : > { %v4985_v31 = vadd.f32 %v6258_v40, %v2144_v21  ;;  %v4796_v5 = vadd.f32 %v6258_v40, %v1986_v39  ;;  %7873 = vst [vmem:[#allocation57_spill] sm:$0xff] %v6524_v51  ;;  %v6526_v21 = vpack.c.bf16 %v1273_v56, %v1271_v1  ;;  %v1146_v1 = vld [vmem:[#allocation3 + $0x2a0] sm:$0xff]  ;;  %v1148_v56 = vld [vmem:[#allocation3 + $0x2b0] sm:$0xff] }
 0x18e   : > { %5369 = vst [vmem:[%s6269_s19 + $0x810] sm:$0xff] %v4985_v31  ;;  %v1816_v34 = vpop.f32.mrf.mxu2 }
 0x18f   : > { %5180 = vst [vmem:[%s6269_s19 + $0x228] sm:$0xff] %v4796_v5 }
 0x190   : > { %v1659_v55 = vpop.f32.mrf.mxu0  ;;  %7874 = vst [vmem:[#allocation58_spill] sm:$0xff] %v6526_v21 }
 0x191   : > { %v2145_v11 = vpop.f32.mrf.mxu3  ;;  %v1988_v53 = vpop.f32.mrf.mxu1 }
 0x192   : > { %v2146_v13 = vadd.f32 %v2145_v11, %v1816_v34  ;;  %v1989_v31 = vadd.f32 %v1988_v53, %v1659_v55  ;;  %v1274_v11 = vld [vmem:[#allocation3 + $0x6a0] sm:$0xff]  ;;  %v1147_v55 = vld [vmem:[#allocation3 + $0x2a8] sm:$0xff]  ;;  %v1149_v53 = vld [vmem:[#allocation3 + $0x2b8] sm:$0xff] }
 0x193   : > { %1698 = vmatmul.bf16.gmra.mxu0 %v6520_v10  ;;  %1858 = vmatmul.bf16.gmra.mxu2 %v6522_v62 }
 0x194   : > { %v4988_v17 = vadd.f32 %v6258_v40, %v2146_v13  ;;  %v4799_v39 = vadd.f32 %v6258_v40, %v1989_v31  ;;  %2027 = vmatmul.bf16.gmra.mxu1 %v6524_v51  ;;  %v1276_v13 = vld [vmem:[#allocation3 + $0x6b0] sm:$0xff]  ;;  %v1277_v31 = vld [vmem:[#allocation3 + $0x6b8] sm:$0xff] }
 0x196   : > { %5372 = vst [vmem:[%s6269_s19 + $0x828] sm:$0xff] %v4988_v17  ;;  %2187 = vmatmul.bf16.gmra.mxu3 %v6526_v21  ;;  %v1819_v42 = vpop.f32.mrf.mxu2  ;;  %v1275_v17 = vld [vmem:[#allocation3 + $0x6a8] sm:$0xff] }
 0x197   : > { %5183 = vst [vmem:[%s6269_s19 + $0x240] sm:$0xff] %v4799_v39 }
 0x198   : > { %v1661_v3 = vpop.f32.mrf.mxu0 }
 0x199   : > { %v2148_v23 = vpop.f32.mrf.mxu3  ;;  %v1990_v47 = vpop.f32.mrf.mxu1 }
 0x19a   : > { %v2149_v5 = vadd.f32 %v2148_v23, %v1819_v42  ;;  %v1991_v7 = vadd.f32 %v1990_v47, %v1661_v3  ;;  %v6540_v23 = vpack.c.bf16 %v1148_v56, %v1146_v1 }
 0x19c   : > { %v4991_v63 = vadd.f32 %v6258_v40, %v2149_v5  ;;  %v4802_v34 = vadd.f32 %v6258_v40, %v1991_v7  ;;  %7875 = vst [vmem:[#allocation59_spill] sm:$0xff] %v6540_v23  ;;  %v6542_v5 = vpack.c.bf16 %v1276_v13, %v1274_v11  ;;  %v6546_v7 = vpack.c.bf16 %v1277_v31, %v1275_v17  ;;  %v1150_v17 = vld [vmem:[#allocation3 + $0x2c0] sm:$0xff]  ;;  %v1152_v31 = vld [vmem:[#allocation3 + $0x2d0] sm:$0xff] }
 0x19e   : > { %5375 = vst [vmem:[%s6269_s19 + $0x840] sm:$0xff] %v4991_v63  ;;  %v1821_v39 = vpop.f32.mrf.mxu2  ;;  %v6544_v63 = vpack.c.bf16 %v1149_v53, %v1147_v55 }
 0x19f   : > { %5186 = vst [vmem:[%s6269_s19 + $0x258] sm:$0xff] %v4802_v34 }
 0x1a0   : > { %7876 = vst [vmem:[#allocation60_spill] sm:$0xff] %v6542_v5  ;;  %v1664_v47 = vpop.f32.mrf.mxu0 }
 0x1a1   : > { %v2150_v42 = vpop.f32.mrf.mxu3  ;;  %7877 = vst [vmem:[#allocation61_spill] sm:$0xff] %v6544_v63  ;;  %v1993_v21 = vpop.f32.mrf.mxu1 }
 0x1a2   : > { %v2151_v3 = vadd.f32 %v2150_v42, %v1821_v39  ;;  %7878 = vst [vmem:[#allocation62_spill] sm:$0xff] %v6546_v7  ;;  %v1994_v19 = vadd.f32 %v1993_v21, %v1664_v47  ;;  %v1280_v39 = vld [vmem:[#allocation3 + $0x6d0] sm:$0xff]  ;;  %v1151_v42 = vld [vmem:[#allocation3 + $0x2c8] sm:$0xff] }
 0x1a3   : > { %1703 = vmatmul.bf16.gmra.mxu0 %v6540_v23  ;;  %1863 = vmatmul.bf16.gmra.mxu2 %v6542_v5  ;;  %v1279_v47 = vld [vmem:[#allocation3 + $0x6c8] sm:$0xff] }
 0x1a4   : > { %v4994_v62 = vadd.f32 %v6258_v40, %v2151_v3  ;;  %v4805_v1 = vadd.f32 %v6258_v40, %v1994_v19  ;;  %2032 = vmatmul.bf16.gmra.mxu1 %v6544_v63  ;;  %v1278_v19 = vld [vmem:[#allocation3 + $0x6c0] sm:$0xff]  ;;  %v1153_v3 = vld [vmem:[#allocation3 + $0x2d8] sm:$0xff] }
 0x1a6   : > { %5378 = vst [vmem:[%s6269_s19 + $0x858] sm:$0xff] %v4994_v62  ;;  %2192 = vmatmul.bf16.gmra.mxu3 %v6546_v7  ;;  %v1824_v56 = vpop.f32.mrf.mxu2 }
 0x1a7   : > { %5189 = vst [vmem:[%s6269_s19 + $0x270] sm:$0xff] %v4805_v1  ;;  %v1281_v1 = vld [vmem:[#allocation3 + $0x6d8] sm:$0xff] }
 0x1a8   : > { %v1666_v13 = vpop.f32.mrf.mxu0 }
 0x1a9   : > { %v2153_v34 = vpop.f32.mrf.mxu3  ;;  %v1995_v55 = vpop.f32.mrf.mxu1 }
 0x1aa   : > { %v2154_v11 = vadd.f32 %v2153_v34, %v1824_v56  ;;  %v1996_v53 = vadd.f32 %v1995_v55, %v1666_v13  ;;  %v6560_v34 = vpack.c.bf16 %v1152_v31, %v1150_v17  ;;  %v1453_v31 = vld [vmem:[%s6091_s30 + $0x38] sm:$0xff] }
 0x1ac   : > { %v4997_v21 = vadd.f32 %v6258_v40, %v2154_v11  ;;  %v4808_v62 = vadd.f32 %v6258_v40, %v1996_v53  ;;  %7879 = vst [vmem:[#allocation63_spill] sm:$0xff] %v6560_v34  ;;  %v6562_v11 = vpack.c.bf16 %v1280_v39, %v1278_v19  ;;  %v6566_v53 = vpack.c.bf16 %v1281_v1, %v1279_v47  ;;  %v1456_v19 = vld [vmem:[%s6091_s30 + $0x50] sm:$0xff]  ;;  %v1501_v39 = vld [vmem:[%s6091_s30 + $0x1b8] sm:$0xff] }
 0x1ae   : > { %5381 = vst [vmem:[%s6269_s19 + $0x870] sm:$0xff] %v4997_v21  ;;  %v1826_v7 = vpop.f32.mrf.mxu2  ;;  %v6564_v21 = vpack.c.bf16 %v1153_v3, %v1151_v42  ;;  %v1546_v3 = vpack.c.bf16 %v1456_v19, %v1453_v31  ;;  %v1282_v31 = vld [vmem:[#allocation3 + $0x6e0] sm:$0xff]  ;;  %v1155_v19 = vld [vmem:[#allocation3 + $0x2e8] sm:$0xff] }
 0x1af   : > { %5192 = vst [vmem:[%s6269_s19 + $0x288] sm:$0xff] %v4808_v62 }
 0x1b0   : > { %7880 = vst [vmem:[#allocation64_spill] sm:$0xff] %v6562_v11  ;;  %v1669_v55 = vpop.f32.mrf.mxu0  ;;  %2254 = vmatpush.bf16.msrb.mxu2 %v1546_v3 }
 0x1b1   : > { %v2155_v56 = vpop.f32.mrf.mxu3  ;;  %7881 = vst [vmem:[#allocation65_spill] sm:$0xff] %v6564_v21  ;;  %v1998_v5 = vpop.f32.mrf.mxu1 }
 0x1b2   : > { %v2156_v13 = vadd.f32 %v2155_v56, %v1826_v7  ;;  %7882 = vst [vmem:[#allocation66_spill] sm:$0xff] %v6566_v53  ;;  %v1999_v59 = vadd.f32 %v1998_v5, %v1669_v55  ;;  %v1504_v5 = vld [vmem:[%s6091_s30 + $0x1d0] sm:$0xff] }
 0x1b3   : > { %1708 = vmatmul.bf16.gmra.mxu0 %v6560_v34  ;;  %1868 = vmatmul.bf16.gmra.mxu2 %v6562_v11  ;;  %v1570_v56 = vpack.c.bf16 %v1504_v5, %v1501_v39  ;;  %v1157_v39 = vld [vmem:[#allocation3 + $0x2f8] sm:$0xff]  ;;  %v1454_v11 = vld [vmem:[%s6091_s30 + $0x40] sm:$0xff] }
 0x1b4   : > { %v5000_v62 = vadd.f32 %v6258_v40, %v2156_v13  ;;  %v4811_v17 = vadd.f32 %v6258_v40, %v1999_v59  ;;  %2037 = vmatmul.bf16.gmra.mxu1 %v6564_v21  ;;  %v1285_v5 = vld [vmem:[#allocation3 + $0x6f8] sm:$0xff]  ;;  %v1502_v21 = vld [vmem:[%s6091_s30 + $0x1c0] sm:$0xff]  ;;  %v6592_v23 = vpack.c.bf16 %v1157_v39, %v1155_v19  ;;  %v1160_v19 = vld [vmem:[#allocation3 + $0x310] sm:$0xff] }
 0x1b5   : > { %2583 = vmatpush.bf16.msrb.mxu3 %v1570_v56  ;;  %v1288_v39 = vld [vmem:[#allocation3 + $0x710] sm:$0xff] }
 0x1b6   : > { %5384 = vst [vmem:[%s6269_s19 + $0x888] sm:$0xff] %v5000_v62  ;;  %2197 = vmatmul.bf16.gmra.mxu3 %v6566_v53  ;;  %v1829_v7 = vpop.f32.mrf.mxu2  ;;  %v1154_v62 = vld [vmem:[#allocation3 + $0x2e0] sm:$0xff] }
 0x1b7   : > { %5195 = vst [vmem:[%s6269_s19 + $0x2a0] sm:$0xff] %v4811_v17  ;;  %v1156_v17 = vld [vmem:[#allocation3 + $0x2f0] sm:$0xff] }
 0x1b8   : > { %v1671_v1 = vpop.f32.mrf.mxu0  ;;  %7885 = vst [vmem:[#allocation69_spill] sm:$0xff] %v6592_v23 }
 0x1b9   : > { %v2158_v42 = vpop.f32.mrf.mxu3  ;;  %v2000_v13 = vpop.f32.mrf.mxu1 }
 0x1ba   : > { %v2159_v47 = vadd.f32 %v2158_v42, %v1829_v7  ;;  %v2001_v55 = vadd.f32 %v2000_v13, %v1671_v1  ;;  %v1284_v7 = vld [vmem:[#allocation3 + $0x6f0] sm:$0xff]  ;;  %v1283_v42 = vld [vmem:[#allocation3 + $0x6e8] sm:$0xff]  ;;  %v6587_v13 = vpack.c.bf16 %v1156_v17, %v1154_v62 }
 0x1bb   : > { %v6589_v56 = vpack.c.bf16 %v1284_v7, %v1282_v31  ;;  %v6594_v51 = vpack.c.bf16 %v1285_v5, %v1283_v42  ;;  %v1158_v7 = vld [vmem:[#allocation3 + $0x300] sm:$0xff]  ;;  %v1159_v42 = vld [vmem:[#allocation3 + $0x308] sm:$0xff]  ;;  %v1161_v5 = vld [vmem:[#allocation3 + $0x318] sm:$0xff] }
 0x1bc   : > { %v5003_v59 = vadd.f32 %v6258_v40, %v2159_v47  ;;  %v4814_v53 = vadd.f32 %v6258_v40, %v2001_v55  ;;  %v1457_v47 = vld [vmem:[%s6091_s30 + $0x58] sm:$0xff]  ;;  %7883 = vst [vmem:[#allocation67_spill] sm:$0xff] %v6587_v13 }
 0x1bd   : > { %7884 = vst [vmem:[#allocation68_spill] sm:$0xff] %v6589_v56  ;;  %v1505_v55 = vld [vmem:[%s6091_s30 + $0x1d8] sm:$0xff] }
 0x1be   : > { %5387 = vst [vmem:[%s6269_s19 + $0x8a0] sm:$0xff] %v5003_v59  ;;  %v1831_v3 = vpop.f32.mrf.mxu2  ;;  %v1547_v59 = vpack.c.bf16 %v1457_v47, %v1454_v11  ;;  %v1289_v47 = vld [vmem:[#allocation3 + $0x718] sm:$0xff] }
 0x1bf   : > { %5198 = vst [vmem:[%s6269_s19 + $0x2b8] sm:$0xff] %v4814_v53  ;;  %v1571_v53 = vpack.c.bf16 %v1505_v55, %v1502_v21  ;;  %v6608_v55 = vpack.c.bf16 %v1160_v19, %v1158_v7 }
 0x1c0   : > { %v1674_v63 = vpop.f32.mrf.mxu0  ;;  %7886 = vst [vmem:[#allocation70_spill] sm:$0xff] %v6594_v51  ;;  %2912 = vmatpush.bf16.msrb.mxu0 %v1547_v59 }
 0x1c1   : > { %v2160_v1 = vpop.f32.mrf.mxu3  ;;  %v2003_v10 = vpop.f32.mrf.mxu1  ;;  %3241 = vmatpush.bf16.msrb.mxu1 %v1571_v53  ;;  %7887 = vst [vmem:[#allocation71_spill] sm:$0xff] %v6608_v55 }
 0x1c2   : > { %v2161_v34 = vadd.f32 %v2160_v1, %v1831_v3  ;;  %v2004_v15 = vadd.f32 %v2003_v10, %v1674_v63  ;;  %v1287_v3 = vld [vmem:[#allocation3 + $0x708] sm:$0xff] }
 0x1c3   : > { %1713 = vmatmul.bf16.gmra.mxu0 %v6587_v13  ;;  %1873 = vmatmul.bf16.gmra.mxu2 %v6589_v56 }
 0x1c4   : > { %v5006_v29 = vadd.f32 %v6258_v40, %v2161_v34  ;;  %v4817_v11 = vadd.f32 %v6258_v40, %v2004_v15  ;;  %2042 = vmatmul.bf16.gmra.mxu1 %v6592_v23  ;;  %v1286_v15 = vld [vmem:[#allocation3 + $0x700] sm:$0xff] }
 0x1c5   : > { %v6610_v53 = vpack.c.bf16 %v1288_v39, %v1286_v15 }
 0x1c6   : > { %5390 = vst [vmem:[%s6269_s19 + $0x8b8] sm:$0xff] %v5006_v29  ;;  %2202 = vmatmul.bf16.gmra.mxu3 %v6594_v51  ;;  %v1834_v21 = vpop.f32.mrf.mxu2 }
 0x1c7   : > { %5201 = vst [vmem:[%s6269_s19 + $0x2d0] sm:$0xff] %v4817_v11 }
 0x1c8   : > { %v1676_v34 = vpop.f32.mrf.mxu0  ;;  %7888 = vst [vmem:[#allocation72_spill] sm:$0xff] %v6610_v53 }
 0x1c9   : > { %v2163_v62 = vpop.f32.mrf.mxu3  ;;  %v2005_v10 = vpop.f32.mrf.mxu1 }
 0x1ca   : > { %v2164_v17 = vadd.f32 %v2163_v62, %v1834_v21  ;;  %v2006_v31 = vadd.f32 %v2005_v10, %v1676_v34  ;;  %v6612_v62 = vpack.c.bf16 %v1161_v5, %v1159_v42 }
 0x1cc   : > { %v5009_v63 = vadd.f32 %v6258_v40, %v2164_v17  ;;  %v4820_v29 = vadd.f32 %v6258_v40, %v2006_v31  ;;  %7889 = vst [vmem:[#allocation73_spill] sm:$0xff] %v6612_v62  ;;  %v6614_v17 = vpack.c.bf16 %v1289_v47, %v1287_v3  ;;  %v1162_v3 = vld [vmem:[#allocation3 + $0x320] sm:$0xff]  ;;  %v1164_v47 = vld [vmem:[#allocation3 + $0x330] sm:$0xff] }
 0x1ce   : > { %5393 = vst [vmem:[%s6269_s19 + $0x8d0] sm:$0xff] %v5009_v63  ;;  %v1836_v1 = vpop.f32.mrf.mxu2 }
 0x1cf   : > { %5204 = vst [vmem:[%s6269_s19 + $0x2e8] sm:$0xff] %v4820_v29 }
 0x1d0   : > { %v1679_v21 = vpop.f32.mrf.mxu0  ;;  %7890 = vst [vmem:[#allocation74_spill] sm:$0xff] %v6614_v17 }
 0x1d1   : > { %v2165_v59 = vpop.f32.mrf.mxu3  ;;  %v2008_v34 = vpop.f32.mrf.mxu1 }
 0x1d2   : > { %v2166_v11 = vadd.f32 %v2165_v59, %v1836_v1  ;;  %v2009_v63 = vadd.f32 %v2008_v34, %v1679_v21  ;;  %v1290_v59 = vld [vmem:[#allocation3 + $0x720] sm:$0xff]  ;;  %v1163_v21 = vld [vmem:[#allocation3 + $0x328] sm:$0xff]  ;;  %v1165_v34 = vld [vmem:[#allocation3 + $0x338] sm:$0xff] }
 0x1d3   : > { %1718 = vmatmul.bf16.gmra.mxu0 %v6608_v55  ;;  %1878 = vmatmul.bf16.gmra.mxu2 %v6610_v53 }
 0x1d4   : > { %v5012_v10 = vadd.f32 %v6258_v40, %v2166_v11  ;;  %v4823_v31 = vadd.f32 %v6258_v40, %v2009_v63  ;;  %2047 = vmatmul.bf16.gmra.mxu1 %v6612_v62  ;;  %v1292_v11 = vld [vmem:[#allocation3 + $0x730] sm:$0xff]  ;;  %v1293_v63 = vld [vmem:[#allocation3 + $0x738] sm:$0xff] }
 0x1d6   : > { %5396 = vst [vmem:[%s6269_s19 + $0x8e8] sm:$0xff] %v5012_v10  ;;  %2207 = vmatmul.bf16.gmra.mxu3 %v6614_v17  ;;  %v1839_v7 = vpop.f32.mrf.mxu2  ;;  %v1291_v10 = vld [vmem:[#allocation3 + $0x728] sm:$0xff] }
 0x1d7   : > { %5207 = vst [vmem:[%s6269_s19 + $0x300] sm:$0xff] %v4823_v31 }
 0x1d8   : > { %v1681_v15 = vpop.f32.mrf.mxu0 }
 0x1d9   : > { %v2168_v19 = vpop.f32.mrf.mxu3  ;;  %v2010_v39 = vpop.f32.mrf.mxu1 }
 0x1da   : > { %v2169_v29 = vadd.f32 %v2168_v19, %v1839_v7  ;;  %v2011_v5 = vadd.f32 %v2010_v39, %v1681_v15  ;;  %v6628_v19 = vpack.c.bf16 %v1164_v47, %v1162_v3 }
 0x1dc   : > { %v5015_v42 = vadd.f32 %v6258_v40, %v2169_v29  ;;  %v4826_v1 = vadd.f32 %v6258_v40, %v2011_v5  ;;  %7891 = vst [vmem:[#allocation75_spill] sm:$0xff] %v6628_v19  ;;  %v6630_v29 = vpack.c.bf16 %v1292_v11, %v1290_v59  ;;  %v6634_v5 = vpack.c.bf16 %v1293_v63, %v1291_v10  ;;  %v1166_v10 = vld [vmem:[#allocation3 + $0x340] sm:$0xff]  ;;  %v1168_v63 = vld [vmem:[#allocation3 + $0x350] sm:$0xff] }
 0x1de   : > { %5399 = vst [vmem:[%s6269_s19 + $0x900] sm:$0xff] %v5015_v42  ;;  %v1841_v31 = vpop.f32.mrf.mxu2  ;;  %v6632_v42 = vpack.c.bf16 %v1165_v34, %v1163_v21 }
 0x1df   : > { %5210 = vst [vmem:[%s6269_s19 + $0x318] sm:$0xff] %v4826_v1 }
 0x1e0   : > { %7892 = vst [vmem:[#allocation76_spill] sm:$0xff] %v6630_v29  ;;  %v1684_v39 = vpop.f32.mrf.mxu0 }
 0x1e1   : > { %v2170_v7 = vpop.f32.mrf.mxu3  ;;  %7893 = vst [vmem:[#allocation77_spill] sm:$0xff] %v6632_v42  ;;  %v2013_v17 = vpop.f32.mrf.mxu1 }
 0x1e2   : > { %v2171_v15 = vadd.f32 %v2170_v7, %v1841_v31  ;;  %7894 = vst [vmem:[#allocation78_spill] sm:$0xff] %v6634_v5  ;;  %v2014_v51 = vadd.f32 %v2013_v17, %v1684_v39  ;;  %v1296_v31 = vld [vmem:[#allocation3 + $0x750] sm:$0xff]  ;;  %v1167_v7 = vld [vmem:[#allocation3 + $0x348] sm:$0xff] }
 0x1e3   : > { %1723 = vmatmul.bf16.gmra.mxu0 %v6628_v19  ;;  %1883 = vmatmul.bf16.gmra.mxu2 %v6630_v29  ;;  %v1295_v39 = vld [vmem:[#allocation3 + $0x748] sm:$0xff] }
 0x1e4   : > { %v5018_v53 = vadd.f32 %v6258_v40, %v2171_v15  ;;  %v4829_v3 = vadd.f32 %v6258_v40, %v2014_v51  ;;  %2052 = vmatmul.bf16.gmra.mxu1 %v6632_v42  ;;  %v1294_v51 = vld [vmem:[#allocation3 + $0x740] sm:$0xff]  ;;  %v1169_v15 = vld [vmem:[#allocation3 + $0x358] sm:$0xff] }
 0x1e6   : > { %5402 = vst [vmem:[%s6269_s19 + $0x918] sm:$0xff] %v5018_v53  ;;  %2212 = vmatmul.bf16.gmra.mxu3 %v6634_v5  ;;  %v1844_v47 = vpop.f32.mrf.mxu2 }
 0x1e7   : > { %5213 = vst [vmem:[%s6269_s19 + $0x330] sm:$0xff] %v4829_v3  ;;  %v1297_v3 = vld [vmem:[#allocation3 + $0x758] sm:$0xff] }
 0x1e8   : > { %v1686_v11 = vpop.f32.mrf.mxu0 }
 0x1e9   : > { %v2173_v1 = vpop.f32.mrf.mxu3  ;;  %v2015_v21 = vpop.f32.mrf.mxu1 }
 0x1ea   : > { %v2174_v59 = vadd.f32 %v2173_v1, %v1844_v47  ;;  %v2016_v34 = vadd.f32 %v2015_v21, %v1686_v11  ;;  %v6648_v1 = vpack.c.bf16 %v1168_v63, %v1166_v10  ;;  %v1447_v63 = vld [vmem:[%s6091_s30 + $0x8] sm:$0xff] }
 0x1ec   : > { %v5021_v17 = vadd.f32 %v6258_v40, %v2174_v59  ;;  %v4832_v53 = vadd.f32 %v6258_v40, %v2016_v34  ;;  %7895 = vst [vmem:[#allocation79_spill] sm:$0xff] %v6648_v1  ;;  %v6650_v59 = vpack.c.bf16 %v1296_v31, %v1294_v51  ;;  %v6654_v34 = vpack.c.bf16 %v1297_v3, %v1295_v39  ;;  %v1450_v51 = vld [vmem:[%s6091_s30 + $0x20] sm:$0xff]  ;;  %v1495_v31 = vld [vmem:[%s6091_s30 + $0x188] sm:$0xff] }
 0x1ee   : > { %5405 = vst [vmem:[%s6269_s19 + $0x930] sm:$0xff] %v5021_v17  ;;  %v1846_v5 = vpop.f32.mrf.mxu2  ;;  %v6652_v17 = vpack.c.bf16 %v1169_v15, %v1167_v7  ;;  %v1543_v15 = vpack.c.bf16 %v1450_v51, %v1447_v63  ;;  %v1298_v63 = vld [vmem:[#allocation3 + $0x760] sm:$0xff]  ;;  %v1171_v51 = vld [vmem:[#allocation3 + $0x368] sm:$0xff] }
 0x1ef   : > { %5216 = vst [vmem:[%s6269_s19 + $0x348] sm:$0xff] %v4832_v53 }
 0x1f0   : > { %7896 = vst [vmem:[#allocation80_spill] sm:$0xff] %v6650_v59  ;;  %v1689_v21 = vpop.f32.mrf.mxu0  ;;  %2255 = vmatpush.bf16.msrb.mxu2 %v1543_v15 }
 0x1f1   : > { %v2175_v47 = vpop.f32.mrf.mxu3  ;;  %7897 = vst [vmem:[#allocation81_spill] sm:$0xff] %v6652_v17  ;;  %v2018_v29 = vpop.f32.mrf.mxu1 }
 0x1f2   : > { %v2176_v11 = vadd.f32 %v2175_v47, %v1846_v5  ;;  %7898 = vst [vmem:[#allocation82_spill] sm:$0xff] %v6654_v34  ;;  %v2019_v56 = vadd.f32 %v2018_v29, %v1689_v21  ;;  %v1498_v29 = vld [vmem:[%s6091_s30 + $0x1a0] sm:$0xff] }
 0x1f3   : > { %1728 = vmatmul.bf16.gmra.mxu0 %v6648_v1  ;;  %1888 = vmatmul.bf16.gmra.mxu2 %v6650_v59  ;;  %v1567_v47 = vpack.c.bf16 %v1498_v29, %v1495_v31  ;;  %v1173_v31 = vld [vmem:[#allocation3 + $0x378] sm:$0xff]  ;;  %v1448_v59 = vld [vmem:[%s6091_s30 + $0x10] sm:$0xff] }
 0x1f4   : > { %v5024_v53 = vadd.f32 %v6258_v40, %v2176_v11  ;;  %v4835_v10 = vadd.f32 %v6258_v40, %v2019_v56  ;;  %2057 = vmatmul.bf16.gmra.mxu1 %v6652_v17  ;;  %v1301_v29 = vld [vmem:[#allocation3 + $0x778] sm:$0xff]  ;;  %v1496_v17 = vld [vmem:[%s6091_s30 + $0x190] sm:$0xff]  ;;  %v6680_v19 = vpack.c.bf16 %v1173_v31, %v1171_v51 }
 0x1f5   : > { %2584 = vmatpush.bf16.msrb.mxu3 %v1567_v47  ;;  %v1176_v51 = vld [vmem:[#allocation3 + $0x390] sm:$0xff] }
 0x1f6   : > { %5408 = vst [vmem:[%s6269_s19 + $0x948] sm:$0xff] %v5024_v53  ;;  %2217 = vmatmul.bf16.gmra.mxu3 %v6654_v34  ;;  %v1849_v5 = vpop.f32.mrf.mxu2  ;;  %v1170_v53 = vld [vmem:[#allocation3 + $0x360] sm:$0xff]  ;;  %v1304_v31 = vld [vmem:[#allocation3 + $0x790] sm:$0xff] }
 0x1f7   : > { %5219 = vst [vmem:[%s6269_s19 + $0x360] sm:$0xff] %v4835_v10  ;;  %v1172_v10 = vld [vmem:[#allocation3 + $0x370] sm:$0xff] }
 0x1f8   : > { %v1691_v3 = vpop.f32.mrf.mxu0 }
 0x1f9   : > { %v2178_v7 = vpop.f32.mrf.mxu3  ;;  %v2020_v11 = vpop.f32.mrf.mxu1 }
 0x1fa   : > { %v2179_v39 = vadd.f32 %v2178_v7, %v1849_v5  ;;  %v2021_v21 = vadd.f32 %v2020_v11, %v1691_v3  ;;  %v1300_v5 = vld [vmem:[#allocation3 + $0x770] sm:$0xff]  ;;  %v1299_v7 = vld [vmem:[#allocation3 + $0x768] sm:$0xff]  ;;  %v6675_v11 = vpack.c.bf16 %v1172_v10, %v1170_v53 }
 0x1fb   : > { %v6677_v47 = vpack.c.bf16 %v1300_v5, %v1298_v63  ;;  %v6682_v62 = vpack.c.bf16 %v1301_v29, %v1299_v7  ;;  %v1174_v5 = vld [vmem:[#allocation3 + $0x380] sm:$0xff]  ;;  %v1175_v7 = vld [vmem:[#allocation3 + $0x388] sm:$0xff]  ;;  %v1177_v29 = vld [vmem:[#allocation3 + $0x398] sm:$0xff] }
 0x1fc   : > { %v5027_v56 = vadd.f32 %v6258_v40, %v2179_v39  ;;  %v4838_v34 = vadd.f32 %v6258_v40, %v2021_v21  ;;  %v1451_v39 = vld [vmem:[%s6091_s30 + $0x28] sm:$0xff] }
 0x1fd   : > { %7899 = vst [vmem:[#allocation83_spill] sm:$0xff] %v6677_v47  ;;  %v1499_v21 = vld [vmem:[%s6091_s30 + $0x1a8] sm:$0xff] }
 0x1fe   : > { %5411 = vst [vmem:[%s6269_s19 + $0x960] sm:$0xff] %v5027_v56  ;;  %v1851_v15 = vpop.f32.mrf.mxu2  ;;  %v1544_v56 = vpack.c.bf16 %v1451_v39, %v1448_v59  ;;  %v1305_v39 = vld [vmem:[#allocation3 + $0x798] sm:$0xff] }
 0x1ff   : > { %5222 = vst [vmem:[%s6269_s19 + $0x378] sm:$0xff] %v4838_v34  ;;  %v1568_v34 = vpack.c.bf16 %v1499_v21, %v1496_v17  ;;  %v6696_v21 = vpack.c.bf16 %v1176_v51, %v1174_v5 }
 0x200   : > { %v1694_v42 = vpop.f32.mrf.mxu0  ;;  %7900 = vst [vmem:[#allocation84_spill] sm:$0xff] %v6682_v62  ;;  %2913 = vmatpush.bf16.msrb.mxu0 %v1544_v56 }
 0x201   : > { %v2180_v3 = vpop.f32.mrf.mxu3  ;;  %v2023_v55 = vpop.f32.mrf.mxu1  ;;  %3242 = vmatpush.bf16.msrb.mxu1 %v1568_v34 }
 0x202   : > { %v2181_v1 = vadd.f32 %v2180_v3, %v1851_v15  ;;  %v2024_v13 = vadd.f32 %v2023_v55, %v1694_v42  ;;  %v1303_v15 = vld [vmem:[#allocation3 + $0x788] sm:$0xff] }
 0x203   : > { %1733 = vmatmul.bf16.gmra.mxu0 %v6675_v11  ;;  %1893 = vmatmul.bf16.gmra.mxu2 %v6677_v47 }
 0x204   : > { %v5030_v23 = vadd.f32 %v6258_v40, %v2181_v1  ;;  %v4841_v59 = vadd.f32 %v6258_v40, %v2024_v13  ;;  %2062 = vmatmul.bf16.gmra.mxu1 %v6680_v19  ;;  %v1302_v13 = vld [vmem:[#allocation3 + $0x780] sm:$0xff] }
 0x205   : > { %v6698_v34 = vpack.c.bf16 %v1304_v31, %v1302_v13 }
 0x206   : > { %5414 = vst [vmem:[%s6269_s19 + $0x978] sm:$0xff] %v5030_v23  ;;  %2222 = vmatmul.bf16.gmra.mxu3 %v6682_v62  ;;  %v1854_v17 = vpop.f32.mrf.mxu2 }
 0x207   : > { %5225 = vst [vmem:[%s6269_s19 + $0x390] sm:$0xff] %v4841_v59 }
 0x208   : > { %v1696_v1 = vpop.f32.mrf.mxu0  ;;  %7901 = vst [vmem:[#allocation85_spill] sm:$0xff] %v6698_v34 }
 0x209   : > { %v2183_v53 = vpop.f32.mrf.mxu3  ;;  %v2025_v55 = vpop.f32.mrf.mxu1 }
 0x20a   : > { %v2184_v10 = vadd.f32 %v2183_v53, %v1854_v17  ;;  %v2026_v63 = vadd.f32 %v2025_v55, %v1696_v1  ;;  %v6700_v53 = vpack.c.bf16 %v1177_v29, %v1175_v7 }
 0x20c   : > { %v5033_v42 = vadd.f32 %v6258_v40, %v2184_v10  ;;  %v4844_v23 = vadd.f32 %v6258_v40, %v2026_v63  ;;  %v6702_v10 = vpack.c.bf16 %v1305_v39, %v1303_v15  ;;  %v1178_v15 = vld [vmem:[#allocation3 + $0x3a0] sm:$0xff]  ;;  %v1180_v39 = vld [vmem:[#allocation3 + $0x3b0] sm:$0xff] }
 0x20e   : > { %5417 = vst [vmem:[%s6269_s19 + $0x990] sm:$0xff] %v5033_v42  ;;  %v1856_v3 = vpop.f32.mrf.mxu2 }
 0x20f   : > { %5228 = vst [vmem:[%s6269_s19 + $0x3a8] sm:$0xff] %v4844_v23 }
 0x210   : > { %v1699_v17 = vpop.f32.mrf.mxu0  ;;  %7902 = vst [vmem:[#allocation86_spill] sm:$0xff] %v6702_v10 }
 0x211   : > { %v2185_v56 = vpop.f32.mrf.mxu3  ;;  %v2028_v1 = vpop.f32.mrf.mxu1 }
 0x212   : > { %v2186_v59 = vadd.f32 %v2185_v56, %v1856_v3  ;;  %v2029_v42 = vadd.f32 %v2028_v1, %v1699_v17  ;;  %v1306_v56 = vld [vmem:[#allocation3 + $0x7a0] sm:$0xff]  ;;  %v1179_v17 = vld [vmem:[#allocation3 + $0x3a8] sm:$0xff]  ;;  %v1181_v1 = vld [vmem:[#allocation3 + $0x3b8] sm:$0xff] }
 0x213   : > { %1738 = vmatmul.bf16.gmra.mxu0 %v6696_v21  ;;  %1898 = vmatmul.bf16.gmra.mxu2 %v6698_v34 }
 0x214   : > { %v5036_v55 = vadd.f32 %v6258_v40, %v2186_v59  ;;  %v4847_v63 = vadd.f32 %v6258_v40, %v2029_v42  ;;  %2067 = vmatmul.bf16.gmra.mxu1 %v6700_v53  ;;  %v1308_v59 = vld [vmem:[#allocation3 + $0x7b0] sm:$0xff]  ;;  %v1309_v42 = vld [vmem:[#allocation3 + $0x7b8] sm:$0xff] }
 0x216   : > { %5420 = vst [vmem:[%s6269_s19 + $0x9a8] sm:$0xff] %v5036_v55  ;;  %2227 = vmatmul.bf16.gmra.mxu3 %v6702_v10  ;;  %v1859_v5 = vpop.f32.mrf.mxu2  ;;  %v1307_v55 = vld [vmem:[#allocation3 + $0x7a8] sm:$0xff] }
 0x217   : > { %5231 = vst [vmem:[%s6269_s19 + $0x3c0] sm:$0xff] %v4847_v63 }
 0x218   : > { %v1701_v13 = vpop.f32.mrf.mxu0 }
 0x219   : > { %v2188_v51 = vpop.f32.mrf.mxu3  ;;  %v2030_v31 = vpop.f32.mrf.mxu1 }
 0x21a   : > { %v2189_v23 = vadd.f32 %v2188_v51, %v1859_v5  ;;  %v2031_v29 = vadd.f32 %v2030_v31, %v1701_v13  ;;  %v6716_v51 = vpack.c.bf16 %v1180_v39, %v1178_v15 }
 0x21c   : > { %v5039_v7 = vadd.f32 %v6258_v40, %v2189_v23  ;;  %v4850_v3 = vadd.f32 %v6258_v40, %v2031_v29  ;;  %v6718_v23 = vpack.c.bf16 %v1308_v59, %v1306_v56  ;;  %v6722_v29 = vpack.c.bf16 %v1309_v42, %v1307_v55  ;;  %v1182_v55 = vld [vmem:[#allocation3 + $0x3c0] sm:$0xff]  ;;  %v1184_v42 = vld [vmem:[#allocation3 + $0x3d0] sm:$0xff] }
 0x21e   : > { %5423 = vst [vmem:[%s6269_s19 + $0x9c0] sm:$0xff] %v5039_v7  ;;  %v1861_v63 = vpop.f32.mrf.mxu2  ;;  %v6720_v7 = vpack.c.bf16 %v1181_v1, %v1179_v17 }
 0x21f   : > { %5234 = vst [vmem:[%s6269_s19 + $0x3d8] sm:$0xff] %v4850_v3 }
 0x220   : > { %7903 = vst [vmem:[#allocation87_spill] sm:$0xff] %v6718_v23  ;;  %v1704_v31 = vpop.f32.mrf.mxu0 }
 0x221   : > { %v2190_v5 = vpop.f32.mrf.mxu3  ;;  %7904 = vst [vmem:[#allocation88_spill] sm:$0xff] %v6720_v7  ;;  %v2033_v10 = vpop.f32.mrf.mxu1 }
 0x222   : > { %v2191_v13 = vadd.f32 %v2190_v5, %v1861_v63  ;;  %7905 = vst [vmem:[#allocation89_spill] sm:$0xff] %v6722_v29  ;;  %v2034_v62 = vadd.f32 %v2033_v10, %v1704_v31  ;;  %v1312_v63 = vld [vmem:[#allocation3 + $0x7d0] sm:$0xff]  ;;  %v1183_v5 = vld [vmem:[#allocation3 + $0x3c8] sm:$0xff] }
 0x223   : > { %1743 = vmatmul.bf16.gmra.mxu0 %v6716_v51  ;;  %1903 = vmatmul.bf16.gmra.mxu2 %v6718_v23  ;;  %v1311_v31 = vld [vmem:[#allocation3 + $0x7c8] sm:$0xff] }
 0x224   : > { %v5042_v34 = vadd.f32 %v6258_v40, %v2191_v13  ;;  %v4853_v15 = vadd.f32 %v6258_v40, %v2034_v62  ;;  %2072 = vmatmul.bf16.gmra.mxu1 %v6720_v7  ;;  %v1310_v62 = vld [vmem:[#allocation3 + $0x7c0] sm:$0xff]  ;;  %v1185_v13 = vld [vmem:[#allocation3 + $0x3d8] sm:$0xff] }
 0x226   : > { %5426 = vst [vmem:[%s6269_s19 + $0x9d8] sm:$0xff] %v5042_v34  ;;  %2232 = vmatmul.bf16.gmra.mxu3 %v6722_v29  ;;  %v1864_v39 = vpop.f32.mrf.mxu2 }
 0x227   : > { %5237 = vst [vmem:[%s6269_s19 + $0x3f0] sm:$0xff] %v4853_v15  ;;  %v1313_v15 = vld [vmem:[#allocation3 + $0x7d8] sm:$0xff] }
 0x228   : > { %v1706_v59 = vpop.f32.mrf.mxu0 }
 0x229   : > { %v2193_v3 = vpop.f32.mrf.mxu3  ;;  %v2035_v17 = vpop.f32.mrf.mxu1 }
 0x22a   : > { %v2194_v56 = vadd.f32 %v2193_v3, %v1864_v39  ;;  %v2036_v1 = vadd.f32 %v2035_v17, %v1706_v59  ;;  %v6736_v3 = vpack.c.bf16 %v1184_v42, %v1182_v55 }
 0x22c   : > { %v5045_v10 = vadd.f32 %v6258_v40, %v2194_v56  ;;  %v4856_v34 = vadd.f32 %v6258_v40, %v2036_v1  ;;  %7906 = vst [vmem:[#allocation90_spill] sm:$0xff] %v6736_v3  ;;  %v6738_v56 = vpack.c.bf16 %v1312_v63, %v1310_v62  ;;  %v6742_v1 = vpack.c.bf16 %v1313_v15, %v1311_v31  ;;  %v1188_v31 = vld [vmem:[#allocation3 + $0x3f0] sm:$0xff] }
 0x22d   : > { %v1316_v15 = vld [vmem:[#allocation3 + $0x7f0] sm:$0xff] }
 0x22e   : > { %5429 = vst [vmem:[%s6269_s19 + $0x9f0] sm:$0xff] %v5045_v10  ;;  %v1866_v29 = vpop.f32.mrf.mxu2  ;;  %v6740_v10 = vpack.c.bf16 %v1185_v13, %v1183_v5  ;;  %v1186_v13 = vld [vmem:[#allocation3 + $0x3e0] sm:$0xff] }
 0x22f   : > { %5240 = vst [vmem:[%s6269_s19 + $0x408] sm:$0xff] %v4856_v34 }
 0x230   : > { %7907 = vst [vmem:[#allocation91_spill] sm:$0xff] %v6738_v56  ;;  %v1709_v17 = vpop.f32.mrf.mxu0 }
 0x231   : > { %v2195_v39 = vpop.f32.mrf.mxu3  ;;  %7908 = vst [vmem:[#allocation92_spill] sm:$0xff] %v6740_v10  ;;  %v2038_v23 = vpop.f32.mrf.mxu1 }
 0x232   : > { %v2196_v59 = vadd.f32 %v2195_v39, %v1866_v29  ;;  %7909 = vst [vmem:[#allocation93_spill] sm:$0xff] %v6742_v1  ;;  %v2039_v7 = vadd.f32 %v2038_v23, %v1709_v17  ;;  %v1187_v39 = vld [vmem:[#allocation3 + $0x3e8] sm:$0xff] }
 0x233   : > { %1748 = vmatmul.bf16.gmra.mxu0 %v6736_v3  ;;  %1908 = vmatmul.bf16.gmra.mxu2 %v6738_v56  ;;  %v1315_v17 = vld [vmem:[#allocation3 + $0x7e8] sm:$0xff] }
 0x234   : > { %v5048_v47 = vadd.f32 %v6258_v40, %v2196_v59  ;;  %v4859_v55 = vadd.f32 %v6258_v40, %v2039_v7  ;;  %2077 = vmatmul.bf16.gmra.mxu1 %v6740_v10  ;;  %v1314_v7 = vld [vmem:[#allocation3 + $0x7e0] sm:$0xff]  ;;  %v1189_v59 = vld [vmem:[#allocation3 + $0x3f8] sm:$0xff] }
 0x236   : > { %5432 = vst [vmem:[%s6269_s19 + $0xa08] sm:$0xff] %v5048_v47  ;;  %2237 = vmatmul.bf16.gmra.mxu3 %v6742_v1  ;;  %v1869_v29 = vpop.f32.mrf.mxu2 }
 0x237   : > { %5243 = vst [vmem:[%s6269_s19 + $0x420] sm:$0xff] %v4859_v55  ;;  %v1317_v55 = vld [vmem:[#allocation3 + $0x7f8] sm:$0xff] }
 0x238   : > { %v1711_v62 = vpop.f32.mrf.mxu0 }
 0x239   : > { %v2198_v42 = vpop.f32.mrf.mxu3  ;;  %v2040_v63 = vpop.f32.mrf.mxu1 }
 0x23a   : > { %v2199_v34 = vadd.f32 %v2198_v42, %v1869_v29  ;;  %v2041_v5 = vadd.f32 %v2040_v63, %v1711_v62  ;;  %v6756_v42 = vpack.c.bf16 %v1188_v31, %v1186_v13 }
 0x23c   : > { %v5051_v23 = vadd.f32 %v6258_v40, %v2199_v34  ;;  %v4862_v47 = vadd.f32 %v6258_v40, %v2041_v5  ;;  %v6758_v34 = vpack.c.bf16 %v1316_v15, %v1314_v7  ;;  %v6762_v5 = vpack.c.bf16 %v1317_v55, %v1315_v17 }
 0x23e   : > { %5435 = vst [vmem:[%s6269_s19 + $0xa20] sm:$0xff] %v5051_v23  ;;  %v1871_v1 = vpop.f32.mrf.mxu2  ;;  %v6760_v23 = vpack.c.bf16 %v1189_v59, %v1187_v39 }
 0x23f   : > { %5246 = vst [vmem:[%s6269_s19 + $0x438] sm:$0xff] %v4862_v47 }
 0x240   : > { %v1714_v63 = vpop.f32.mrf.mxu0 }
 0x241   : > { %v2200_v29 = vpop.f32.mrf.mxu3  ;;  %v2043_v56 = vpop.f32.mrf.mxu1 }
 0x242   : > { %v2201_v62 = vadd.f32 %v2200_v29, %v1871_v1  ;;  %v2044_v3 = vadd.f32 %v2043_v56, %v1714_v63 }
 0x243   : > { %1753 = vmatmul.bf16.gmra.mxu0 %v6756_v42  ;;  %1913 = vmatmul.bf16.gmra.mxu2 %v6758_v34 }
 0x244   : > { %v5054_v10 = vadd.f32 %v6258_v40, %v2201_v62  ;;  %v4865_v13 = vadd.f32 %v6258_v40, %v2044_v3  ;;  %2082 = vmatmul.bf16.gmra.mxu1 %v6760_v23 }
 0x246   : > { %5438 = vst [vmem:[%s6269_s19 + $0xa38] sm:$0xff] %v5054_v10  ;;  %2242 = vmatmul.bf16.gmra.mxu3 %v6762_v5  ;;  %v1874_v1 = vpop.f32.mrf.mxu2 }
 0x247   : > { %5249 = vst [vmem:[%s6269_s19 + $0x450] sm:$0xff] %v4865_v13 }
 0x248   : > { %v1716_v7 = vpop.f32.mrf.mxu0 }
 0x249   : > { %v2203_v31 = vpop.f32.mrf.mxu3  ;;  %v2045_v15 = vpop.f32.mrf.mxu1 }
 0x24a   : > { %v2204_v47 = vadd.f32 %v2203_v31, %v1874_v1  ;;  %v2046_v39 = vadd.f32 %v2045_v15, %v1716_v7 }
 0x24c   : > { %v5057_v56 = vadd.f32 %v6258_v40, %v2204_v47  ;;  %v4868_v10 = vadd.f32 %v6258_v40, %v2046_v39 }
 0x24e   : > { %5441 = vst [vmem:[%s6269_s19 + $0xa50] sm:$0xff] %v5057_v56  ;;  %v1876_v3 = vpop.f32.mrf.mxu2 }
 0x24f   : > { %5252 = vst [vmem:[%s6269_s19 + $0x468] sm:$0xff] %v4868_v10 }
 0x250   : > { %v1719_v55 = vpop.f32.mrf.mxu0 }
 0x251   : > { %v2205_v59 = vpop.f32.mrf.mxu3  ;;  %v2048_v29 = vpop.f32.mrf.mxu1 }
 0x252   : > { %v2206_v17 = vadd.f32 %v2205_v59, %v1876_v3  ;;  %v2049_v63 = vadd.f32 %v2048_v29, %v1719_v55 }
 0x253   : > { %2256 = vmatmul.bf16.vlgmr.msrb.gmra.mxu2 %v6137_v2  ;;  %2914 = vmatmul.bf16.vlgmr.msrb.gmra.mxu0 %v6137_v2 }
 0x254   : > { %v5060_v62 = vadd.f32 %v6258_v40, %v2206_v17  ;;  %v4871_v13 = vadd.f32 %v6258_v40, %v2049_v63  ;;  %3243 = vmatmul.bf16.vlgmr.msrb.gmra.mxu1 %v6141_v4 }
 0x256   : > { %5444 = vst [vmem:[%s6269_s19 + $0xa68] sm:$0xff] %v5060_v62  ;;  %2585 = vmatmul.bf16.vlgmr.msrb.gmra.mxu3 %v6141_v4  ;;  %v1879_v1 = vpop.f32.mrf.mxu2 }
 0x257   : > { %5255 = vst [vmem:[%s6269_s19 + $0x480] sm:$0xff] %v4871_v13 }
 0x258   : > { %v1721_v7 = vpop.f32.mrf.mxu0 }
 0x259   : > { %v2208_v31 = vpop.f32.mrf.mxu3  ;;  %v2050_v15 = vpop.f32.mrf.mxu1 }
 0x25a   : > { %v2209_v47 = vadd.f32 %v2208_v31, %v1879_v1  ;;  %v2051_v39 = vadd.f32 %v2050_v15, %v1721_v7 }
 0x25c   : > { %v5063_v56 = vadd.f32 %v6258_v40, %v2209_v47  ;;  %v4874_v2 = vadd.f32 %v6258_v40, %v2051_v39 }
 0x25e   : > { %5447 = vst [vmem:[%s6269_s19 + $0xa80] sm:$0xff] %v5063_v56  ;;  %v1881_v10 = vpop.f32.mrf.mxu2 }
 0x25f   : > { %5258 = vst [vmem:[%s6269_s19 + $0x498] sm:$0xff] %v4874_v2 }
 0x260   : > { %v1724_v17 = vpop.f32.mrf.mxu0 }
 0x261   : > { %v2210_v3 = vpop.f32.mrf.mxu3  ;;  %v2053_v4 = vpop.f32.mrf.mxu1 }
 0x262   : > { %v2211_v59 = vadd.f32 %v2210_v3, %v1881_v10  ;;  %v2054_v29 = vadd.f32 %v2053_v4, %v1724_v17 }
 0x263   : > { %2261 = vmatmul.bf16.gmra.mxu2 %v6149_v16  ;;  %2919 = vmatmul.bf16.gmra.mxu0 %v6149_v16 }
 0x264   : > { %v5066_v55 = vadd.f32 %v6258_v40, %v2211_v59  ;;  %v4877_v62 = vadd.f32 %v6258_v40, %v2054_v29  ;;  %3248 = vmatmul.bf16.gmra.mxu1 %v6153_v18 }
 0x266   : > { %5450 = vst [vmem:[%s6269_s19 + $0xa98] sm:$0xff] %v5066_v55  ;;  %2590 = vmatmul.bf16.gmra.mxu3 %v6153_v18  ;;  %v1884_v63 = vpop.f32.mrf.mxu2 }
 0x267   : > { %5261 = vst [vmem:[%s6269_s19 + $0x4b0] sm:$0xff] %v4877_v62 }
 0x268   : > { %v1726_v31 = vpop.f32.mrf.mxu0 }
 0x269   : > { %v2213_v13 = vpop.f32.mrf.mxu3  ;;  %v2055_v47 = vpop.f32.mrf.mxu1 }
 0x26a   : > { %v2214_v1 = vadd.f32 %v2213_v13, %v1884_v63  ;;  %v2056_v15 = vadd.f32 %v2055_v47, %v1726_v31 }
 0x26c   : > { %v5069_v7 = vadd.f32 %v6258_v40, %v2214_v1  ;;  %v4880_v16 = vadd.f32 %v6258_v40, %v2056_v15 }
 0x26e   : > { %5453 = vst [vmem:[%s6269_s19 + $0xab0] sm:$0xff] %v5069_v7  ;;  %v1886_v56 = vpop.f32.mrf.mxu2 }
 0x26f   : > { %5264 = vst [vmem:[%s6269_s19 + $0x4c8] sm:$0xff] %v4880_v16 }
 0x270   : > { %v1729_v10 = vpop.f32.mrf.mxu0 }
 0x271   : > { %v2215_v39 = vpop.f32.mrf.mxu3  ;;  %v2058_v18 = vpop.f32.mrf.mxu1 }
 0x272   : > { %v2216_v2 = vadd.f32 %v2215_v39, %v1886_v56  ;;  %v2059_v59 = vadd.f32 %v2058_v18, %v1729_v10 }
 0x273   : > { %2266 = vmatmul.bf16.gmra.mxu2 %v6161_v28  ;;  %2924 = vmatmul.bf16.gmra.mxu0 %v6161_v28 }
 0x274   : > { %v5072_v3 = vadd.f32 %v6258_v40, %v2216_v2  ;;  %v4883_v17 = vadd.f32 %v6258_v40, %v2059_v59  ;;  %3253 = vmatmul.bf16.gmra.mxu1 %v6165_v30 }
 0x276   : > { %5456 = vst [vmem:[%s6269_s19 + $0xac8] sm:$0xff] %v5072_v3  ;;  %2595 = vmatmul.bf16.gmra.mxu3 %v6165_v30  ;;  %v1889_v4 = vpop.f32.mrf.mxu2 }
 0x277   : > { %5267 = vst [vmem:[%s6269_s19 + $0x4e0] sm:$0xff] %v4883_v17 }
 0x278   : > { %v1731_v62 = vpop.f32.mrf.mxu0 }
 0x279   : > { %v2218_v55 = vpop.f32.mrf.mxu3  ;;  %v2060_v63 = vpop.f32.mrf.mxu1 }
 0x27a   : > { %v2219_v29 = vadd.f32 %v2218_v55, %v1889_v4  ;;  %v2061_v1 = vadd.f32 %v2060_v63, %v1731_v62 }
 0x27c   : > { %v5075_v13 = vadd.f32 %v6258_v40, %v2219_v29  ;;  %v4886_v28 = vadd.f32 %v6258_v40, %v2061_v1 }
 0x27e   : > { %5459 = vst [vmem:[%s6269_s19 + $0xae0] sm:$0xff] %v5075_v13  ;;  %v1891_v31 = vpop.f32.mrf.mxu2 }
 0x27f   : > { %5270 = vst [vmem:[%s6269_s19 + $0x4f8] sm:$0xff] %v4886_v28 }
 0x280   : > { %v1734_v15 = vpop.f32.mrf.mxu0 }
 0x281   : > { %v2220_v47 = vpop.f32.mrf.mxu3  ;;  %v2063_v30 = vpop.f32.mrf.mxu1 }
 0x282   : > { %v2221_v7 = vadd.f32 %v2220_v47, %v1891_v31  ;;  %v2064_v56 = vadd.f32 %v2063_v30, %v1734_v15 }
 0x283   : > { %2271 = vmatmul.bf16.gmra.mxu2 %v6181_v52  ;;  %2929 = vmatmul.bf16.gmra.mxu0 %v6181_v52 }
 0x284   : > { %v5078_v16 = vadd.f32 %v6258_v40, %v2221_v7  ;;  %v4889_v39 = vadd.f32 %v6258_v40, %v2064_v56  ;;  %3258 = vmatmul.bf16.gmra.mxu1 %v6185_v54 }
 0x286   : > { %5462 = vst [vmem:[%s6269_s19 + $0xaf8] sm:$0xff] %v5078_v16  ;;  %2600 = vmatmul.bf16.gmra.mxu3 %v6185_v54  ;;  %v1894_v2 = vpop.f32.mrf.mxu2 }
 0x287   : > { %5273 = vst [vmem:[%s6269_s19 + $0x510] sm:$0xff] %v4889_v39 }
 0x288   : > { %v1736_v3 = vpop.f32.mrf.mxu0 }
 0x289   : > { %v2223_v10 = vpop.f32.mrf.mxu3  ;;  %v2065_v59 = vpop.f32.mrf.mxu1 }
 0x28a   : > { %v2224_v18 = vadd.f32 %v2223_v10, %v1894_v2  ;;  %v2066_v4 = vadd.f32 %v2065_v59, %v1736_v3 }
 0x28c   : > { %v5081_v17 = vadd.f32 %v6258_v40, %v2224_v18  ;;  %v4892_v52 = vadd.f32 %v6258_v40, %v2066_v4 }
 0x28e   : > { %5465 = vst [vmem:[%s6269_s19 + $0xb10] sm:$0xff] %v5081_v17  ;;  %v1896_v55 = vpop.f32.mrf.mxu2 }
 0x28f   : > { %5276 = vst [vmem:[%s6269_s19 + $0x528] sm:$0xff] %v4892_v52 }
 0x290   : > { %v1739_v63 = vpop.f32.mrf.mxu0 }
 0x291   : > { %v2225_v29 = vpop.f32.mrf.mxu3  ;;  %v2068_v54 = vpop.f32.mrf.mxu1 }
 0x292   : > { %v2226_v62 = vadd.f32 %v2225_v29, %v1896_v55  ;;  %v2069_v1 = vadd.f32 %v2068_v54, %v1739_v63 }
 0x293   : > { %2276 = vmatmul.bf16.gmra.mxu2 %v6193_v0  ;;  %2934 = vmatmul.bf16.gmra.mxu0 %v6193_v0 }
 0x294   : > { %v5084_v13 = vadd.f32 %v6258_v40, %v2226_v62  ;;  %v4895_v28 = vadd.f32 %v6258_v40, %v2069_v1  ;;  %3263 = vmatmul.bf16.gmra.mxu1 %v6197_v6 }
 0x296   : > { %5468 = vst [vmem:[%s6269_s19 + $0xb28] sm:$0xff] %v5084_v13  ;;  %2605 = vmatmul.bf16.gmra.mxu3 %v6197_v6  ;;  %v1899_v31 = vpop.f32.mrf.mxu2 }
 0x297   : > { %5279 = vst [vmem:[%s6269_s19 + $0x540] sm:$0xff] %v4895_v28 }
 0x298   : > { %v1741_v15 = vpop.f32.mrf.mxu0 }
 0x299   : > { %v2228_v47 = vpop.f32.mrf.mxu3  ;;  %v2070_v30 = vpop.f32.mrf.mxu1 }
 0x29a   : > { %v2229_v7 = vadd.f32 %v2228_v47, %v1899_v31  ;;  %v2071_v56 = vadd.f32 %v2070_v30, %v1741_v15 }
 0x29c   : > { %v5087_v16 = vadd.f32 %v6258_v40, %v2229_v7  ;;  %v4898_v0 = vadd.f32 %v6258_v40, %v2071_v56 }
 0x29e   : > { %5471 = vst [vmem:[%s6269_s19 + $0xb40] sm:$0xff] %v5087_v16  ;;  %v1901_v39 = vpop.f32.mrf.mxu2 }
 0x29f   : > { %5282 = vst [vmem:[%s6269_s19 + $0x558] sm:$0xff] %v4898_v0 }
 0x2a0   : > { %v1744_v18 = vpop.f32.mrf.mxu0 }
 0x2a1   : > { %v2230_v2 = vpop.f32.mrf.mxu3  ;;  %v2073_v6 = vpop.f32.mrf.mxu1 }
 0x2a2   : > { %v2231_v10 = vadd.f32 %v2230_v2, %v1901_v39  ;;  %v2074_v59 = vadd.f32 %v2073_v6, %v1744_v18 }
 0x2a3   : > { %2281 = vmatmul.bf16.gmra.mxu2 %v6205_v20  ;;  %2939 = vmatmul.bf16.gmra.mxu0 %v6205_v20 }
 0x2a4   : > { %v5090_v3 = vadd.f32 %v6258_v40, %v2231_v10  ;;  %v4901_v17 = vadd.f32 %v6258_v40, %v2074_v59  ;;  %3268 = vmatmul.bf16.gmra.mxu1 %v6209_v22 }
 0x2a6   : > { %5474 = vst [vmem:[%s6269_s19 + $0xb58] sm:$0xff] %v5090_v3  ;;  %2610 = vmatmul.bf16.gmra.mxu3 %v6209_v22  ;;  %v1904_v4 = vpop.f32.mrf.mxu2 }
 0x2a7   : > { %5285 = vst [vmem:[%s6269_s19 + $0x570] sm:$0xff] %v4901_v17 }
 0x2a8   : > { %v1746_v29 = vpop.f32.mrf.mxu0 }
 0x2a9   : > { %v2233_v52 = vpop.f32.mrf.mxu3  ;;  %v2075_v62 = vpop.f32.mrf.mxu1 }
 0x2aa   : > { %v2234_v55 = vadd.f32 %v2233_v52, %v1904_v4  ;;  %v2076_v54 = vadd.f32 %v2075_v62, %v1746_v29 }
 0x2ac   : > { %v5093_v63 = vadd.f32 %v6258_v40, %v2234_v55  ;;  %v4904_v20 = vadd.f32 %v6258_v40, %v2076_v54 }
 0x2ae   : > { %5477 = vst [vmem:[%s6269_s19 + $0xb70] sm:$0xff] %v5093_v63  ;;  %v1906_v13 = vpop.f32.mrf.mxu2 }
 0x2af   : > { %5288 = vst [vmem:[%s6269_s19 + $0x588] sm:$0xff] %v4904_v20 }
 0x2b0   : > { %v1749_v31 = vpop.f32.mrf.mxu0 }
 0x2b1   : > { %v2235_v1 = vpop.f32.mrf.mxu3  ;;  %v2078_v22 = vpop.f32.mrf.mxu1 }
 0x2b2   : > { %v2236_v28 = vadd.f32 %v2235_v1, %v1906_v13  ;;  %v2079_v7 = vadd.f32 %v2078_v22, %v1749_v31  ;;  %v5761_v22 = vld [vmem:[%s6250_s6] sm:$0x7] }
 0x2b3   : > { %2286 = vmatmul.bf16.gmra.mxu2 %v6217_v36  ;;  %2944 = vmatmul.bf16.gmra.mxu0 %v6217_v36 }
 0x2b4   : > { %v5096_v47 = vadd.f32 %v6258_v40, %v2236_v28  ;;  %v4907_v15 = vadd.f32 %v6258_v40, %v2079_v7  ;;  %3273 = vmatmul.bf16.gmra.mxu1 %v6221_v38 }
 0x2b6   : > { %5480 = vst [vmem:[%s6269_s19 + $0xb88] sm:$0xff] %v5096_v47  ;;  %2615 = vmatmul.bf16.gmra.mxu3 %v6221_v38  ;;  %v1909_v30 = vpop.f32.mrf.mxu2  ;;  %v6873_v47 = vperm.slane %v5761_v22, 2 }
 0x2b7   : > { %5291 = vst [vmem:[%s6269_s19 + $0x5a0] sm:$0xff] %v4907_v15 }
 0x2b8   : > { %v1751_v0 = vpop.f32.mrf.mxu0 }
 0x2b9   : > { %v2238_v16 = vpop.f32.mrf.mxu3  ;;  %v2080_v39 = vpop.f32.mrf.mxu1 }
 0x2ba   : > { %v2239_v56 = vadd.f32 %v2238_v16, %v1909_v30  ;;  %v2081_v10 = vadd.f32 %v2080_v39, %v1751_v0  ;;  %v6883_v0 = vperm.slane %v5761_v22, 1 }
 0x2bc   : > { %v5099_v2 = vadd.f32 %v6258_v40, %v2239_v56  ;;  %v4910_v36 = vadd.f32 %v6258_v40, %v2081_v10 }
 0x2be   : > { %5483 = vst [vmem:[%s6269_s19 + $0xba0] sm:$0xff] %v5099_v2  ;;  %v1911_v18 = vpop.f32.mrf.mxu2 }
 0x2bf   : > { %5294 = vst [vmem:[%s6269_s19 + $0x5b8] sm:$0xff] %v4910_v36 }
 0x2c0   : > { %v1754_v59 = vpop.f32.mrf.mxu0 }
 0x2c1   : > { %v2240_v6 = vpop.f32.mrf.mxu3  ;;  %v2083_v38 = vpop.f32.mrf.mxu1 }
 0x2c2   : > { %v2241_v3 = vadd.f32 %v2240_v6, %v1911_v18  ;;  %v2084_v4 = vadd.f32 %v2083_v38, %v1754_v59 }
 0x2c3   : > { %2291 = vmatmul.bf16.gmra.mxu2 %v6236_v61  ;;  %2949 = vmatmul.bf16.gmra.mxu0 %v6236_v61 }
 0x2c4   : > { %v5102_v17 = vadd.f32 %v6258_v40, %v2241_v3  ;;  %v4913_v52 = vadd.f32 %v6258_v40, %v2084_v4  ;;  %3278 = vmatmul.bf16.gmra.mxu1 %v6241_v9 }
 0x2c6   : > { %5486 = vst [vmem:[%s6269_s19 + $0xbb8] sm:$0xff] %v5102_v17  ;;  %2620 = vmatmul.bf16.gmra.mxu3 %v6241_v9  ;;  %v1914_v55 = vpop.f32.mrf.mxu2 }
 0x2c7   : > { %5297 = vst [vmem:[%s6269_s19 + $0x5d0] sm:$0xff] %v4913_v52 }
 0x2c8   : > { %v1756_v63 = vpop.f32.mrf.mxu0 }
 0x2c9   : > { %v2243_v29 = vpop.f32.mrf.mxu3  ;;  %v2085_v54 = vpop.f32.mrf.mxu1 }
 0x2ca   : > { %v2244_v62 = vadd.f32 %v2243_v29, %v1914_v55  ;;  %v2086_v13 = vadd.f32 %v2085_v54, %v1756_v63 }
 0x2cc   : > { %v5105_v20 = vadd.f32 %v6258_v40, %v2244_v62  ;;  %v4916_v61 = vadd.f32 %v6258_v40, %v2086_v13 }
 0x2ce   : > { %5489 = vst [vmem:[%s6269_s19 + $0xbd0] sm:$0xff] %v5105_v20  ;;  %v1916_v1 = vpop.f32.mrf.mxu2 }
 0x2cf   : > { %5300 = vst [vmem:[%s6269_s19 + $0x5e8] sm:$0xff] %v4916_v61 }
 0x2d0   : > { %v2915_v9 = vpop.f32.mrf.mxu0 }
 0x2d1   : > { %v2245_v28 = vpop.f32.mrf.mxu3  ;;  %v3244_v7 = vpop.f32.mrf.mxu1 }
 0x2d2   : > { %v2246_v31 = vadd.f32 %v2245_v28, %v1916_v1  ;;  %v3245_v30 = vadd.f32 %v3244_v7, %v2915_v9 }
 0x2d3   : > { %2296 = vmatmul.bf16.gmra.mxu2 %v6254_v33  ;;  %2954 = vmatmul.bf16.gmra.mxu0 %v6254_v33 }
 0x2d4   : > { %v5108_v15 = vadd.f32 %v6258_v40, %v2246_v31  ;;  %v4729_v16 = vadd.f32 %v6873_v47, %v3245_v30  ;;  %3283 = vmatmul.bf16.gmra.mxu1 %v6260_v41 }
 0x2d6   : > { %5492 = vst [vmem:[%s6269_s19 + $0xbe8] sm:$0xff] %v5108_v15  ;;  %2625 = vmatmul.bf16.gmra.mxu3 %v6260_v41  ;;  %v2257_v56 = vpop.f32.mrf.mxu2 }
 0x2d7   : > { %5113 = vst [vmem:[%s6269_s19 + $0x10] sm:$0xff] %v4729_v16 }
 0x2d8   : > { %v2917_v2 = vpop.f32.mrf.mxu0 }
 0x2d9   : > { %v2586_v39 = vpop.f32.mrf.mxu3  ;;  %v3246_v10 = vpop.f32.mrf.mxu1 }
 0x2da   : > { %v2587_v40 = vadd.f32 %v2586_v39, %v2257_v56  ;;  %v3247_v33 = vadd.f32 %v3246_v10, %v2917_v2 }
 0x2dc   : > { %v4728_v36 = vadd.f32 %v6883_v0, %v2587_v40  ;;  %v4732_v18 = vadd.f32 %v6873_v47, %v3247_v33 }
 0x2de   : > { %5112 = vst [vmem:[%s6269_s19 + $0x8] sm:$0xff] %v4728_v36  ;;  %v2259_v6 = vpop.f32.mrf.mxu2 }
 0x2df   : > { %5116 = vst [vmem:[%s6269_s19 + $0x28] sm:$0xff] %v4732_v18 }
 0x2e0   : > { %v2920_v59 = vpop.f32.mrf.mxu0 }
 0x2e1   : > { %v2588_v3 = vpop.f32.mrf.mxu3  ;;  %v3249_v38 = vpop.f32.mrf.mxu1 }
 0x2e2   : > { %v2589_v41 = vadd.f32 %v2588_v3, %v2259_v6  ;;  %v3250_v4 = vadd.f32 %v3249_v38, %v2920_v59 }
 0x2e3   : > { %2301 = vmatmul.bf16.gmra.mxu2 %v6276_v24  ;;  %2959 = vmatmul.bf16.gmra.mxu0 %v6276_v24 }
 0x2e4   : > { %v4731_v17 = vadd.f32 %v6883_v0, %v2589_v41  ;;  %v4735_v52 = vadd.f32 %v6873_v47, %v3250_v4  ;;  %3288 = vmatmul.bf16.gmra.mxu1 %v6280_v32 }
 0x2e6   : > { %5115 = vst [vmem:[%s6269_s19 + $0x20] sm:$0xff] %v4731_v17  ;;  %2630 = vmatmul.bf16.gmra.mxu3 %v6280_v32  ;;  %v2262_v55 = vpop.f32.mrf.mxu2 }
 0x2e7   : > { %5119 = vst [vmem:[%s6269_s19 + $0x40] sm:$0xff] %v4735_v52 }
 0x2e8   : > { %v2922_v63 = vpop.f32.mrf.mxu0 }
 0x2e9   : > { %v2591_v29 = vpop.f32.mrf.mxu3  ;;  %v3251_v54 = vpop.f32.mrf.mxu1 }
 0x2ea   : > { %v2592_v62 = vadd.f32 %v2591_v29, %v2262_v55  ;;  %v3252_v13 = vadd.f32 %v3251_v54, %v2922_v63 }
 0x2ec   : > { %v4734_v20 = vadd.f32 %v6883_v0, %v2592_v62  ;;  %v4738_v24 = vadd.f32 %v6873_v47, %v3252_v13 }
 0x2ee   : > { %5118 = vst [vmem:[%s6269_s19 + $0x38] sm:$0xff] %v4734_v20  ;;  %v2264_v61 = vpop.f32.mrf.mxu2 }
 0x2ef   : > { %5122 = vst [vmem:[%s6269_s19 + $0x58] sm:$0xff] %v4738_v24 }
 0x2f0   : > { %v2925_v31 = vpop.f32.mrf.mxu0 }
 0x2f1   : > { %v2593_v1 = vpop.f32.mrf.mxu3  ;;  %v3254_v32 = vpop.f32.mrf.mxu1 }
 0x2f2   : > { %v2594_v28 = vadd.f32 %v2593_v1, %v2264_v61  ;;  %v3255_v22 = vadd.f32 %v3254_v32, %v2925_v31 }
 0x2f3   : > { %2306 = vmatmul.bf16.gmra.mxu2 %v6296_v27  ;;  %2964 = vmatmul.bf16.gmra.mxu0 %v6296_v27 }
 0x2f4   : > { %v4737_v9 = vadd.f32 %v6883_v0, %v2594_v28  ;;  %v4741_v7 = vadd.f32 %v6873_v47, %v3255_v22  ;;  %3293 = vmatmul.bf16.gmra.mxu1 %v6300_v46 }
 0x2f6   : > { %5121 = vst [vmem:[%s6269_s19 + $0x50] sm:$0xff] %v4737_v9  ;;  %2635 = vmatmul.bf16.gmra.mxu3 %v6300_v46  ;;  %v2267_v15 = vpop.f32.mrf.mxu2 }
 0x2f7   : > { %5125 = vst [vmem:[%s6269_s19 + $0x70] sm:$0xff] %v4741_v7 }
 0x2f8   : > { %v2927_v56 = vpop.f32.mrf.mxu0 }
 0x2f9   : > { %v2596_v30 = vpop.f32.mrf.mxu3  ;;  %v3256_v39 = vpop.f32.mrf.mxu1 }
 0x2fa   : > { %v2597_v16 = vadd.f32 %v2596_v30, %v2267_v15  ;;  %v3257_v2 = vadd.f32 %v3256_v39, %v2927_v56 }
 0x2fc   : > { %v4740_v40 = vadd.f32 %v6883_v0, %v2597_v16  ;;  %v4744_v27 = vadd.f32 %v6873_v47, %v3257_v2 }
 0x2fe   : > { %5124 = vst [vmem:[%s6269_s19 + $0x68] sm:$0xff] %v4740_v40  ;;  %v2269_v10 = vpop.f32.mrf.mxu2 }
 0x2ff   : > { %5128 = vst [vmem:[%s6269_s19 + $0x88] sm:$0xff] %v4744_v27 }
 0x300   : > { %v2930_v18 = vpop.f32.mrf.mxu0 }
 0x301   : > { %v2598_v36 = vpop.f32.mrf.mxu3  ;;  %v3259_v46 = vpop.f32.mrf.mxu1 }
 0x302   : > { %v2599_v33 = vadd.f32 %v2598_v36, %v2269_v10  ;;  %v3260_v3 = vadd.f32 %v3259_v46, %v2930_v18 }
 0x303   : > { %2311 = vmatmul.bf16.gmra.mxu2 %v6323_v12  ;;  %2969 = vmatmul.bf16.gmra.mxu0 %v6323_v12 }
 0x304   : > { %v4743_v6 = vadd.f32 %v6883_v0, %v2599_v33  ;;  %v4747_v41 = vadd.f32 %v6873_v47, %v3260_v3  ;;  %3298 = vmatmul.bf16.gmra.mxu1 %v6328_v43 }
 0x306   : > { %5127 = vst [vmem:[%s6269_s19 + $0x80] sm:$0xff] %v4743_v6  ;;  %2640 = vmatmul.bf16.gmra.mxu3 %v6328_v43  ;;  %v2272_v59 = vpop.f32.mrf.mxu2 }
 0x307   : > { %5131 = vst [vmem:[%s6269_s19 + $0xa0] sm:$0xff] %v4747_v41 }
 0x308   : > { %v2932_v4 = vpop.f32.mrf.mxu0 }
 0x309   : > { %v2601_v38 = vpop.f32.mrf.mxu3  ;;  %v3261_v52 = vpop.f32.mrf.mxu1 }
 0x30a   : > { %v2602_v17 = vadd.f32 %v2601_v38, %v2272_v59  ;;  %v3262_v29 = vadd.f32 %v3261_v52, %v2932_v4 }
 0x30c   : > { %v4746_v55 = vadd.f32 %v6883_v0, %v2602_v17  ;;  %v4750_v12 = vadd.f32 %v6873_v47, %v3262_v29 }
 0x30e   : > { %5130 = vst [vmem:[%s6269_s19 + $0x98] sm:$0xff] %v4746_v55  ;;  %v2274_v62 = vpop.f32.mrf.mxu2 }
 0x30f   : > { %5134 = vst [vmem:[%s6269_s19 + $0xb8] sm:$0xff] %v4750_v12 }
 0x310   : > { %v2935_v20 = vpop.f32.mrf.mxu0 }
 0x311   : > { %v2603_v63 = vpop.f32.mrf.mxu3  ;;  %v3264_v43 = vpop.f32.mrf.mxu1 }
 0x312   : > { %v2604_v54 = vadd.f32 %v2603_v63, %v2274_v62  ;;  %v3265_v24 = vadd.f32 %v3264_v43, %v2935_v20 }
 0x313   : > { %2316 = vmatmul.bf16.gmra.mxu2 %v6344_v26  ;;  %2974 = vmatmul.bf16.gmra.mxu0 %v6344_v26 }
 0x314   : > { %v4749_v13 = vadd.f32 %v6883_v0, %v2604_v54  ;;  %v4753_v61 = vadd.f32 %v6873_v47, %v3265_v24  ;;  %3303 = vmatmul.bf16.gmra.mxu1 %v6348_v49 }
 0x316   : > { %5133 = vst [vmem:[%s6269_s19 + $0xb0] sm:$0xff] %v4749_v13  ;;  %2645 = vmatmul.bf16.gmra.mxu3 %v6348_v49  ;;  %v2277_v1 = vpop.f32.mrf.mxu2 }
 0x317   : > { %5137 = vst [vmem:[%s6269_s19 + $0xd0] sm:$0xff] %v4753_v61 }
 0x318   : > { %v2937_v32 = vpop.f32.mrf.mxu0 }
 0x319   : > { %v2606_v28 = vpop.f32.mrf.mxu3  ;;  %v3266_v9 = vpop.f32.mrf.mxu1 }
 0x31a   : > { %v2607_v31 = vadd.f32 %v2606_v28, %v2277_v1  ;;  %v3267_v7 = vadd.f32 %v3266_v9, %v2937_v32 }
 0x31c   : > { %v4752_v22 = vadd.f32 %v6883_v0, %v2607_v31  ;;  %v4756_v26 = vadd.f32 %v6873_v47, %v3267_v7 }
 0x31e   : > { %5136 = vst [vmem:[%s6269_s19 + $0xc8] sm:$0xff] %v4752_v22  ;;  %v2279_v15 = vpop.f32.mrf.mxu2 }
 0x31f   : > { %5140 = vst [vmem:[%s6269_s19 + $0xe8] sm:$0xff] %v4756_v26 }
 0x320   : > { %v2940_v56 = vpop.f32.mrf.mxu0 }
 0x321   : > { %v2608_v30 = vpop.f32.mrf.mxu3  ;;  %v3269_v49 = vpop.f32.mrf.mxu1 }
 0x322   : > { %v2609_v16 = vadd.f32 %v2608_v30, %v2279_v15  ;;  %v3270_v40 = vadd.f32 %v3269_v49, %v2940_v56 }
 0x323   : > { %2321 = vmatmul.bf16.gmra.mxu2 %v6364_v58  ;;  %2979 = vmatmul.bf16.gmra.mxu0 %v6364_v58 }
 0x324   : > { %v4755_v39 = vadd.f32 %v6883_v0, %v2609_v16  ;;  %v4759_v2 = vadd.f32 %v6873_v47, %v3270_v40  ;;  %3308 = vmatmul.bf16.gmra.mxu1 %v6368_v60 }
 0x326   : > { %5139 = vst [vmem:[%s6269_s19 + $0xe0] sm:$0xff] %v4755_v39  ;;  %2650 = vmatmul.bf16.gmra.mxu3 %v6368_v60  ;;  %v2282_v27 = vpop.f32.mrf.mxu2 }
 0x327   : > { %5143 = vst [vmem:[%s6269_s19 + $0x100] sm:$0xff] %v4759_v2 }
 0x328   : > { %v2942_v33 = vpop.f32.mrf.mxu0 }
 0x329   : > { %v2611_v10 = vpop.f32.mrf.mxu3  ;;  %v3271_v18 = vpop.f32.mrf.mxu1 }
 0x32a   : > { %v2612_v36 = vadd.f32 %v2611_v10, %v2282_v27  ;;  %v3272_v6 = vadd.f32 %v3271_v18, %v2942_v33 }
 0x32c   : > { %v4758_v46 = vadd.f32 %v6883_v0, %v2612_v36  ;;  %v4762_v58 = vadd.f32 %v6873_v47, %v3272_v6 }
 0x32e   : > { %5142 = vst [vmem:[%s6269_s19 + $0xf8] sm:$0xff] %v4758_v46  ;;  %v2284_v3 = vpop.f32.mrf.mxu2 }
 0x32f   : > { %5146 = vst [vmem:[%s6269_s19 + $0x118] sm:$0xff] %v4762_v58 }
 0x330   : > { %v2945_v38 = vpop.f32.mrf.mxu0 }
 0x331   : > { %v2613_v41 = vpop.f32.mrf.mxu3  ;;  %v3274_v60 = vpop.f32.mrf.mxu1 }
 0x332   : > { %v2614_v59 = vadd.f32 %v2613_v41, %v2284_v3  ;;  %v3275_v4 = vadd.f32 %v3274_v60, %v2945_v38 }
 0x333   : > { %2326 = vmatmul.bf16.gmra.mxu2 %v6384_v14  ;;  %2984 = vmatmul.bf16.gmra.mxu0 %v6384_v14 }
 0x334   : > { %v4761_v17 = vadd.f32 %v6883_v0, %v2614_v59  ;;  %v4765_v52 = vadd.f32 %v6873_v47, %v3275_v4  ;;  %3313 = vmatmul.bf16.gmra.mxu1 %v6388_v50 }
 0x336   : > { %5145 = vst [vmem:[%s6269_s19 + $0x110] sm:$0xff] %v4761_v17  ;;  %2655 = vmatmul.bf16.gmra.mxu3 %v6388_v50  ;;  %v2287_v55 = vpop.f32.mrf.mxu2 }
 0x337   : > { %5149 = vst [vmem:[%s6269_s19 + $0x130] sm:$0xff] %v4765_v52 }
 0x338   : > { %v2947_v62 = vpop.f32.mrf.mxu0 }
 0x339   : > { %v2616_v29 = vpop.f32.mrf.mxu3  ;;  %v3276_v63 = vpop.f32.mrf.mxu1 }
 0x33a   : > { %v2617_v12 = vadd.f32 %v2616_v29, %v2287_v55  ;;  %v3277_v20 = vadd.f32 %v3276_v63, %v2947_v62 }
 0x33c   : > { %v4764_v54 = vadd.f32 %v6883_v0, %v2617_v12  ;;  %v4768_v14 = vadd.f32 %v6873_v47, %v3277_v20 }
 0x33e   : > { %5148 = vst [vmem:[%s6269_s19 + $0x128] sm:$0xff] %v4764_v54  ;;  %v2289_v43 = vpop.f32.mrf.mxu2 }
 0x33f   : > { %5152 = vst [vmem:[%s6269_s19 + $0x148] sm:$0xff] %v4768_v14 }
 0x340   : > { %v2950_v61 = vpop.f32.mrf.mxu0 }
 0x341   : > { %v2618_v13 = vpop.f32.mrf.mxu3  ;;  %v3279_v50 = vpop.f32.mrf.mxu1 }
 0x342   : > { %v2619_v24 = vadd.f32 %v2618_v13, %v2289_v43  ;;  %v3280_v28 = vadd.f32 %v3279_v50, %v2950_v61 }
 0x343   : > { %2331 = vmatmul.bf16.gmra.mxu2 %v6411_v44  ;;  %2989 = vmatmul.bf16.gmra.mxu0 %v6411_v44 }
 0x344   : > { %v4767_v1 = vadd.f32 %v6883_v0, %v2619_v24  ;;  %v4771_v31 = vadd.f32 %v6873_v47, %v3280_v28  ;;  %3318 = vmatmul.bf16.gmra.mxu1 %v6416_v37 }
 0x346   : > { %5151 = vst [vmem:[%s6269_s19 + $0x140] sm:$0xff] %v4767_v1  ;;  %2660 = vmatmul.bf16.gmra.mxu3 %v6416_v37  ;;  %v2292_v32 = vpop.f32.mrf.mxu2 }
 0x347   : > { %5155 = vst [vmem:[%s6269_s19 + $0x160] sm:$0xff] %v4771_v31 }
 0x348   : > { %v2952_v7 = vpop.f32.mrf.mxu0 }
 0x349   : > { %v2621_v9 = vpop.f32.mrf.mxu3  ;;  %v3281_v26 = vpop.f32.mrf.mxu1 }
 0x34a   : > { %v2622_v22 = vadd.f32 %v2621_v9, %v2292_v32  ;;  %v3282_v30 = vadd.f32 %v3281_v26, %v2952_v7 }
 0x34c   : > { %v4770_v15 = vadd.f32 %v6883_v0, %v2622_v22  ;;  %v4774_v44 = vadd.f32 %v6873_v47, %v3282_v30 }
 0x34e   : > { %5154 = vst [vmem:[%s6269_s19 + $0x158] sm:$0xff] %v4770_v15  ;;  %v2294_v16 = vpop.f32.mrf.mxu2 }
 0x34f   : > { %5158 = vst [vmem:[%s6269_s19 + $0x178] sm:$0xff] %v4774_v44 }
 0x350   : > { %v2955_v39 = vpop.f32.mrf.mxu0 }
 0x351   : > { %v2623_v56 = vpop.f32.mrf.mxu3  ;;  %v3284_v37 = vpop.f32.mrf.mxu1 }
 0x352   : > { %v2624_v49 = vadd.f32 %v2623_v56, %v2294_v16  ;;  %v3285_v2 = vadd.f32 %v3284_v37, %v2955_v39  ;;  %v7911_v37 = vld [vmem:[#allocation53_spill] sm:$0xff] }
 0x353   : > { %2336 = vmatmul.bf16.gmra.mxu2 %v6432_v45  ;;  %2994 = vmatmul.bf16.gmra.mxu0 %v6432_v45 }
 0x354   : > { %v4773_v40 = vadd.f32 %v6883_v0, %v2624_v49  ;;  %v4777_v27 = vadd.f32 %v6873_v47, %v3285_v2  ;;  %3323 = vmatmul.bf16.gmra.mxu1 %v6436_v48  ;;  %v7910_v49 = vld [vmem:[#allocation51_spill] sm:$0xff] }
 0x356   : > { %5157 = vst [vmem:[%s6269_s19 + $0x170] sm:$0xff] %v4773_v40  ;;  %2665 = vmatmul.bf16.gmra.mxu3 %v6436_v48  ;;  %v2297_v10 = vpop.f32.mrf.mxu2 }
 0x357   : > { %5161 = vst [vmem:[%s6269_s19 + $0x190] sm:$0xff] %v4777_v27 }
 0x358   : > { %v2957_v18 = vpop.f32.mrf.mxu0 }
 0x359   : > { %v2626_v36 = vpop.f32.mrf.mxu3  ;;  %v3286_v46 = vpop.f32.mrf.mxu1 }
 0x35a   : > { %v2627_v33 = vadd.f32 %v2626_v36, %v2297_v10  ;;  %v3287_v58 = vadd.f32 %v3286_v46, %v2957_v18 }
 0x35c   : > { %v4776_v6 = vadd.f32 %v6883_v0, %v2627_v33  ;;  %v4780_v45 = vadd.f32 %v6873_v47, %v3287_v58 }
 0x35e   : > { %5160 = vst [vmem:[%s6269_s19 + $0x188] sm:$0xff] %v4776_v6  ;;  %v2299_v3 = vpop.f32.mrf.mxu2 }
 0x35f   : > { %5164 = vst [vmem:[%s6269_s19 + $0x1a8] sm:$0xff] %v4780_v45 }
 0x360   : > { %v2960_v38 = vpop.f32.mrf.mxu0 }
 0x361   : > { %v2628_v41 = vpop.f32.mrf.mxu3  ;;  %v3289_v48 = vpop.f32.mrf.mxu1 }
 0x362   : > { %v2629_v59 = vadd.f32 %v2628_v41, %v2299_v3  ;;  %v3290_v17 = vadd.f32 %v3289_v48, %v2960_v38  ;;  %v7912_v48 = vld [vmem:[#allocation55_spill] sm:$0xff] }
 0x363   : > { %2341 = vmatmul.bf16.gmra.mxu2 %v6452_v35  ;;  %2999 = vmatmul.bf16.gmra.mxu0 %v6452_v35 }
 0x364   : > { %v4779_v60 = vadd.f32 %v6883_v0, %v2629_v59  ;;  %v4783_v4 = vadd.f32 %v6873_v47, %v3290_v17  ;;  %3328 = vmatmul.bf16.gmra.mxu1 %v6456_v57  ;;  %v7913_v17 = vld [vmem:[#allocation57_spill] sm:$0xff] }
 0x366   : > { %5163 = vst [vmem:[%s6269_s19 + $0x1a0] sm:$0xff] %v4779_v60  ;;  %2670 = vmatmul.bf16.gmra.mxu3 %v6456_v57  ;;  %v2302_v52 = vpop.f32.mrf.mxu2 }
 0x367   : > { %5167 = vst [vmem:[%s6269_s19 + $0x1c0] sm:$0xff] %v4783_v4 }
 0x368   : > { %v2962_v12 = vpop.f32.mrf.mxu0 }
 0x369   : > { %v2631_v55 = vpop.f32.mrf.mxu3  ;;  %v3291_v62 = vpop.f32.mrf.mxu1 }
 0x36a   : > { %v2632_v29 = vadd.f32 %v2631_v55, %v2302_v52  ;;  %v3292_v54 = vadd.f32 %v3291_v62, %v2962_v12 }
 0x36c   : > { %v4782_v63 = vadd.f32 %v6883_v0, %v2632_v29  ;;  %v4786_v35 = vadd.f32 %v6873_v47, %v3292_v54 }
 0x36e   : > { %5166 = vst [vmem:[%s6269_s19 + $0x1b8] sm:$0xff] %v4782_v63  ;;  %v2304_v20 = vpop.f32.mrf.mxu2 }
 0x36f   : > { %5170 = vst [vmem:[%s6269_s19 + $0x1d8] sm:$0xff] %v4786_v35 }
 0x370   : > { %v2965_v13 = vpop.f32.mrf.mxu0 }
 0x371   : > { %v2633_v14 = vpop.f32.mrf.mxu3  ;;  %v3294_v57 = vpop.f32.mrf.mxu1 }
 0x372   : > { %v2634_v43 = vadd.f32 %v2633_v14, %v2304_v20  ;;  %v3295_v61 = vadd.f32 %v3294_v57, %v2965_v13 }
 0x373   : > { %2346 = vmatmul.bf16.gmra.mxu2 %v6472_v8  ;;  %3004 = vmatmul.bf16.gmra.mxu0 %v6472_v8 }
 0x374   : > { %v4785_v24 = vadd.f32 %v6883_v0, %v2634_v43  ;;  %v4789_v50 = vadd.f32 %v6873_v47, %v3295_v61  ;;  %3333 = vmatmul.bf16.gmra.mxu1 %v6476_v25  ;;  %v7914_v61 = vld [vmem:[#allocation59_spill] sm:$0xff] }
 0x376   : > { %5169 = vst [vmem:[%s6269_s19 + $0x1d0] sm:$0xff] %v4785_v24  ;;  %2675 = vmatmul.bf16.gmra.mxu3 %v6476_v25  ;;  %v2307_v1 = vpop.f32.mrf.mxu2 }
 0x377   : > { %5173 = vst [vmem:[%s6269_s19 + $0x1f0] sm:$0xff] %v4789_v50 }
 0x378   : > { %v2967_v32 = vpop.f32.mrf.mxu0 }
 0x379   : > { %v2636_v28 = vpop.f32.mrf.mxu3  ;;  %v3296_v9 = vpop.f32.mrf.mxu1 }
 0x37a   : > { %v2637_v31 = vadd.f32 %v2636_v28, %v2307_v1  ;;  %v3297_v7 = vadd.f32 %v3296_v9, %v2967_v32  ;;  %v7915_v1 = vld [vmem:[#allocation61_spill] sm:$0xff] }
 0x37c   : > { %v4788_v22 = vadd.f32 %v6883_v0, %v2637_v31  ;;  %v4792_v8 = vadd.f32 %v6873_v47, %v3297_v7 }
 0x37e   : > { %5172 = vst [vmem:[%s6269_s19 + $0x1e8] sm:$0xff] %v4788_v22  ;;  %v2309_v26 = vpop.f32.mrf.mxu2 }
 0x37f   : > { %5176 = vst [vmem:[%s6269_s19 + $0x208] sm:$0xff] %v4792_v8 }
 0x380   : > { %v2970_v44 = vpop.f32.mrf.mxu0 }
 0x381   : > { %v2638_v15 = vpop.f32.mrf.mxu3  ;;  %v3299_v25 = vpop.f32.mrf.mxu1 }
 0x382   : > { %v2639_v30 = vadd.f32 %v2638_v15, %v2309_v26  ;;  %v3300_v56 = vadd.f32 %v3299_v25, %v2970_v44 }
 0x383   : > { %2351 = vmatmul.bf16.gmra.mxu2 %v7910_v49  ;;  %3009 = vmatmul.bf16.gmra.mxu0 %v7910_v49 }
 0x384   : > { %v4791_v16 = vadd.f32 %v6883_v0, %v2639_v30  ;;  %v4795_v39 = vadd.f32 %v6873_v47, %v3300_v56  ;;  %3338 = vmatmul.bf16.gmra.mxu1 %v7911_v37 }
 0x386   : > { %5175 = vst [vmem:[%s6269_s19 + $0x200] sm:$0xff] %v4791_v16  ;;  %2680 = vmatmul.bf16.gmra.mxu3 %v7911_v37  ;;  %v2312_v40 = vpop.f32.mrf.mxu2 }
 0x387   : > { %5179 = vst [vmem:[%s6269_s19 + $0x220] sm:$0xff] %v4795_v39  ;;  %v7916_v39 = vld [vmem:[#allocation63_spill] sm:$0xff] }
 0x388   : > { %v2972_v10 = vpop.f32.mrf.mxu0 }
 0x389   : > { %v2641_v2 = vpop.f32.mrf.mxu3  ;;  %v3301_v36 = vpop.f32.mrf.mxu1 }
 0x38a   : > { %v2642_v27 = vadd.f32 %v2641_v2, %v2312_v40  ;;  %v3302_v18 = vadd.f32 %v3301_v36, %v2972_v10  ;;  %v7917_v40 = vld [vmem:[#allocation65_spill] sm:$0xff] }
 0x38c   : > { %v4794_v33 = vadd.f32 %v6883_v0, %v2642_v27  ;;  %v4798_v46 = vadd.f32 %v6873_v47, %v3302_v18 }
 0x38e   : > { %5178 = vst [vmem:[%s6269_s19 + $0x218] sm:$0xff] %v4794_v33  ;;  %v2314_v6 = vpop.f32.mrf.mxu2 }
 0x38f   : > { %5182 = vst [vmem:[%s6269_s19 + $0x238] sm:$0xff] %v4798_v46 }
 0x390   : > { %v2975_v3 = vpop.f32.mrf.mxu0 }
 0x391   : > { %v2643_v58 = vpop.f32.mrf.mxu3  ;;  %v3304_v41 = vpop.f32.mrf.mxu1 }
 0x392   : > { %v2644_v45 = vadd.f32 %v2643_v58, %v2314_v6  ;;  %v3305_v38 = vadd.f32 %v3304_v41, %v2975_v3 }
 0x393   : > { %2356 = vmatmul.bf16.gmra.mxu2 %v7912_v48  ;;  %3014 = vmatmul.bf16.gmra.mxu0 %v7912_v48 }
 0x394   : > { %v4797_v59 = vadd.f32 %v6883_v0, %v2644_v45  ;;  %v4801_v60 = vadd.f32 %v6873_v47, %v3305_v38  ;;  %3343 = vmatmul.bf16.gmra.mxu1 %v7913_v17 }
 0x396   : > { %5181 = vst [vmem:[%s6269_s19 + $0x230] sm:$0xff] %v4797_v59  ;;  %2685 = vmatmul.bf16.gmra.mxu3 %v7913_v17  ;;  %v2317_v4 = vpop.f32.mrf.mxu2 }
 0x397   : > { %5185 = vst [vmem:[%s6269_s19 + $0x250] sm:$0xff] %v4801_v60  ;;  %v7918_v60 = vld [vmem:[#allocation67_spill] sm:$0xff] }
 0x398   : > { %v2977_v29 = vpop.f32.mrf.mxu0 }
 0x399   : > { %v2646_v52 = vpop.f32.mrf.mxu3  ;;  %v3306_v12 = vpop.f32.mrf.mxu1 }
 0x39a   : > { %v2647_v55 = vadd.f32 %v2646_v52, %v2317_v4  ;;  %v3307_v63 = vadd.f32 %v3306_v12, %v2977_v29  ;;  %v7919_v4 = vld [vmem:[#allocation69_spill] sm:$0xff] }
 0x39c   : > { %v4800_v62 = vadd.f32 %v6883_v0, %v2647_v55  ;;  %v4804_v54 = vadd.f32 %v6873_v47, %v3307_v63 }
 0x39e   : > { %5184 = vst [vmem:[%s6269_s19 + $0x248] sm:$0xff] %v4800_v62  ;;  %v2319_v35 = vpop.f32.mrf.mxu2 }
 0x39f   : > { %5188 = vst [vmem:[%s6269_s19 + $0x268] sm:$0xff] %v4804_v54 }
 0x3a0   : > { %v2980_v43 = vpop.f32.mrf.mxu0 }
 0x3a1   : > { %v2648_v20 = vpop.f32.mrf.mxu3  ;;  %v3309_v13 = vpop.f32.mrf.mxu1 }
 0x3a2   : > { %v2649_v14 = vadd.f32 %v2648_v20, %v2319_v35  ;;  %v3310_v24 = vadd.f32 %v3309_v13, %v2980_v43 }
 0x3a3   : > { %2361 = vmatmul.bf16.gmra.mxu2 %v7914_v61  ;;  %3019 = vmatmul.bf16.gmra.mxu0 %v7914_v61 }
 0x3a4   : > { %v4803_v57 = vadd.f32 %v6883_v0, %v2649_v14  ;;  %v4807_v50 = vadd.f32 %v6873_v47, %v3310_v24  ;;  %3348 = vmatmul.bf16.gmra.mxu1 %v7915_v1 }
 0x3a6   : > { %5187 = vst [vmem:[%s6269_s19 + $0x260] sm:$0xff] %v4803_v57  ;;  %2690 = vmatmul.bf16.gmra.mxu3 %v7915_v1  ;;  %v2322_v28 = vpop.f32.mrf.mxu2 }
 0x3a7   : > { %5191 = vst [vmem:[%s6269_s19 + $0x280] sm:$0xff] %v4807_v50  ;;  %v7920_v50 = vld [vmem:[#allocation71_spill] sm:$0xff] }
 0x3a8   : > { %v2982_v9 = vpop.f32.mrf.mxu0 }
 0x3a9   : > { %v2651_v31 = vpop.f32.mrf.mxu3  ;;  %v3311_v22 = vpop.f32.mrf.mxu1 }
 0x3aa   : > { %v2652_v32 = vadd.f32 %v2651_v31, %v2322_v28  ;;  %v3312_v8 = vadd.f32 %v3311_v22, %v2982_v9  ;;  %v7921_v28 = vld [vmem:[#allocation73_spill] sm:$0xff] }
 0x3ac   : > { %v4806_v7 = vadd.f32 %v6883_v0, %v2652_v32  ;;  %v4810_v26 = vadd.f32 %v6873_v47, %v3312_v8 }
 0x3ae   : > { %5190 = vst [vmem:[%s6269_s19 + $0x278] sm:$0xff] %v4806_v7  ;;  %v2324_v15 = vpop.f32.mrf.mxu2 }
 0x3af   : > { %5194 = vst [vmem:[%s6269_s19 + $0x298] sm:$0xff] %v4810_v26 }
 0x3b0   : > { %v2985_v25 = vpop.f32.mrf.mxu0 }
 0x3b1   : > { %v2653_v30 = vpop.f32.mrf.mxu3  ;;  %v3314_v16 = vpop.f32.mrf.mxu1 }
 0x3b2   : > { %v2654_v44 = vadd.f32 %v2653_v30, %v2324_v15  ;;  %v3315_v49 = vadd.f32 %v3314_v16, %v2985_v25 }
 0x3b3   : > { %2366 = vmatmul.bf16.gmra.mxu2 %v7916_v39  ;;  %3024 = vmatmul.bf16.gmra.mxu0 %v7916_v39 }
 0x3b4   : > { %v4809_v56 = vadd.f32 %v6883_v0, %v2654_v44  ;;  %v4813_v37 = vadd.f32 %v6873_v47, %v3315_v49  ;;  %3353 = vmatmul.bf16.gmra.mxu1 %v7917_v40 }
 0x3b6   : > { %5193 = vst [vmem:[%s6269_s19 + $0x290] sm:$0xff] %v4809_v56  ;;  %2695 = vmatmul.bf16.gmra.mxu3 %v7917_v40  ;;  %v2327_v2 = vpop.f32.mrf.mxu2 }
 0x3b7   : > { %5197 = vst [vmem:[%s6269_s19 + $0x2b0] sm:$0xff] %v4813_v37  ;;  %v7922_v37 = vld [vmem:[#allocation75_spill] sm:$0xff] }
 0x3b8   : > { %v2987_v36 = vpop.f32.mrf.mxu0 }
 0x3b9   : > { %v2656_v27 = vpop.f32.mrf.mxu3  ;;  %v3316_v33 = vpop.f32.mrf.mxu1 }
 0x3ba   : > { %v2657_v10 = vadd.f32 %v2656_v27, %v2327_v2  ;;  %v3317_v46 = vadd.f32 %v3316_v33, %v2987_v36  ;;  %v7923_v2 = vld [vmem:[#allocation77_spill] sm:$0xff] }
 0x3bc   : > { %v4812_v18 = vadd.f32 %v6883_v0, %v2657_v10  ;;  %v4816_v6 = vadd.f32 %v6873_v47, %v3317_v46 }
 0x3be   : > { %5196 = vst [vmem:[%s6269_s19 + $0x2a8] sm:$0xff] %v4812_v18  ;;  %v2329_v58 = vpop.f32.mrf.mxu2 }
 0x3bf   : > { %5200 = vst [vmem:[%s6269_s19 + $0x2c8] sm:$0xff] %v4816_v6 }
 0x3c0   : > { %v2990_v41 = vpop.f32.mrf.mxu0 }
 0x3c1   : > { %v2658_v45 = vpop.f32.mrf.mxu3  ;;  %v3319_v59 = vpop.f32.mrf.mxu1 }
 0x3c2   : > { %v2659_v3 = vadd.f32 %v2658_v45, %v2329_v58  ;;  %v3320_v48 = vadd.f32 %v3319_v59, %v2990_v41 }
 0x3c3   : > { %2371 = vmatmul.bf16.gmra.mxu2 %v7918_v60  ;;  %3029 = vmatmul.bf16.gmra.mxu0 %v7918_v60 }
 0x3c4   : > { %v4815_v38 = vadd.f32 %v6883_v0, %v2659_v3  ;;  %v4819_v17 = vadd.f32 %v6873_v47, %v3320_v48  ;;  %3358 = vmatmul.bf16.gmra.mxu1 %v7919_v4 }
 0x3c6   : > { %5199 = vst [vmem:[%s6269_s19 + $0x2c0] sm:$0xff] %v4815_v38  ;;  %2700 = vmatmul.bf16.gmra.mxu3 %v7919_v4  ;;  %v2332_v52 = vpop.f32.mrf.mxu2 }
 0x3c7   : > { %5203 = vst [vmem:[%s6269_s19 + $0x2e0] sm:$0xff] %v4819_v17  ;;  %v7924_v17 = vld [vmem:[#allocation79_spill] sm:$0xff] }
 0x3c8   : > { %v2992_v12 = vpop.f32.mrf.mxu0 }
 0x3c9   : > { %v2661_v55 = vpop.f32.mrf.mxu3  ;;  %v3321_v62 = vpop.f32.mrf.mxu1 }
 0x3ca   : > { %v2662_v29 = vadd.f32 %v2661_v55, %v2332_v52  ;;  %v3322_v54 = vadd.f32 %v3321_v62, %v2992_v12  ;;  %v7925_v52 = vld [vmem:[#allocation81_spill] sm:$0xff] }
 0x3cc   : > { %v4818_v63 = vadd.f32 %v6883_v0, %v2662_v29  ;;  %v4822_v35 = vadd.f32 %v6873_v47, %v3322_v54 }
 0x3ce   : > { %5202 = vst [vmem:[%s6269_s19 + $0x2d8] sm:$0xff] %v4818_v63  ;;  %v2334_v20 = vpop.f32.mrf.mxu2 }
 0x3cf   : > { %5206 = vst [vmem:[%s6269_s19 + $0x2f8] sm:$0xff] %v4822_v35 }
 0x3d0   : > { %v2995_v13 = vpop.f32.mrf.mxu0 }
 0x3d1   : > { %v2663_v14 = vpop.f32.mrf.mxu3  ;;  %v3324_v57 = vpop.f32.mrf.mxu1 }
 0x3d2   : > { %v2664_v43 = vadd.f32 %v2663_v14, %v2334_v20  ;;  %v3325_v61 = vadd.f32 %v3324_v57, %v2995_v13 }
 0x3d3   : > { %2376 = vmatmul.bf16.gmra.mxu2 %v7920_v50  ;;  %3034 = vmatmul.bf16.gmra.mxu0 %v7920_v50 }
 0x3d4   : > { %v4821_v24 = vadd.f32 %v6883_v0, %v2664_v43  ;;  %v4825_v1 = vadd.f32 %v6873_v47, %v3325_v61  ;;  %3363 = vmatmul.bf16.gmra.mxu1 %v7921_v28 }
 0x3d6   : > { %5205 = vst [vmem:[%s6269_s19 + $0x2f0] sm:$0xff] %v4821_v24  ;;  %2705 = vmatmul.bf16.gmra.mxu3 %v7921_v28  ;;  %v2337_v31 = vpop.f32.mrf.mxu2 }
 0x3d7   : > { %5209 = vst [vmem:[%s6269_s19 + $0x310] sm:$0xff] %v4825_v1 }
 0x3d8   : > { %v2997_v22 = vpop.f32.mrf.mxu0 }
 0x3d9   : > { %v2666_v32 = vpop.f32.mrf.mxu3  ;;  %v3326_v7 = vpop.f32.mrf.mxu1 }
 0x3da   : > { %v2667_v9 = vadd.f32 %v2666_v32, %v2337_v31  ;;  %v3327_v26 = vadd.f32 %v3326_v7, %v2997_v22 }
 0x3dc   : > { %v4824_v8 = vadd.f32 %v6883_v0, %v2667_v9  ;;  %v4828_v15 = vadd.f32 %v6873_v47, %v3327_v26 }
 0x3de   : > { %5208 = vst [vmem:[%s6269_s19 + $0x308] sm:$0xff] %v4824_v8  ;;  %v2339_v30 = vpop.f32.mrf.mxu2 }
 0x3df   : > { %5212 = vst [vmem:[%s6269_s19 + $0x328] sm:$0xff] %v4828_v15 }
 0x3e0   : > { %v3000_v16 = vpop.f32.mrf.mxu0 }
 0x3e1   : > { %v2668_v44 = vpop.f32.mrf.mxu3  ;;  %v3329_v56 = vpop.f32.mrf.mxu1 }
 0x3e2   : > { %v2669_v25 = vadd.f32 %v2668_v44, %v2339_v30  ;;  %v3330_v39 = vadd.f32 %v3329_v56, %v3000_v16 }
 0x3e3   : > { %2381 = vmatmul.bf16.gmra.mxu2 %v7922_v37  ;;  %3039 = vmatmul.bf16.gmra.mxu0 %v7922_v37 }
 0x3e4   : > { %v4827_v49 = vadd.f32 %v6883_v0, %v2669_v25  ;;  %v4831_v40 = vadd.f32 %v6873_v47, %v3330_v39  ;;  %3368 = vmatmul.bf16.gmra.mxu1 %v7923_v2 }
 0x3e6   : > { %5211 = vst [vmem:[%s6269_s19 + $0x320] sm:$0xff] %v4827_v49  ;;  %2710 = vmatmul.bf16.gmra.mxu3 %v7923_v2  ;;  %v2342_v27 = vpop.f32.mrf.mxu2 }
 0x3e7   : > { %5215 = vst [vmem:[%s6269_s19 + $0x340] sm:$0xff] %v4831_v40 }
 0x3e8   : > { %v3002_v33 = vpop.f32.mrf.mxu0 }
 0x3e9   : > { %v2671_v10 = vpop.f32.mrf.mxu3  ;;  %v3331_v18 = vpop.f32.mrf.mxu1 }
 0x3ea   : > { %v2672_v36 = vadd.f32 %v2671_v10, %v2342_v27  ;;  %v3332_v6 = vadd.f32 %v3331_v18, %v3002_v33 }
 0x3ec   : > { %v4830_v46 = vadd.f32 %v6883_v0, %v2672_v36  ;;  %v4834_v58 = vadd.f32 %v6873_v47, %v3332_v6 }
 0x3ee   : > { %5214 = vst [vmem:[%s6269_s19 + $0x338] sm:$0xff] %v4830_v46  ;;  %v2344_v45 = vpop.f32.mrf.mxu2 }
 0x3ef   : > { %5218 = vst [vmem:[%s6269_s19 + $0x358] sm:$0xff] %v4834_v58 }
 0x3f0   : > { %v3005_v59 = vpop.f32.mrf.mxu0 }
 0x3f1   : > { %v2673_v3 = vpop.f32.mrf.mxu3  ;;  %v3334_v38 = vpop.f32.mrf.mxu1 }
 0x3f2   : > { %v2674_v41 = vadd.f32 %v2673_v3, %v2344_v45  ;;  %v3335_v60 = vadd.f32 %v3334_v38, %v3005_v59  ;;  %v7926_v3 = vld [vmem:[#allocation88_spill] sm:$0xff] }
 0x3f3   : > { %2386 = vmatmul.bf16.gmra.mxu2 %v7924_v17  ;;  %3044 = vmatmul.bf16.gmra.mxu0 %v7924_v17 }
 0x3f4   : > { %v4833_v48 = vadd.f32 %v6883_v0, %v2674_v41  ;;  %v4837_v4 = vadd.f32 %v6873_v47, %v3335_v60  ;;  %3373 = vmatmul.bf16.gmra.mxu1 %v7925_v52 }
 0x3f6   : > { %5217 = vst [vmem:[%s6269_s19 + $0x350] sm:$0xff] %v4833_v48  ;;  %2715 = vmatmul.bf16.gmra.mxu3 %v7925_v52  ;;  %v2347_v55 = vpop.f32.mrf.mxu2 }
 0x3f7   : > { %5221 = vst [vmem:[%s6269_s19 + $0x370] sm:$0xff] %v4837_v4 }
 0x3f8   : > { %v3007_v62 = vpop.f32.mrf.mxu0 }
 0x3f9   : > { %v2676_v29 = vpop.f32.mrf.mxu3  ;;  %v3336_v63 = vpop.f32.mrf.mxu1 }
 0x3fa   : > { %v2677_v12 = vadd.f32 %v2676_v29, %v2347_v55  ;;  %v3337_v35 = vadd.f32 %v3336_v63, %v3007_v62 }
 0x3fc   : > { %v4836_v54 = vadd.f32 %v6883_v0, %v2677_v12  ;;  %v4840_v20 = vadd.f32 %v6873_v47, %v3337_v35  ;;  %v7927_v35 = vld [vmem:[#allocation90_spill] sm:$0xff] }
 0x3fe   : > { %5220 = vst [vmem:[%s6269_s19 + $0x368] sm:$0xff] %v4836_v54  ;;  %v2349_v14 = vpop.f32.mrf.mxu2 }
 0x3ff   : > { %5224 = vst [vmem:[%s6269_s19 + $0x388] sm:$0xff] %v4840_v20 }
 0x400   : > { %v3010_v57 = vpop.f32.mrf.mxu0 }
 0x401   : > { %v2678_v43 = vpop.f32.mrf.mxu3  ;;  %v3339_v24 = vpop.f32.mrf.mxu1 }
 0x402   : > { %v2679_v13 = vadd.f32 %v2678_v43, %v2349_v14  ;;  %v3340_v50 = vadd.f32 %v3339_v24, %v3010_v57  ;;  %v7928_v14 = vld [vmem:[#allocation92_spill] sm:$0xff] }
 0x403   : > { %2391 = vmatmul.bf16.gmra.mxu2 %v6675_v11  ;;  %3049 = vmatmul.bf16.gmra.mxu0 %v6675_v11 }
 0x404   : > { %v4839_v61 = vadd.f32 %v6883_v0, %v2679_v13  ;;  %v4843_v1 = vadd.f32 %v6873_v47, %v3340_v50  ;;  %3378 = vmatmul.bf16.gmra.mxu1 %v6680_v19 }
 0x406   : > { %5223 = vst [vmem:[%s6269_s19 + $0x380] sm:$0xff] %v4839_v61  ;;  %2720 = vmatmul.bf16.gmra.mxu3 %v6680_v19  ;;  %v2352_v28 = vpop.f32.mrf.mxu2 }
 0x407   : > { %5227 = vst [vmem:[%s6269_s19 + $0x3a0] sm:$0xff] %v4843_v1 }
 0x408   : > { %v3012_v9 = vpop.f32.mrf.mxu0 }
 0x409   : > { %v2681_v31 = vpop.f32.mrf.mxu3  ;;  %v3341_v22 = vpop.f32.mrf.mxu1 }
 0x40a   : > { %v2682_v32 = vadd.f32 %v2681_v31, %v2352_v28  ;;  %v3342_v8 = vadd.f32 %v3341_v22, %v3012_v9 }
 0x40c   : > { %v4842_v7 = vadd.f32 %v6883_v0, %v2682_v32  ;;  %v4846_v11 = vadd.f32 %v6873_v47, %v3342_v8 }
 0x40e   : > { %5226 = vst [vmem:[%s6269_s19 + $0x398] sm:$0xff] %v4842_v7  ;;  %v2354_v26 = vpop.f32.mrf.mxu2 }
 0x40f   : > { %5230 = vst [vmem:[%s6269_s19 + $0x3b8] sm:$0xff] %v4846_v11 }
 0x410   : > { %v3015_v44 = vpop.f32.mrf.mxu0 }
 0x411   : > { %v2683_v15 = vpop.f32.mrf.mxu3  ;;  %v3344_v19 = vpop.f32.mrf.mxu1 }
 0x412   : > { %v2684_v30 = vadd.f32 %v2683_v15, %v2354_v26  ;;  %v3345_v16 = vadd.f32 %v3344_v19, %v3015_v44 }
 0x413   : > { %2396 = vmatmul.bf16.gmra.mxu2 %v6696_v21  ;;  %3054 = vmatmul.bf16.gmra.mxu0 %v6696_v21 }
 0x414   : > { %v4845_v25 = vadd.f32 %v6883_v0, %v2684_v30  ;;  %v4849_v56 = vadd.f32 %v6873_v47, %v3345_v16  ;;  %3383 = vmatmul.bf16.gmra.mxu1 %v6700_v53 }
 0x416   : > { %5229 = vst [vmem:[%s6269_s19 + $0x3b0] sm:$0xff] %v4845_v25  ;;  %2725 = vmatmul.bf16.gmra.mxu3 %v6700_v53  ;;  %v2357_v49 = vpop.f32.mrf.mxu2 }
 0x417   : > { %5233 = vst [vmem:[%s6269_s19 + $0x3d0] sm:$0xff] %v4849_v56 }
 0x418   : > { %v3017_v40 = vpop.f32.mrf.mxu0 }
 0x419   : > { %v2686_v39 = vpop.f32.mrf.mxu3  ;;  %v3346_v2 = vpop.f32.mrf.mxu1 }
 0x41a   : > { %v2687_v37 = vadd.f32 %v2686_v39, %v2357_v49  ;;  %v3347_v10 = vadd.f32 %v3346_v2, %v3017_v40 }
 0x41c   : > { %v4848_v27 = vadd.f32 %v6883_v0, %v2687_v37  ;;  %v4852_v21 = vadd.f32 %v6873_v47, %v3347_v10  ;;  %v7929_v10 = vld [vmem:[#allocation13_spill] sm:$0xff] }
 0x41e   : > { %5232 = vst [vmem:[%s6269_s19 + $0x3c8] sm:$0xff] %v4848_v27  ;;  %v2359_v36 = vpop.f32.mrf.mxu2 }
 0x41f   : > { %5236 = vst [vmem:[%s6269_s19 + $0x3e8] sm:$0xff] %v4852_v21 }
 0x420   : > { %v3020_v46 = vpop.f32.mrf.mxu0 }
 0x421   : > { %v2688_v33 = vpop.f32.mrf.mxu3  ;;  %v3349_v53 = vpop.f32.mrf.mxu1 }
 0x422   : > { %v2689_v18 = vadd.f32 %v2688_v33, %v2359_v36  ;;  %v3350_v58 = vadd.f32 %v3349_v53, %v3020_v46  ;;  %v7930_v36 = vld [vmem:[#allocation14_spill] sm:$0xff] }
 0x423   : > { %2401 = vmatmul.bf16.gmra.mxu2 %v6716_v51  ;;  %3059 = vmatmul.bf16.gmra.mxu0 %v6716_v51 }
 0x424   : > { %v4851_v6 = vadd.f32 %v6883_v0, %v2689_v18  ;;  %v4855_v45 = vadd.f32 %v6873_v47, %v3350_v58  ;;  %3388 = vmatmul.bf16.gmra.mxu1 %v7926_v3 }
 0x426   : > { %5235 = vst [vmem:[%s6269_s19 + $0x3e0] sm:$0xff] %v4851_v6  ;;  %2730 = vmatmul.bf16.gmra.mxu3 %v7926_v3  ;;  %v2362_v41 = vpop.f32.mrf.mxu2 }
 0x427   : > { %5239 = vst [vmem:[%s6269_s19 + $0x400] sm:$0xff] %v4855_v45 }
 0x428   : > { %v3022_v48 = vpop.f32.mrf.mxu0 }
 0x429   : > { %v2691_v59 = vpop.f32.mrf.mxu3  ;;  %v3351_v60 = vpop.f32.mrf.mxu1 }
 0x42a   : > { %v2692_v38 = vadd.f32 %v2691_v59, %v2362_v41  ;;  %v3352_v4 = vadd.f32 %v3351_v60, %v3022_v48 }
 0x42c   : > { %v4854_v17 = vadd.f32 %v6883_v0, %v2692_v38  ;;  %v4858_v51 = vadd.f32 %v6873_v47, %v3352_v4 }
 0x42e   : > { %5238 = vst [vmem:[%s6269_s19 + $0x3f8] sm:$0xff] %v4854_v17  ;;  %v2364_v52 = vpop.f32.mrf.mxu2 }
 0x42f   : > { %5242 = vst [vmem:[%s6269_s19 + $0x418] sm:$0xff] %v4858_v51  ;;  %v7931_v51 = vld [vmem:[#allocation15_spill] sm:$0xff] }
 0x430   : > { %v3025_v12 = vpop.f32.mrf.mxu0 }
 0x431   : > { %v2693_v55 = vpop.f32.mrf.mxu3  ;;  %v3354_v62 = vpop.f32.mrf.mxu1 }
 0x432   : > { %v2694_v29 = vadd.f32 %v2693_v55, %v2364_v52  ;;  %v3355_v54 = vadd.f32 %v3354_v62, %v3025_v12  ;;  %v7932_v55 = vld [vmem:[#allocation16_spill] sm:$0xff] }
 0x433   : > { %2406 = vmatmul.bf16.gmra.mxu2 %v7927_v35  ;;  %3064 = vmatmul.bf16.gmra.mxu0 %v7927_v35 }
 0x434   : > { %v4857_v63 = vadd.f32 %v6883_v0, %v2694_v29  ;;  %v4861_v20 = vadd.f32 %v6873_v47, %v3355_v54  ;;  %3393 = vmatmul.bf16.gmra.mxu1 %v7928_v14 }
 0x436   : > { %5241 = vst [vmem:[%s6269_s19 + $0x410] sm:$0xff] %v4857_v63  ;;  %2735 = vmatmul.bf16.gmra.mxu3 %v7928_v14  ;;  %v2367_v43 = vpop.f32.mrf.mxu2 }
 0x437   : > { %5245 = vst [vmem:[%s6269_s19 + $0x430] sm:$0xff] %v4861_v20 }
 0x438   : > { %v3027_v24 = vpop.f32.mrf.mxu0 }
 0x439   : > { %v2696_v13 = vpop.f32.mrf.mxu3  ;;  %v3356_v61 = vpop.f32.mrf.mxu1 }
 0x43a   : > { %v2697_v57 = vadd.f32 %v2696_v13, %v2367_v43  ;;  %v3357_v1 = vadd.f32 %v3356_v61, %v3027_v24 }
 0x43c   : > { %v4860_v50 = vadd.f32 %v6883_v0, %v2697_v57  ;;  %v4864_v28 = vadd.f32 %v6873_v47, %v3357_v1 }
 0x43e   : > { %5244 = vst [vmem:[%s6269_s19 + $0x428] sm:$0xff] %v4860_v50  ;;  %v2369_v31 = vpop.f32.mrf.mxu2 }
 0x43f   : > { %5248 = vst [vmem:[%s6269_s19 + $0x448] sm:$0xff] %v4864_v28  ;;  %v7933_v28 = vld [vmem:[#allocation17_spill] sm:$0xff] }
 0x440   : > { %v3030_v22 = vpop.f32.mrf.mxu0 }
 0x441   : > { %v2698_v32 = vpop.f32.mrf.mxu3  ;;  %v3359_v7 = vpop.f32.mrf.mxu1 }
 0x442   : > { %v2699_v9 = vadd.f32 %v2698_v32, %v2369_v31  ;;  %v3360_v11 = vadd.f32 %v3359_v7, %v3030_v22  ;;  %v7934_v32 = vld [vmem:[#allocation18_spill] sm:$0xff] }
 0x443   : > { %2411 = vmatmul.bf16.gmra.mxu2 %v6756_v42  ;;  %3069 = vmatmul.bf16.gmra.mxu0 %v6756_v42 }
 0x444   : > { %v4863_v8 = vadd.f32 %v6883_v0, %v2699_v9  ;;  %v4867_v26 = vadd.f32 %v6873_v47, %v3360_v11  ;;  %3398 = vmatmul.bf16.gmra.mxu1 %v6760_v23 }
 0x446   : > { %5247 = vst [vmem:[%s6269_s19 + $0x440] sm:$0xff] %v4863_v8  ;;  %2740 = vmatmul.bf16.gmra.mxu3 %v6760_v23  ;;  %v2372_v15 = vpop.f32.mrf.mxu2 }
 0x447   : > { %5251 = vst [vmem:[%s6269_s19 + $0x460] sm:$0xff] %v4867_v26 }
 0x448   : > { %v3032_v19 = vpop.f32.mrf.mxu0 }
 0x449   : > { %v2701_v30 = vpop.f32.mrf.mxu3  ;;  %v3361_v25 = vpop.f32.mrf.mxu1 }
 0x44a   : > { %v2702_v44 = vadd.f32 %v2701_v30, %v2372_v15  ;;  %v3362_v56 = vadd.f32 %v3361_v25, %v3032_v19 }
 0x44c   : > { %v4866_v16 = vadd.f32 %v6883_v0, %v2702_v44  ;;  %v4870_v42 = vadd.f32 %v6873_v47, %v3362_v56 }
 0x44e   : > { %5250 = vst [vmem:[%s6269_s19 + $0x458] sm:$0xff] %v4866_v16  ;;  %v2374_v49 = vpop.f32.mrf.mxu2 }
 0x44f   : > { %5254 = vst [vmem:[%s6269_s19 + $0x478] sm:$0xff] %v4870_v42 }
 0x450   : > { %v3035_v40 = vpop.f32.mrf.mxu0 }
 0x451   : > { %v2703_v39 = vpop.f32.mrf.mxu3  ;;  %v3364_v23 = vpop.f32.mrf.mxu1 }
 0x452   : > { %v2704_v37 = vadd.f32 %v2703_v39, %v2374_v49  ;;  %v3365_v27 = vadd.f32 %v3364_v23, %v3035_v40  ;;  %v7935_v39 = vld [vmem:[#allocation19_spill] sm:$0xff]  ;;  %v7936_v40 = vld [vmem:[#allocation20_spill] sm:$0xff] }
 0x453   : > { %2416 = vmatmul.bf16.gmra.mxu2 %v7929_v10  ;;  %3074 = vmatmul.bf16.gmra.mxu0 %v7929_v10 }
 0x454   : > { %v4869_v2 = vadd.f32 %v6883_v0, %v2704_v37  ;;  %v4873_v21 = vadd.f32 %v6873_v47, %v3365_v27  ;;  %3403 = vmatmul.bf16.gmra.mxu1 %v7930_v36 }
 0x456   : > { %5253 = vst [vmem:[%s6269_s19 + $0x470] sm:$0xff] %v4869_v2  ;;  %2745 = vmatmul.bf16.gmra.mxu3 %v7930_v36  ;;  %v2377_v33 = vpop.f32.mrf.mxu2 }
 0x457   : > { %5257 = vst [vmem:[%s6269_s19 + $0x490] sm:$0xff] %v4873_v21 }
 0x458   : > { %v3037_v53 = vpop.f32.mrf.mxu0 }
 0x459   : > { %v2706_v18 = vpop.f32.mrf.mxu3  ;;  %v3366_v6 = vpop.f32.mrf.mxu1 }
 0x45a   : > { %v2707_v46 = vadd.f32 %v2706_v18, %v2377_v33  ;;  %v3367_v45 = vadd.f32 %v3366_v6, %v3037_v53 }
 0x45c   : > { %v4872_v58 = vadd.f32 %v6883_v0, %v2707_v46  ;;  %v4876_v3 = vadd.f32 %v6873_v47, %v3367_v45 }
 0x45e   : > { %5256 = vst [vmem:[%s6269_s19 + $0x488] sm:$0xff] %v4872_v58  ;;  %v2379_v41 = vpop.f32.mrf.mxu2 }
 0x45f   : > { %5260 = vst [vmem:[%s6269_s19 + $0x4a8] sm:$0xff] %v4876_v3 }
 0x460   : > { %v3040_v48 = vpop.f32.mrf.mxu0 }
 0x461   : > { %v2708_v59 = vpop.f32.mrf.mxu3  ;;  %v3369_v60 = vpop.f32.mrf.mxu1 }
 0x462   : > { %v2709_v38 = vadd.f32 %v2708_v59, %v2379_v41  ;;  %v3370_v4 = vadd.f32 %v3369_v60, %v3040_v48  ;;  %v7937_v59 = vld [vmem:[#allocation21_spill] sm:$0xff]  ;;  %v7938_v48 = vld [vmem:[#allocation22_spill] sm:$0xff] }
 0x463   : > { %2421 = vmatmul.bf16.gmra.mxu2 %v7931_v51  ;;  %3079 = vmatmul.bf16.gmra.mxu0 %v7931_v51 }
 0x464   : > { %v4875_v17 = vadd.f32 %v6883_v0, %v2709_v38  ;;  %v4879_v52 = vadd.f32 %v6873_v47, %v3370_v4  ;;  %3408 = vmatmul.bf16.gmra.mxu1 %v7932_v55 }
 0x466   : > { %5259 = vst [vmem:[%s6269_s19 + $0x4a0] sm:$0xff] %v4875_v17  ;;  %2750 = vmatmul.bf16.gmra.mxu3 %v7932_v55  ;;  %v2382_v29 = vpop.f32.mrf.mxu2 }
 0x467   : > { %5263 = vst [vmem:[%s6269_s19 + $0x4c0] sm:$0xff] %v4879_v52 }
 0x468   : > { %v3042_v63 = vpop.f32.mrf.mxu0 }
 0x469   : > { %v2711_v12 = vpop.f32.mrf.mxu3  ;;  %v3371_v54 = vpop.f32.mrf.mxu1 }
 0x46a   : > { %v2712_v62 = vadd.f32 %v2711_v12, %v2382_v29  ;;  %v3372_v20 = vadd.f32 %v3371_v54, %v3042_v63 }
 0x46c   : > { %v4878_v35 = vadd.f32 %v6883_v0, %v2712_v62  ;;  %v4882_v14 = vadd.f32 %v6873_v47, %v3372_v20 }
 0x46e   : > { %5262 = vst [vmem:[%s6269_s19 + $0x4b8] sm:$0xff] %v4878_v35  ;;  %v2384_v43 = vpop.f32.mrf.mxu2 }
 0x46f   : > { %5266 = vst [vmem:[%s6269_s19 + $0x4d8] sm:$0xff] %v4882_v14 }
 0x470   : > { %v3045_v24 = vpop.f32.mrf.mxu0 }
 0x471   : > { %v2713_v13 = vpop.f32.mrf.mxu3  ;;  %v3374_v61 = vpop.f32.mrf.mxu1 }
 0x472   : > { %v2714_v57 = vadd.f32 %v2713_v13, %v2384_v43  ;;  %v3375_v1 = vadd.f32 %v3374_v61, %v3045_v24  ;;  %v7939_v13 = vld [vmem:[#allocation23_spill] sm:$0xff]  ;;  %v7940_v24 = vld [vmem:[#allocation24_spill] sm:$0xff] }
 0x473   : > { %2426 = vmatmul.bf16.gmra.mxu2 %v7933_v28  ;;  %3084 = vmatmul.bf16.gmra.mxu0 %v7933_v28 }
 0x474   : > { %v4881_v50 = vadd.f32 %v6883_v0, %v2714_v57  ;;  %v4885_v31 = vadd.f32 %v6873_v47, %v3375_v1  ;;  %3413 = vmatmul.bf16.gmra.mxu1 %v7934_v32 }
 0x476   : > { %5265 = vst [vmem:[%s6269_s19 + $0x4d0] sm:$0xff] %v4881_v50  ;;  %2755 = vmatmul.bf16.gmra.mxu3 %v7934_v32  ;;  %v2387_v9 = vpop.f32.mrf.mxu2 }
 0x477   : > { %5269 = vst [vmem:[%s6269_s19 + $0x4f0] sm:$0xff] %v4885_v31 }
 0x478   : > { %v3047_v8 = vpop.f32.mrf.mxu0 }
 0x479   : > { %v2716_v22 = vpop.f32.mrf.mxu3  ;;  %v3376_v11 = vpop.f32.mrf.mxu1 }
 0x47a   : > { %v2717_v7 = vadd.f32 %v2716_v22, %v2387_v9  ;;  %v3377_v15 = vadd.f32 %v3376_v11, %v3047_v8 }
 0x47c   : > { %v4884_v26 = vadd.f32 %v6883_v0, %v2717_v7  ;;  %v4888_v30 = vadd.f32 %v6873_v47, %v3377_v15 }
 0x47e   : > { %5268 = vst [vmem:[%s6269_s19 + $0x4e8] sm:$0xff] %v4884_v26  ;;  %v2389_v44 = vpop.f32.mrf.mxu2 }
 0x47f   : > { %5272 = vst [vmem:[%s6269_s19 + $0x508] sm:$0xff] %v4888_v30 }
 0x480   : > { %v3050_v16 = vpop.f32.mrf.mxu0 }
 0x481   : > { %v2718_v19 = vpop.f32.mrf.mxu3  ;;  %v3379_v56 = vpop.f32.mrf.mxu1 }
 0x482   : > { %v2719_v25 = vadd.f32 %v2718_v19, %v2389_v44  ;;  %v3380_v49 = vadd.f32 %v3379_v56, %v3050_v16  ;;  %v7941_v19 = vld [vmem:[#allocation25_spill] sm:$0xff]  ;;  %v7942_v16 = vld [vmem:[#allocation26_spill] sm:$0xff] }
 0x483   : > { %2431 = vmatmul.bf16.gmra.mxu2 %v7935_v39  ;;  %3089 = vmatmul.bf16.gmra.mxu0 %v7935_v39 }
 0x484   : > { %v4887_v42 = vadd.f32 %v6883_v0, %v2719_v25  ;;  %v4891_v37 = vadd.f32 %v6873_v47, %v3380_v49  ;;  %3418 = vmatmul.bf16.gmra.mxu1 %v7936_v40 }
 0x486   : > { %5271 = vst [vmem:[%s6269_s19 + $0x500] sm:$0xff] %v4887_v42  ;;  %2760 = vmatmul.bf16.gmra.mxu3 %v7936_v40  ;;  %v2392_v23 = vpop.f32.mrf.mxu2 }
 0x487   : > { %5275 = vst [vmem:[%s6269_s19 + $0x520] sm:$0xff] %v4891_v37 }
 0x488   : > { %v3052_v10 = vpop.f32.mrf.mxu0 }
 0x489   : > { %v2721_v2 = vpop.f32.mrf.mxu3  ;;  %v3381_v21 = vpop.f32.mrf.mxu1 }
 0x48a   : > { %v2722_v27 = vadd.f32 %v2721_v2, %v2392_v23  ;;  %v3382_v33 = vadd.f32 %v3381_v21, %v3052_v10 }
 0x48c   : > { %v4890_v36 = vadd.f32 %v6883_v0, %v2722_v27  ;;  %v4894_v18 = vadd.f32 %v6873_v47, %v3382_v33 }
 0x48e   : > { %5274 = vst [vmem:[%s6269_s19 + $0x518] sm:$0xff] %v4890_v36  ;;  %v2394_v46 = vpop.f32.mrf.mxu2 }
 0x48f   : > { %5278 = vst [vmem:[%s6269_s19 + $0x538] sm:$0xff] %v4894_v18 }
 0x490   : > { %v3055_v58 = vpop.f32.mrf.mxu0 }
 0x491   : > { %v2723_v53 = vpop.f32.mrf.mxu3  ;;  %v3384_v45 = vpop.f32.mrf.mxu1 }
 0x492   : > { %v2724_v6 = vadd.f32 %v2723_v53, %v2394_v46  ;;  %v3385_v41 = vadd.f32 %v3384_v45, %v3055_v58  ;;  %v7943_v53 = vld [vmem:[#allocation27_spill] sm:$0xff]  ;;  %v7944_v58 = vld [vmem:[#allocation28_spill] sm:$0xff] }
 0x493   : > { %2436 = vmatmul.bf16.gmra.mxu2 %v7937_v59  ;;  %3094 = vmatmul.bf16.gmra.mxu0 %v7937_v59 }
 0x494   : > { %v4893_v3 = vadd.f32 %v6883_v0, %v2724_v6  ;;  %v4897_v38 = vadd.f32 %v6873_v47, %v3385_v41  ;;  %3423 = vmatmul.bf16.gmra.mxu1 %v7938_v48 }
 0x496   : > { %5277 = vst [vmem:[%s6269_s19 + $0x530] sm:$0xff] %v4893_v3  ;;  %2765 = vmatmul.bf16.gmra.mxu3 %v7938_v48  ;;  %v2397_v60 = vpop.f32.mrf.mxu2 }
 0x497   : > { %5281 = vst [vmem:[%s6269_s19 + $0x550] sm:$0xff] %v4897_v38 }
 0x498   : > { %v3057_v51 = vpop.f32.mrf.mxu0 }
 0x499   : > { %v2726_v17 = vpop.f32.mrf.mxu3  ;;  %v3386_v52 = vpop.f32.mrf.mxu1 }
 0x49a   : > { %v2727_v4 = vadd.f32 %v2726_v17, %v2397_v60  ;;  %v3387_v29 = vadd.f32 %v3386_v52, %v3057_v51 }
 0x49c   : > { %v4896_v55 = vadd.f32 %v6883_v0, %v2727_v4  ;;  %v4900_v12 = vadd.f32 %v6873_v47, %v3387_v29 }
 0x49e   : > { %5280 = vst [vmem:[%s6269_s19 + $0x548] sm:$0xff] %v4896_v55  ;;  %v2399_v62 = vpop.f32.mrf.mxu2 }
 0x49f   : > { %5284 = vst [vmem:[%s6269_s19 + $0x568] sm:$0xff] %v4900_v12 }
 0x4a0   : > { %v3060_v35 = vpop.f32.mrf.mxu0 }
 0x4a1   : > { %v2728_v63 = vpop.f32.mrf.mxu3  ;;  %v3389_v20 = vpop.f32.mrf.mxu1 }
 0x4a2   : > { %v2729_v54 = vadd.f32 %v2728_v63, %v2399_v62  ;;  %v3390_v43 = vadd.f32 %v3389_v20, %v3060_v35  ;;  %v7945_v63 = vld [vmem:[#allocation29_spill] sm:$0xff]  ;;  %v7946_v35 = vld [vmem:[#allocation30_spill] sm:$0xff] }
 0x4a3   : > { %2441 = vmatmul.bf16.gmra.mxu2 %v7939_v13  ;;  %3099 = vmatmul.bf16.gmra.mxu0 %v7939_v13 }
 0x4a4   : > { %v4899_v14 = vadd.f32 %v6883_v0, %v2729_v54  ;;  %v4903_v57 = vadd.f32 %v6873_v47, %v3390_v43  ;;  %3428 = vmatmul.bf16.gmra.mxu1 %v7940_v24 }
 0x4a6   : > { %5283 = vst [vmem:[%s6269_s19 + $0x560] sm:$0xff] %v4899_v14  ;;  %2770 = vmatmul.bf16.gmra.mxu3 %v7940_v24  ;;  %v2402_v61 = vpop.f32.mrf.mxu2 }
 0x4a7   : > { %5287 = vst [vmem:[%s6269_s19 + $0x580] sm:$0xff] %v4903_v57 }
 0x4a8   : > { %v3062_v28 = vpop.f32.mrf.mxu0 }
 0x4a9   : > { %v2731_v50 = vpop.f32.mrf.mxu3  ;;  %v3391_v31 = vpop.f32.mrf.mxu1 }
 0x4aa   : > { %v2732_v1 = vadd.f32 %v2731_v50, %v2402_v61  ;;  %v3392_v9 = vadd.f32 %v3391_v31, %v3062_v28 }
 0x4ac   : > { %v4902_v32 = vadd.f32 %v6883_v0, %v2732_v1  ;;  %v4906_v22 = vadd.f32 %v6873_v47, %v3392_v9 }
 0x4ae   : > { %5286 = vst [vmem:[%s6269_s19 + $0x578] sm:$0xff] %v4902_v32  ;;  %v2404_v7 = vpop.f32.mrf.mxu2 }
 0x4af   : > { %5290 = vst [vmem:[%s6269_s19 + $0x598] sm:$0xff] %v4906_v22 }
 0x4b0   : > { %v3065_v26 = vpop.f32.mrf.mxu0 }
 0x4b1   : > { %v2733_v8 = vpop.f32.mrf.mxu3  ;;  %v3394_v15 = vpop.f32.mrf.mxu1 }
 0x4b2   : > { %v2734_v11 = vadd.f32 %v2733_v8, %v2404_v7  ;;  %v3395_v44 = vadd.f32 %v3394_v15, %v3065_v26  ;;  %v7947_v8 = vld [vmem:[#allocation31_spill] sm:$0xff]  ;;  %v7948_v26 = vld [vmem:[#allocation32_spill] sm:$0xff] }
 0x4b3   : > { %2446 = vmatmul.bf16.gmra.mxu2 %v7941_v19  ;;  %3104 = vmatmul.bf16.gmra.mxu0 %v7941_v19 }
 0x4b4   : > { %v4905_v30 = vadd.f32 %v6883_v0, %v2734_v11  ;;  %v4909_v25 = vadd.f32 %v6873_v47, %v3395_v44  ;;  %3433 = vmatmul.bf16.gmra.mxu1 %v7942_v16 }
 0x4b6   : > { %5289 = vst [vmem:[%s6269_s19 + $0x590] sm:$0xff] %v4905_v30  ;;  %2775 = vmatmul.bf16.gmra.mxu3 %v7942_v16  ;;  %v2407_v56 = vpop.f32.mrf.mxu2 }
 0x4b7   : > { %5293 = vst [vmem:[%s6269_s19 + $0x5b0] sm:$0xff] %v4909_v25 }
 0x4b8   : > { %v3067_v39 = vpop.f32.mrf.mxu0 }
 0x4b9   : > { %v2736_v42 = vpop.f32.mrf.mxu3  ;;  %v3396_v37 = vpop.f32.mrf.mxu1 }
 0x4ba   : > { %v2737_v49 = vadd.f32 %v2736_v42, %v2407_v56  ;;  %v3397_v23 = vadd.f32 %v3396_v37, %v3067_v39 }
 0x4bc   : > { %v4908_v40 = vadd.f32 %v6883_v0, %v2737_v49  ;;  %v4912_v2 = vadd.f32 %v6873_v47, %v3397_v23 }
 0x4be   : > { %5292 = vst [vmem:[%s6269_s19 + $0x5a8] sm:$0xff] %v4908_v40  ;;  %v2409_v27 = vpop.f32.mrf.mxu2 }
 0x4bf   : > { %5296 = vst [vmem:[%s6269_s19 + $0x5c8] sm:$0xff] %v4912_v2 }
 0x4c0   : > { %v3070_v36 = vpop.f32.mrf.mxu0 }
 0x4c1   : > { %v2738_v10 = vpop.f32.mrf.mxu3  ;;  %v3399_v33 = vpop.f32.mrf.mxu1 }
 0x4c2   : > { %v2739_v21 = vadd.f32 %v2738_v10, %v2409_v27  ;;  %v3400_v46 = vadd.f32 %v3399_v33, %v3070_v36  ;;  %v7949_v10 = vld [vmem:[#allocation33_spill] sm:$0xff]  ;;  %v7950_v36 = vld [vmem:[#allocation34_spill] sm:$0xff] }
 0x4c3   : > { %2451 = vmatmul.bf16.gmra.mxu2 %v7943_v53  ;;  %3109 = vmatmul.bf16.gmra.mxu0 %v7943_v53 }
 0x4c4   : > { %v4911_v18 = vadd.f32 %v6883_v0, %v2739_v21  ;;  %v4915_v6 = vadd.f32 %v6873_v47, %v3400_v46  ;;  %3438 = vmatmul.bf16.gmra.mxu1 %v7944_v58 }
 0x4c6   : > { %5295 = vst [vmem:[%s6269_s19 + $0x5c0] sm:$0xff] %v4911_v18  ;;  %2780 = vmatmul.bf16.gmra.mxu3 %v7944_v58  ;;  %v2412_v45 = vpop.f32.mrf.mxu2 }
 0x4c7   : > { %5299 = vst [vmem:[%s6269_s19 + $0x5e0] sm:$0xff] %v4915_v6 }
 0x4c8   : > { %v3072_v59 = vpop.f32.mrf.mxu0 }
 0x4c9   : > { %v2741_v3 = vpop.f32.mrf.mxu3  ;;  %v3401_v38 = vpop.f32.mrf.mxu1 }
 0x4ca   : > { %v2742_v41 = vadd.f32 %v2741_v3, %v2412_v45  ;;  %v3402_v60 = vadd.f32 %v3401_v38, %v3072_v59 }
 0x4cc   : > { %v4914_v48 = vadd.f32 %v6883_v0, %v2742_v41  ;;  %v4918_v17 = vadd.f32 %v6873_v47, %v3402_v60 }
 0x4ce   : > { %5298 = vst [vmem:[%s6269_s19 + $0x5d8] sm:$0xff] %v4914_v48  ;;  %v2414_v4 = vpop.f32.mrf.mxu2 }
 0x4cf   : > { %5302 = vst [vmem:[%s6269_s19 + $0x5f8] sm:$0xff] %v4918_v17 }
 0x4d0   : > { %v3075_v55 = vpop.f32.mrf.mxu0 }
 0x4d1   : > { %v2743_v51 = vpop.f32.mrf.mxu3  ;;  %v3404_v29 = vpop.f32.mrf.mxu1 }
 0x4d2   : > { %v2744_v52 = vadd.f32 %v2743_v51, %v2414_v4  ;;  %v3405_v62 = vadd.f32 %v3404_v29, %v3075_v55  ;;  %v7951_v51 = vld [vmem:[#allocation35_spill] sm:$0xff]  ;;  %v7952_v55 = vld [vmem:[#allocation36_spill] sm:$0xff] }
 0x4d3   : > { %2456 = vmatmul.bf16.gmra.mxu2 %v7945_v63  ;;  %3114 = vmatmul.bf16.gmra.mxu0 %v7945_v63 }
 0x4d4   : > { %v4917_v12 = vadd.f32 %v6883_v0, %v2744_v52  ;;  %v4921_v54 = vadd.f32 %v6873_v47, %v3405_v62  ;;  %3443 = vmatmul.bf16.gmra.mxu1 %v7946_v35 }
 0x4d6   : > { %5301 = vst [vmem:[%s6269_s19 + $0x5f0] sm:$0xff] %v4917_v12  ;;  %2785 = vmatmul.bf16.gmra.mxu3 %v7946_v35  ;;  %v2417_v20 = vpop.f32.mrf.mxu2 }
 0x4d7   : > { %5305 = vst [vmem:[%s6269_s19 + $0x610] sm:$0xff] %v4921_v54 }
 0x4d8   : > { %v3077_v13 = vpop.f32.mrf.mxu0 }
 0x4d9   : > { %v2746_v14 = vpop.f32.mrf.mxu3  ;;  %v3406_v57 = vpop.f32.mrf.mxu1 }
 0x4da   : > { %v2747_v43 = vadd.f32 %v2746_v14, %v2417_v20  ;;  %v3407_v61 = vadd.f32 %v3406_v57, %v3077_v13 }
 0x4dc   : > { %v4920_v24 = vadd.f32 %v6883_v0, %v2747_v43  ;;  %v4924_v50 = vadd.f32 %v6873_v47, %v3407_v61 }
 0x4de   : > { %5304 = vst [vmem:[%s6269_s19 + $0x608] sm:$0xff] %v4920_v24  ;;  %v2419_v1 = vpop.f32.mrf.mxu2 }
 0x4df   : > { %5308 = vst [vmem:[%s6269_s19 + $0x628] sm:$0xff] %v4924_v50 }
 0x4e0   : > { %v3080_v32 = vpop.f32.mrf.mxu0 }
 0x4e1   : > { %v2748_v28 = vpop.f32.mrf.mxu3  ;;  %v3409_v9 = vpop.f32.mrf.mxu1 }
 0x4e2   : > { %v2749_v31 = vadd.f32 %v2748_v28, %v2419_v1  ;;  %v3410_v7 = vadd.f32 %v3409_v9, %v3080_v32  ;;  %v7953_v28 = vld [vmem:[#allocation37_spill] sm:$0xff]  ;;  %v7954_v32 = vld [vmem:[#allocation38_spill] sm:$0xff] }
 0x4e3   : > { %2461 = vmatmul.bf16.gmra.mxu2 %v7947_v8  ;;  %3119 = vmatmul.bf16.gmra.mxu0 %v7947_v8 }
 0x4e4   : > { %v4923_v22 = vadd.f32 %v6883_v0, %v2749_v31  ;;  %v4927_v11 = vadd.f32 %v6873_v47, %v3410_v7  ;;  %3448 = vmatmul.bf16.gmra.mxu1 %v7948_v26 }
 0x4e6   : > { %5307 = vst [vmem:[%s6269_s19 + $0x620] sm:$0xff] %v4923_v22  ;;  %2790 = vmatmul.bf16.gmra.mxu3 %v7948_v26  ;;  %v2422_v15 = vpop.f32.mrf.mxu2 }
 0x4e7   : > { %5311 = vst [vmem:[%s6269_s19 + $0x640] sm:$0xff] %v4927_v11 }
 0x4e8   : > { %v3082_v19 = vpop.f32.mrf.mxu0 }
 0x4e9   : > { %v2751_v30 = vpop.f32.mrf.mxu3  ;;  %v3411_v25 = vpop.f32.mrf.mxu1 }
 0x4ea   : > { %v2752_v44 = vadd.f32 %v2751_v30, %v2422_v15  ;;  %v3412_v56 = vadd.f32 %v3411_v25, %v3082_v19 }
 0x4ec   : > { %v4926_v16 = vadd.f32 %v6883_v0, %v2752_v44  ;;  %v4930_v42 = vadd.f32 %v6873_v47, %v3412_v56 }
 0x4ee   : > { %5310 = vst [vmem:[%s6269_s19 + $0x638] sm:$0xff] %v4926_v16  ;;  %v2424_v49 = vpop.f32.mrf.mxu2 }
 0x4ef   : > { %5314 = vst [vmem:[%s6269_s19 + $0x658] sm:$0xff] %v4930_v42 }
 0x4f0   : > { %v3085_v40 = vpop.f32.mrf.mxu0 }
 0x4f1   : > { %v2753_v39 = vpop.f32.mrf.mxu3  ;;  %v3414_v23 = vpop.f32.mrf.mxu1 }
 0x4f2   : > { %v2754_v37 = vadd.f32 %v2753_v39, %v2424_v49  ;;  %v3415_v27 = vadd.f32 %v3414_v23, %v3085_v40  ;;  %v7955_v39 = vld [vmem:[#allocation39_spill] sm:$0xff]  ;;  %v7956_v40 = vld [vmem:[#allocation40_spill] sm:$0xff] }
 0x4f3   : > { %2466 = vmatmul.bf16.gmra.mxu2 %v7949_v10  ;;  %3124 = vmatmul.bf16.gmra.mxu0 %v7949_v10 }
 0x4f4   : > { %v4929_v2 = vadd.f32 %v6883_v0, %v2754_v37  ;;  %v4933_v21 = vadd.f32 %v6873_v47, %v3415_v27  ;;  %3453 = vmatmul.bf16.gmra.mxu1 %v7950_v36 }
 0x4f6   : > { %5313 = vst [vmem:[%s6269_s19 + $0x650] sm:$0xff] %v4929_v2  ;;  %2795 = vmatmul.bf16.gmra.mxu3 %v7950_v36  ;;  %v2427_v33 = vpop.f32.mrf.mxu2 }
 0x4f7   : > { %5317 = vst [vmem:[%s6269_s19 + $0x670] sm:$0xff] %v4933_v21 }
 0x4f8   : > { %v3087_v53 = vpop.f32.mrf.mxu0 }
 0x4f9   : > { %v2756_v18 = vpop.f32.mrf.mxu3  ;;  %v3416_v6 = vpop.f32.mrf.mxu1 }
 0x4fa   : > { %v2757_v46 = vadd.f32 %v2756_v18, %v2427_v33  ;;  %v3417_v45 = vadd.f32 %v3416_v6, %v3087_v53 }
 0x4fc   : > { %v4932_v58 = vadd.f32 %v6883_v0, %v2757_v46  ;;  %v4936_v3 = vadd.f32 %v6873_v47, %v3417_v45 }
 0x4fe   : > { %5316 = vst [vmem:[%s6269_s19 + $0x668] sm:$0xff] %v4932_v58  ;;  %v2429_v41 = vpop.f32.mrf.mxu2 }
 0x4ff   : > { %5320 = vst [vmem:[%s6269_s19 + $0x688] sm:$0xff] %v4936_v3 }
 0x500   : > { %v3090_v48 = vpop.f32.mrf.mxu0 }
 0x501   : > { %v2758_v59 = vpop.f32.mrf.mxu3  ;;  %v3419_v60 = vpop.f32.mrf.mxu1 }
 0x502   : > { %v2759_v38 = vadd.f32 %v2758_v59, %v2429_v41  ;;  %v3420_v4 = vadd.f32 %v3419_v60, %v3090_v48  ;;  %v7957_v59 = vld [vmem:[#allocation41_spill] sm:$0xff]  ;;  %v7958_v48 = vld [vmem:[#allocation42_spill] sm:$0xff] }
 0x503   : > { %2471 = vmatmul.bf16.gmra.mxu2 %v7951_v51  ;;  %3129 = vmatmul.bf16.gmra.mxu0 %v7951_v51 }
 0x504   : > { %v4935_v17 = vadd.f32 %v6883_v0, %v2759_v38  ;;  %v4939_v52 = vadd.f32 %v6873_v47, %v3420_v4  ;;  %3458 = vmatmul.bf16.gmra.mxu1 %v7952_v55 }
 0x506   : > { %5319 = vst [vmem:[%s6269_s19 + $0x680] sm:$0xff] %v4935_v17  ;;  %2800 = vmatmul.bf16.gmra.mxu3 %v7952_v55  ;;  %v2432_v29 = vpop.f32.mrf.mxu2 }
 0x507   : > { %5323 = vst [vmem:[%s6269_s19 + $0x6a0] sm:$0xff] %v4939_v52 }
 0x508   : > { %v3092_v63 = vpop.f32.mrf.mxu0 }
 0x509   : > { %v2761_v12 = vpop.f32.mrf.mxu3  ;;  %v3421_v54 = vpop.f32.mrf.mxu1 }
 0x50a   : > { %v2762_v62 = vadd.f32 %v2761_v12, %v2432_v29  ;;  %v3422_v20 = vadd.f32 %v3421_v54, %v3092_v63 }
 0x50c   : > { %v4938_v35 = vadd.f32 %v6883_v0, %v2762_v62  ;;  %v4942_v14 = vadd.f32 %v6873_v47, %v3422_v20 }
 0x50e   : > { %5322 = vst [vmem:[%s6269_s19 + $0x698] sm:$0xff] %v4938_v35  ;;  %v2434_v43 = vpop.f32.mrf.mxu2 }
 0x50f   : > { %5326 = vst [vmem:[%s6269_s19 + $0x6b8] sm:$0xff] %v4942_v14 }
 0x510   : > { %v3095_v24 = vpop.f32.mrf.mxu0 }
 0x511   : > { %v2763_v13 = vpop.f32.mrf.mxu3  ;;  %v3424_v61 = vpop.f32.mrf.mxu1 }
 0x512   : > { %v2764_v57 = vadd.f32 %v2763_v13, %v2434_v43  ;;  %v3425_v1 = vadd.f32 %v3424_v61, %v3095_v24  ;;  %v7959_v13 = vld [vmem:[#allocation43_spill] sm:$0xff]  ;;  %v7960_v24 = vld [vmem:[#allocation44_spill] sm:$0xff] }
 0x513   : > { %2476 = vmatmul.bf16.gmra.mxu2 %v7953_v28  ;;  %3134 = vmatmul.bf16.gmra.mxu0 %v7953_v28 }
 0x514   : > { %v4941_v50 = vadd.f32 %v6883_v0, %v2764_v57  ;;  %v4945_v31 = vadd.f32 %v6873_v47, %v3425_v1  ;;  %3463 = vmatmul.bf16.gmra.mxu1 %v7954_v32 }
 0x516   : > { %5325 = vst [vmem:[%s6269_s19 + $0x6b0] sm:$0xff] %v4941_v50  ;;  %2805 = vmatmul.bf16.gmra.mxu3 %v7954_v32  ;;  %v2437_v9 = vpop.f32.mrf.mxu2 }
 0x517   : > { %5329 = vst [vmem:[%s6269_s19 + $0x6d0] sm:$0xff] %v4945_v31 }
 0x518   : > { %v3097_v8 = vpop.f32.mrf.mxu0 }
 0x519   : > { %v2766_v22 = vpop.f32.mrf.mxu3  ;;  %v3426_v11 = vpop.f32.mrf.mxu1 }
 0x51a   : > { %v2767_v7 = vadd.f32 %v2766_v22, %v2437_v9  ;;  %v3427_v15 = vadd.f32 %v3426_v11, %v3097_v8 }
 0x51c   : > { %v4944_v26 = vadd.f32 %v6883_v0, %v2767_v7  ;;  %v4948_v30 = vadd.f32 %v6873_v47, %v3427_v15 }
 0x51e   : > { %5328 = vst [vmem:[%s6269_s19 + $0x6c8] sm:$0xff] %v4944_v26  ;;  %v2439_v44 = vpop.f32.mrf.mxu2 }
 0x51f   : > { %5332 = vst [vmem:[%s6269_s19 + $0x6e8] sm:$0xff] %v4948_v30 }
 0x520   : > { %v3100_v16 = vpop.f32.mrf.mxu0 }
 0x521   : > { %v2768_v19 = vpop.f32.mrf.mxu3  ;;  %v3429_v56 = vpop.f32.mrf.mxu1 }
 0x522   : > { %v2769_v25 = vadd.f32 %v2768_v19, %v2439_v44  ;;  %v3430_v49 = vadd.f32 %v3429_v56, %v3100_v16  ;;  %v7961_v19 = vld [vmem:[#allocation45_spill] sm:$0xff]  ;;  %v7962_v16 = vld [vmem:[#allocation46_spill] sm:$0xff] }
 0x523   : > { %2481 = vmatmul.bf16.gmra.mxu2 %v7955_v39  ;;  %3139 = vmatmul.bf16.gmra.mxu0 %v7955_v39 }
 0x524   : > { %v4947_v42 = vadd.f32 %v6883_v0, %v2769_v25  ;;  %v4951_v37 = vadd.f32 %v6873_v47, %v3430_v49  ;;  %3468 = vmatmul.bf16.gmra.mxu1 %v7956_v40 }
 0x526   : > { %5331 = vst [vmem:[%s6269_s19 + $0x6e0] sm:$0xff] %v4947_v42  ;;  %2810 = vmatmul.bf16.gmra.mxu3 %v7956_v40  ;;  %v2442_v23 = vpop.f32.mrf.mxu2 }
 0x527   : > { %5335 = vst [vmem:[%s6269_s19 + $0x700] sm:$0xff] %v4951_v37 }
 0x528   : > { %v3102_v10 = vpop.f32.mrf.mxu0 }
 0x529   : > { %v2771_v2 = vpop.f32.mrf.mxu3  ;;  %v3431_v21 = vpop.f32.mrf.mxu1 }
 0x52a   : > { %v2772_v27 = vadd.f32 %v2771_v2, %v2442_v23  ;;  %v3432_v33 = vadd.f32 %v3431_v21, %v3102_v10 }
 0x52c   : > { %v4950_v36 = vadd.f32 %v6883_v0, %v2772_v27  ;;  %v4954_v18 = vadd.f32 %v6873_v47, %v3432_v33 }
 0x52e   : > { %5334 = vst [vmem:[%s6269_s19 + $0x6f8] sm:$0xff] %v4950_v36  ;;  %v2444_v46 = vpop.f32.mrf.mxu2 }
 0x52f   : > { %5338 = vst [vmem:[%s6269_s19 + $0x718] sm:$0xff] %v4954_v18 }
 0x530   : > { %v3105_v58 = vpop.f32.mrf.mxu0 }
 0x531   : > { %v2773_v53 = vpop.f32.mrf.mxu3  ;;  %v3434_v45 = vpop.f32.mrf.mxu1 }
 0x532   : > { %v2774_v6 = vadd.f32 %v2773_v53, %v2444_v46  ;;  %v3435_v41 = vadd.f32 %v3434_v45, %v3105_v58  ;;  %v7963_v53 = vld [vmem:[#allocation47_spill] sm:$0xff]  ;;  %v7964_v58 = vld [vmem:[#allocation48_spill] sm:$0xff] }
 0x533   : > { %2486 = vmatmul.bf16.gmra.mxu2 %v7957_v59  ;;  %3144 = vmatmul.bf16.gmra.mxu0 %v7957_v59 }
 0x534   : > { %v4953_v3 = vadd.f32 %v6883_v0, %v2774_v6  ;;  %v4957_v38 = vadd.f32 %v6873_v47, %v3435_v41  ;;  %3473 = vmatmul.bf16.gmra.mxu1 %v7958_v48 }
 0x536   : > { %5337 = vst [vmem:[%s6269_s19 + $0x710] sm:$0xff] %v4953_v3  ;;  %2815 = vmatmul.bf16.gmra.mxu3 %v7958_v48  ;;  %v2447_v60 = vpop.f32.mrf.mxu2 }
 0x537   : > { %5341 = vst [vmem:[%s6269_s19 + $0x730] sm:$0xff] %v4957_v38 }
 0x538   : > { %v3107_v51 = vpop.f32.mrf.mxu0 }
 0x539   : > { %v2776_v17 = vpop.f32.mrf.mxu3  ;;  %v3436_v52 = vpop.f32.mrf.mxu1 }
 0x53a   : > { %v2777_v4 = vadd.f32 %v2776_v17, %v2447_v60  ;;  %v3437_v29 = vadd.f32 %v3436_v52, %v3107_v51 }
 0x53c   : > { %v4956_v55 = vadd.f32 %v6883_v0, %v2777_v4  ;;  %v4960_v12 = vadd.f32 %v6873_v47, %v3437_v29 }
 0x53e   : > { %5340 = vst [vmem:[%s6269_s19 + $0x728] sm:$0xff] %v4956_v55  ;;  %v2449_v62 = vpop.f32.mrf.mxu2 }
 0x53f   : > { %5344 = vst [vmem:[%s6269_s19 + $0x748] sm:$0xff] %v4960_v12 }
 0x540   : > { %v3110_v35 = vpop.f32.mrf.mxu0 }
 0x541   : > { %v2778_v63 = vpop.f32.mrf.mxu3  ;;  %v3439_v20 = vpop.f32.mrf.mxu1 }
 0x542   : > { %v2779_v54 = vadd.f32 %v2778_v63, %v2449_v62  ;;  %v3440_v43 = vadd.f32 %v3439_v20, %v3110_v35  ;;  %v7965_v63 = vld [vmem:[#allocation49_spill] sm:$0xff]  ;;  %v7966_v35 = vld [vmem:[#allocation50_spill] sm:$0xff] }
 0x543   : > { %2491 = vmatmul.bf16.gmra.mxu2 %v7959_v13  ;;  %3149 = vmatmul.bf16.gmra.mxu0 %v7959_v13 }
 0x544   : > { %v4959_v14 = vadd.f32 %v6883_v0, %v2779_v54  ;;  %v4963_v57 = vadd.f32 %v6873_v47, %v3440_v43  ;;  %3478 = vmatmul.bf16.gmra.mxu1 %v7960_v24 }
 0x546   : > { %5343 = vst [vmem:[%s6269_s19 + $0x740] sm:$0xff] %v4959_v14  ;;  %2820 = vmatmul.bf16.gmra.mxu3 %v7960_v24  ;;  %v2452_v61 = vpop.f32.mrf.mxu2 }
 0x547   : > { %5347 = vst [vmem:[%s6269_s19 + $0x760] sm:$0xff] %v4963_v57 }
 0x548   : > { %v3112_v28 = vpop.f32.mrf.mxu0 }
 0x549   : > { %v2781_v50 = vpop.f32.mrf.mxu3  ;;  %v3441_v31 = vpop.f32.mrf.mxu1 }
 0x54a   : > { %v2782_v1 = vadd.f32 %v2781_v50, %v2452_v61  ;;  %v3442_v9 = vadd.f32 %v3441_v31, %v3112_v28 }
 0x54c   : > { %v4962_v32 = vadd.f32 %v6883_v0, %v2782_v1  ;;  %v4966_v22 = vadd.f32 %v6873_v47, %v3442_v9 }
 0x54e   : > { %5346 = vst [vmem:[%s6269_s19 + $0x758] sm:$0xff] %v4962_v32  ;;  %v2454_v7 = vpop.f32.mrf.mxu2 }
 0x54f   : > { %5350 = vst [vmem:[%s6269_s19 + $0x778] sm:$0xff] %v4966_v22 }
 0x550   : > { %v3115_v26 = vpop.f32.mrf.mxu0 }
 0x551   : > { %v2783_v8 = vpop.f32.mrf.mxu3  ;;  %v3444_v15 = vpop.f32.mrf.mxu1 }
 0x552   : > { %v2784_v11 = vadd.f32 %v2783_v8, %v2454_v7  ;;  %v3445_v44 = vadd.f32 %v3444_v15, %v3115_v26  ;;  %v7967_v8 = vld [vmem:[#allocation52_spill] sm:$0xff]  ;;  %v7968_v26 = vld [vmem:[#allocation54_spill] sm:$0xff] }
 0x553   : > { %2496 = vmatmul.bf16.gmra.mxu2 %v7961_v19  ;;  %3154 = vmatmul.bf16.gmra.mxu0 %v7961_v19 }
 0x554   : > { %v4965_v30 = vadd.f32 %v6883_v0, %v2784_v11  ;;  %v4969_v25 = vadd.f32 %v6873_v47, %v3445_v44  ;;  %3483 = vmatmul.bf16.gmra.mxu1 %v7962_v16 }
 0x556   : > { %5349 = vst [vmem:[%s6269_s19 + $0x770] sm:$0xff] %v4965_v30  ;;  %2825 = vmatmul.bf16.gmra.mxu3 %v7962_v16  ;;  %v2457_v56 = vpop.f32.mrf.mxu2 }
 0x557   : > { %5353 = vst [vmem:[%s6269_s19 + $0x790] sm:$0xff] %v4969_v25 }
 0x558   : > { %v3117_v39 = vpop.f32.mrf.mxu0 }
 0x559   : > { %v2786_v42 = vpop.f32.mrf.mxu3  ;;  %v3446_v37 = vpop.f32.mrf.mxu1 }
 0x55a   : > { %v2787_v49 = vadd.f32 %v2786_v42, %v2457_v56  ;;  %v3447_v23 = vadd.f32 %v3446_v37, %v3117_v39 }
 0x55c   : > { %v4968_v40 = vadd.f32 %v6883_v0, %v2787_v49  ;;  %v4972_v2 = vadd.f32 %v6873_v47, %v3447_v23 }
 0x55e   : > { %5352 = vst [vmem:[%s6269_s19 + $0x788] sm:$0xff] %v4968_v40  ;;  %v2459_v27 = vpop.f32.mrf.mxu2 }
 0x55f   : > { %5356 = vst [vmem:[%s6269_s19 + $0x7a8] sm:$0xff] %v4972_v2 }
 0x560   : > { %v3120_v36 = vpop.f32.mrf.mxu0 }
 0x561   : > { %v2788_v10 = vpop.f32.mrf.mxu3  ;;  %v3449_v33 = vpop.f32.mrf.mxu1 }
 0x562   : > { %v2789_v21 = vadd.f32 %v2788_v10, %v2459_v27  ;;  %v3450_v46 = vadd.f32 %v3449_v33, %v3120_v36  ;;  %v7969_v10 = vld [vmem:[#allocation56_spill] sm:$0xff]  ;;  %v7970_v36 = vld [vmem:[#allocation58_spill] sm:$0xff] }
 0x563   : > { %2501 = vmatmul.bf16.gmra.mxu2 %v7963_v53  ;;  %3159 = vmatmul.bf16.gmra.mxu0 %v7963_v53 }
 0x564   : > { %v4971_v18 = vadd.f32 %v6883_v0, %v2789_v21  ;;  %v4975_v6 = vadd.f32 %v6873_v47, %v3450_v46  ;;  %3488 = vmatmul.bf16.gmra.mxu1 %v7964_v58 }
 0x566   : > { %5355 = vst [vmem:[%s6269_s19 + $0x7a0] sm:$0xff] %v4971_v18  ;;  %2830 = vmatmul.bf16.gmra.mxu3 %v7964_v58  ;;  %v2462_v45 = vpop.f32.mrf.mxu2 }
 0x567   : > { %5359 = vst [vmem:[%s6269_s19 + $0x7c0] sm:$0xff] %v4975_v6 }
 0x568   : > { %v3122_v59 = vpop.f32.mrf.mxu0 }
 0x569   : > { %v2791_v3 = vpop.f32.mrf.mxu3  ;;  %v3451_v38 = vpop.f32.mrf.mxu1 }
 0x56a   : > { %v2792_v41 = vadd.f32 %v2791_v3, %v2462_v45  ;;  %v3452_v60 = vadd.f32 %v3451_v38, %v3122_v59 }
 0x56c   : > { %v4974_v48 = vadd.f32 %v6883_v0, %v2792_v41  ;;  %v4978_v17 = vadd.f32 %v6873_v47, %v3452_v60 }
 0x56e   : > { %5358 = vst [vmem:[%s6269_s19 + $0x7b8] sm:$0xff] %v4974_v48  ;;  %v2464_v4 = vpop.f32.mrf.mxu2 }
 0x56f   : > { %5362 = vst [vmem:[%s6269_s19 + $0x7d8] sm:$0xff] %v4978_v17 }
 0x570   : > { %v3125_v55 = vpop.f32.mrf.mxu0 }
 0x571   : > { %v2793_v51 = vpop.f32.mrf.mxu3  ;;  %v3454_v29 = vpop.f32.mrf.mxu1 }
 0x572   : > { %v2794_v52 = vadd.f32 %v2793_v51, %v2464_v4  ;;  %v3455_v62 = vadd.f32 %v3454_v29, %v3125_v55  ;;  %v7971_v51 = vld [vmem:[#allocation60_spill] sm:$0xff]  ;;  %v7972_v55 = vld [vmem:[#allocation62_spill] sm:$0xff] }
 0x573   : > { %2506 = vmatmul.bf16.gmra.mxu2 %v7965_v63  ;;  %3164 = vmatmul.bf16.gmra.mxu0 %v7965_v63 }
 0x574   : > { %v4977_v12 = vadd.f32 %v6883_v0, %v2794_v52  ;;  %v4981_v54 = vadd.f32 %v6873_v47, %v3455_v62  ;;  %3493 = vmatmul.bf16.gmra.mxu1 %v7966_v35 }
 0x576   : > { %5361 = vst [vmem:[%s6269_s19 + $0x7d0] sm:$0xff] %v4977_v12  ;;  %2835 = vmatmul.bf16.gmra.mxu3 %v7966_v35  ;;  %v2467_v20 = vpop.f32.mrf.mxu2 }
 0x577   : > { %5365 = vst [vmem:[%s6269_s19 + $0x7f0] sm:$0xff] %v4981_v54 }
 0x578   : > { %v3127_v13 = vpop.f32.mrf.mxu0 }
 0x579   : > { %v2796_v14 = vpop.f32.mrf.mxu3  ;;  %v3456_v57 = vpop.f32.mrf.mxu1 }
 0x57a   : > { %v2797_v43 = vadd.f32 %v2796_v14, %v2467_v20  ;;  %v3457_v61 = vadd.f32 %v3456_v57, %v3127_v13 }
 0x57c   : > { %v4980_v24 = vadd.f32 %v6883_v0, %v2797_v43  ;;  %v4984_v50 = vadd.f32 %v6873_v47, %v3457_v61 }
 0x57e   : > { %5364 = vst [vmem:[%s6269_s19 + $0x7e8] sm:$0xff] %v4980_v24  ;;  %v2469_v1 = vpop.f32.mrf.mxu2 }
 0x57f   : > { %5368 = vst [vmem:[%s6269_s19 + $0x808] sm:$0xff] %v4984_v50 }
 0x580   : > { %v3130_v32 = vpop.f32.mrf.mxu0 }
 0x581   : > { %v2798_v28 = vpop.f32.mrf.mxu3  ;;  %v3459_v9 = vpop.f32.mrf.mxu1 }
 0x582   : > { %v2799_v31 = vadd.f32 %v2798_v28, %v2469_v1  ;;  %v3460_v7 = vadd.f32 %v3459_v9, %v3130_v32  ;;  %v7973_v28 = vld [vmem:[#allocation64_spill] sm:$0xff]  ;;  %v7974_v32 = vld [vmem:[#allocation66_spill] sm:$0xff] }
 0x583   : > { %2511 = vmatmul.bf16.gmra.mxu2 %v7967_v8  ;;  %3169 = vmatmul.bf16.gmra.mxu0 %v7967_v8 }
 0x584   : > { %v4983_v22 = vadd.f32 %v6883_v0, %v2799_v31  ;;  %v4987_v11 = vadd.f32 %v6873_v47, %v3460_v7  ;;  %3498 = vmatmul.bf16.gmra.mxu1 %v7968_v26 }
 0x586   : > { %5367 = vst [vmem:[%s6269_s19 + $0x800] sm:$0xff] %v4983_v22  ;;  %2840 = vmatmul.bf16.gmra.mxu3 %v7968_v26  ;;  %v2472_v15 = vpop.f32.mrf.mxu2 }
 0x587   : > { %5371 = vst [vmem:[%s6269_s19 + $0x820] sm:$0xff] %v4987_v11 }
 0x588   : > { %v3132_v19 = vpop.f32.mrf.mxu0 }
 0x589   : > { %v2801_v30 = vpop.f32.mrf.mxu3  ;;  %v3461_v25 = vpop.f32.mrf.mxu1 }
 0x58a   : > { %v2802_v44 = vadd.f32 %v2801_v30, %v2472_v15  ;;  %v3462_v56 = vadd.f32 %v3461_v25, %v3132_v19 }
 0x58c   : > { %v4986_v16 = vadd.f32 %v6883_v0, %v2802_v44  ;;  %v4990_v42 = vadd.f32 %v6873_v47, %v3462_v56 }
 0x58e   : > { %5370 = vst [vmem:[%s6269_s19 + $0x818] sm:$0xff] %v4986_v16  ;;  %v2474_v49 = vpop.f32.mrf.mxu2 }
 0x58f   : > { %5374 = vst [vmem:[%s6269_s19 + $0x838] sm:$0xff] %v4990_v42 }
 0x590   : > { %v3135_v40 = vpop.f32.mrf.mxu0 }
 0x591   : > { %v2803_v39 = vpop.f32.mrf.mxu3  ;;  %v3464_v23 = vpop.f32.mrf.mxu1 }
 0x592   : > { %v2804_v37 = vadd.f32 %v2803_v39, %v2474_v49  ;;  %v3465_v27 = vadd.f32 %v3464_v23, %v3135_v40  ;;  %v7975_v39 = vld [vmem:[#allocation68_spill] sm:$0xff]  ;;  %v7976_v40 = vld [vmem:[#allocation70_spill] sm:$0xff] }
 0x593   : > { %2516 = vmatmul.bf16.gmra.mxu2 %v7969_v10  ;;  %3174 = vmatmul.bf16.gmra.mxu0 %v7969_v10 }
 0x594   : > { %v4989_v2 = vadd.f32 %v6883_v0, %v2804_v37  ;;  %v4993_v21 = vadd.f32 %v6873_v47, %v3465_v27  ;;  %3503 = vmatmul.bf16.gmra.mxu1 %v7970_v36 }
 0x596   : > { %5373 = vst [vmem:[%s6269_s19 + $0x830] sm:$0xff] %v4989_v2  ;;  %2845 = vmatmul.bf16.gmra.mxu3 %v7970_v36  ;;  %v2477_v33 = vpop.f32.mrf.mxu2 }
 0x597   : > { %5377 = vst [vmem:[%s6269_s19 + $0x850] sm:$0xff] %v4993_v21 }
 0x598   : > { %v3137_v53 = vpop.f32.mrf.mxu0 }
 0x599   : > { %v2806_v18 = vpop.f32.mrf.mxu3  ;;  %v3466_v6 = vpop.f32.mrf.mxu1 }
 0x59a   : > { %v2807_v46 = vadd.f32 %v2806_v18, %v2477_v33  ;;  %v3467_v45 = vadd.f32 %v3466_v6, %v3137_v53 }
 0x59c   : > { %v4992_v58 = vadd.f32 %v6883_v0, %v2807_v46  ;;  %v4996_v3 = vadd.f32 %v6873_v47, %v3467_v45 }
 0x59e   : > { %5376 = vst [vmem:[%s6269_s19 + $0x848] sm:$0xff] %v4992_v58  ;;  %v2479_v41 = vpop.f32.mrf.mxu2 }
 0x59f   : > { %5380 = vst [vmem:[%s6269_s19 + $0x868] sm:$0xff] %v4996_v3 }
 0x5a0   : > { %v3140_v48 = vpop.f32.mrf.mxu0 }
 0x5a1   : > { %v2808_v59 = vpop.f32.mrf.mxu3  ;;  %v3469_v60 = vpop.f32.mrf.mxu1 }
 0x5a2   : > { %v2809_v38 = vadd.f32 %v2808_v59, %v2479_v41  ;;  %v3470_v4 = vadd.f32 %v3469_v60, %v3140_v48  ;;  %v7977_v59 = vld [vmem:[#allocation72_spill] sm:$0xff]  ;;  %v7978_v48 = vld [vmem:[#allocation74_spill] sm:$0xff] }
 0x5a3   : > { %2521 = vmatmul.bf16.gmra.mxu2 %v7971_v51  ;;  %3179 = vmatmul.bf16.gmra.mxu0 %v7971_v51 }
 0x5a4   : > { %v4995_v17 = vadd.f32 %v6883_v0, %v2809_v38  ;;  %v4999_v52 = vadd.f32 %v6873_v47, %v3470_v4  ;;  %3508 = vmatmul.bf16.gmra.mxu1 %v7972_v55 }
 0x5a6   : > { %5379 = vst [vmem:[%s6269_s19 + $0x860] sm:$0xff] %v4995_v17  ;;  %2850 = vmatmul.bf16.gmra.mxu3 %v7972_v55  ;;  %v2482_v29 = vpop.f32.mrf.mxu2 }
 0x5a7   : > { %5383 = vst [vmem:[%s6269_s19 + $0x880] sm:$0xff] %v4999_v52 }
 0x5a8   : > { %v3142_v63 = vpop.f32.mrf.mxu0 }
 0x5a9   : > { %v2811_v12 = vpop.f32.mrf.mxu3  ;;  %v3471_v54 = vpop.f32.mrf.mxu1 }
 0x5aa   : > { %v2812_v62 = vadd.f32 %v2811_v12, %v2482_v29  ;;  %v3472_v20 = vadd.f32 %v3471_v54, %v3142_v63 }
 0x5ac   : > { %v4998_v35 = vadd.f32 %v6883_v0, %v2812_v62  ;;  %v5002_v14 = vadd.f32 %v6873_v47, %v3472_v20 }
 0x5ae   : > { %5382 = vst [vmem:[%s6269_s19 + $0x878] sm:$0xff] %v4998_v35  ;;  %v2484_v43 = vpop.f32.mrf.mxu2 }
 0x5af   : > { %5386 = vst [vmem:[%s6269_s19 + $0x898] sm:$0xff] %v5002_v14 }
 0x5b0   : > { %v3145_v24 = vpop.f32.mrf.mxu0 }
 0x5b1   : > { %v2813_v13 = vpop.f32.mrf.mxu3  ;;  %v3474_v61 = vpop.f32.mrf.mxu1 }
 0x5b2   : > { %v2814_v57 = vadd.f32 %v2813_v13, %v2484_v43  ;;  %v3475_v1 = vadd.f32 %v3474_v61, %v3145_v24  ;;  %v7979_v13 = vld [vmem:[#allocation76_spill] sm:$0xff]  ;;  %v7980_v24 = vld [vmem:[#allocation78_spill] sm:$0xff] }
 0x5b3   : > { %2526 = vmatmul.bf16.gmra.mxu2 %v7973_v28  ;;  %3184 = vmatmul.bf16.gmra.mxu0 %v7973_v28 }
 0x5b4   : > { %v5001_v50 = vadd.f32 %v6883_v0, %v2814_v57  ;;  %v5005_v31 = vadd.f32 %v6873_v47, %v3475_v1  ;;  %3513 = vmatmul.bf16.gmra.mxu1 %v7974_v32 }
 0x5b6   : > { %5385 = vst [vmem:[%s6269_s19 + $0x890] sm:$0xff] %v5001_v50  ;;  %2855 = vmatmul.bf16.gmra.mxu3 %v7974_v32  ;;  %v2487_v9 = vpop.f32.mrf.mxu2 }
 0x5b7   : > { %5389 = vst [vmem:[%s6269_s19 + $0x8b0] sm:$0xff] %v5005_v31 }
 0x5b8   : > { %v3147_v8 = vpop.f32.mrf.mxu0 }
 0x5b9   : > { %v2816_v22 = vpop.f32.mrf.mxu3  ;;  %v3476_v11 = vpop.f32.mrf.mxu1 }
 0x5ba   : > { %v2817_v7 = vadd.f32 %v2816_v22, %v2487_v9  ;;  %v3477_v15 = vadd.f32 %v3476_v11, %v3147_v8 }
 0x5bc   : > { %v5004_v26 = vadd.f32 %v6883_v0, %v2817_v7  ;;  %v5008_v30 = vadd.f32 %v6873_v47, %v3477_v15 }
 0x5be   : > { %5388 = vst [vmem:[%s6269_s19 + $0x8a8] sm:$0xff] %v5004_v26  ;;  %v2489_v44 = vpop.f32.mrf.mxu2 }
 0x5bf   : > { %5392 = vst [vmem:[%s6269_s19 + $0x8c8] sm:$0xff] %v5008_v30 }
 0x5c0   : > { %v3150_v16 = vpop.f32.mrf.mxu0 }
 0x5c1   : > { %v2818_v19 = vpop.f32.mrf.mxu3  ;;  %v3479_v56 = vpop.f32.mrf.mxu1 }
 0x5c2   : > { %v2819_v25 = vadd.f32 %v2818_v19, %v2489_v44  ;;  %v3480_v49 = vadd.f32 %v3479_v56, %v3150_v16  ;;  %v7981_v19 = vld [vmem:[#allocation80_spill] sm:$0xff]  ;;  %v7982_v16 = vld [vmem:[#allocation82_spill] sm:$0xff] }
 0x5c3   : > { %2531 = vmatmul.bf16.gmra.mxu2 %v7975_v39  ;;  %3189 = vmatmul.bf16.gmra.mxu0 %v7975_v39 }
 0x5c4   : > { %v5007_v42 = vadd.f32 %v6883_v0, %v2819_v25  ;;  %v5011_v37 = vadd.f32 %v6873_v47, %v3480_v49  ;;  %3518 = vmatmul.bf16.gmra.mxu1 %v7976_v40 }
 0x5c6   : > { %5391 = vst [vmem:[%s6269_s19 + $0x8c0] sm:$0xff] %v5007_v42  ;;  %2860 = vmatmul.bf16.gmra.mxu3 %v7976_v40  ;;  %v2492_v23 = vpop.f32.mrf.mxu2 }
 0x5c7   : > { %5395 = vst [vmem:[%s6269_s19 + $0x8e0] sm:$0xff] %v5011_v37 }
 0x5c8   : > { %v3152_v10 = vpop.f32.mrf.mxu0 }
 0x5c9   : > { %v2821_v2 = vpop.f32.mrf.mxu3  ;;  %v3481_v21 = vpop.f32.mrf.mxu1 }
 0x5ca   : > { %v2822_v27 = vadd.f32 %v2821_v2, %v2492_v23  ;;  %v3482_v33 = vadd.f32 %v3481_v21, %v3152_v10 }
 0x5cc   : > { %v5010_v36 = vadd.f32 %v6883_v0, %v2822_v27  ;;  %v5014_v18 = vadd.f32 %v6873_v47, %v3482_v33 }
 0x5ce   : > { %5394 = vst [vmem:[%s6269_s19 + $0x8d8] sm:$0xff] %v5010_v36  ;;  %v2494_v46 = vpop.f32.mrf.mxu2 }
 0x5cf   : > { %5398 = vst [vmem:[%s6269_s19 + $0x8f8] sm:$0xff] %v5014_v18 }
 0x5d0   : > { %v3155_v58 = vpop.f32.mrf.mxu0 }
 0x5d1   : > { %v2823_v53 = vpop.f32.mrf.mxu3  ;;  %v3484_v45 = vpop.f32.mrf.mxu1 }
 0x5d2   : > { %v2824_v6 = vadd.f32 %v2823_v53, %v2494_v46  ;;  %v3485_v41 = vadd.f32 %v3484_v45, %v3155_v58  ;;  %v7983_v53 = vld [vmem:[#allocation83_spill] sm:$0xff]  ;;  %v7984_v58 = vld [vmem:[#allocation84_spill] sm:$0xff] }
 0x5d3   : > { %2536 = vmatmul.bf16.gmra.mxu2 %v7977_v59  ;;  %3194 = vmatmul.bf16.gmra.mxu0 %v7977_v59 }
 0x5d4   : > { %v5013_v3 = vadd.f32 %v6883_v0, %v2824_v6  ;;  %v5017_v38 = vadd.f32 %v6873_v47, %v3485_v41  ;;  %3523 = vmatmul.bf16.gmra.mxu1 %v7978_v48 }
 0x5d6   : > { %5397 = vst [vmem:[%s6269_s19 + $0x8f0] sm:$0xff] %v5013_v3  ;;  %2865 = vmatmul.bf16.gmra.mxu3 %v7978_v48  ;;  %v2497_v60 = vpop.f32.mrf.mxu2 }
 0x5d7   : > { %5401 = vst [vmem:[%s6269_s19 + $0x910] sm:$0xff] %v5017_v38 }
 0x5d8   : > { %v3157_v51 = vpop.f32.mrf.mxu0 }
 0x5d9   : > { %v2826_v17 = vpop.f32.mrf.mxu3  ;;  %v3486_v52 = vpop.f32.mrf.mxu1 }
 0x5da   : > { %v2827_v4 = vadd.f32 %v2826_v17, %v2497_v60  ;;  %v3487_v29 = vadd.f32 %v3486_v52, %v3157_v51 }
 0x5dc   : > { %v5016_v55 = vadd.f32 %v6883_v0, %v2827_v4  ;;  %v5020_v12 = vadd.f32 %v6873_v47, %v3487_v29 }
 0x5de   : > { %5400 = vst [vmem:[%s6269_s19 + $0x908] sm:$0xff] %v5016_v55  ;;  %v2499_v62 = vpop.f32.mrf.mxu2 }
 0x5df   : > { %5404 = vst [vmem:[%s6269_s19 + $0x928] sm:$0xff] %v5020_v12 }
 0x5e0   : > { %v3160_v35 = vpop.f32.mrf.mxu0 }
 0x5e1   : > { %v2828_v63 = vpop.f32.mrf.mxu3  ;;  %v3489_v20 = vpop.f32.mrf.mxu1 }
 0x5e2   : > { %v2829_v54 = vadd.f32 %v2828_v63, %v2499_v62  ;;  %v3490_v43 = vadd.f32 %v3489_v20, %v3160_v35  ;;  %v7985_v63 = vld [vmem:[#allocation85_spill] sm:$0xff]  ;;  %v7986_v35 = vld [vmem:[#allocation86_spill] sm:$0xff] }
 0x5e3   : > { %2541 = vmatmul.bf16.gmra.mxu2 %v7979_v13  ;;  %3199 = vmatmul.bf16.gmra.mxu0 %v7979_v13 }
 0x5e4   : > { %v5019_v14 = vadd.f32 %v6883_v0, %v2829_v54  ;;  %v5023_v57 = vadd.f32 %v6873_v47, %v3490_v43  ;;  %3528 = vmatmul.bf16.gmra.mxu1 %v7980_v24 }
 0x5e6   : > { %5403 = vst [vmem:[%s6269_s19 + $0x920] sm:$0xff] %v5019_v14  ;;  %2870 = vmatmul.bf16.gmra.mxu3 %v7980_v24  ;;  %v2502_v61 = vpop.f32.mrf.mxu2 }
 0x5e7   : > { %5407 = vst [vmem:[%s6269_s19 + $0x940] sm:$0xff] %v5023_v57 }
 0x5e8   : > { %v3162_v28 = vpop.f32.mrf.mxu0 }
 0x5e9   : > { %v2831_v50 = vpop.f32.mrf.mxu3  ;;  %v3491_v31 = vpop.f32.mrf.mxu1 }
 0x5ea   : > { %v2832_v1 = vadd.f32 %v2831_v50, %v2502_v61  ;;  %v3492_v9 = vadd.f32 %v3491_v31, %v3162_v28 }
 0x5ec   : > { %v5022_v32 = vadd.f32 %v6883_v0, %v2832_v1  ;;  %v5026_v22 = vadd.f32 %v6873_v47, %v3492_v9 }
 0x5ee   : > { %5406 = vst [vmem:[%s6269_s19 + $0x938] sm:$0xff] %v5022_v32  ;;  %v2504_v7 = vpop.f32.mrf.mxu2 }
 0x5ef   : > { %5410 = vst [vmem:[%s6269_s19 + $0x958] sm:$0xff] %v5026_v22 }
 0x5f0   : > { %v3165_v26 = vpop.f32.mrf.mxu0 }
 0x5f1   : > { %v2833_v8 = vpop.f32.mrf.mxu3  ;;  %v3494_v15 = vpop.f32.mrf.mxu1 }
 0x5f2   : > { %v2834_v11 = vadd.f32 %v2833_v8, %v2504_v7  ;;  %v3495_v44 = vadd.f32 %v3494_v15, %v3165_v26  ;;  %v7987_v8 = vld [vmem:[#allocation87_spill] sm:$0xff]  ;;  %v7988_v26 = vld [vmem:[#allocation89_spill] sm:$0xff] }
 0x5f3   : > { %2546 = vmatmul.bf16.gmra.mxu2 %v7981_v19  ;;  %3204 = vmatmul.bf16.gmra.mxu0 %v7981_v19 }
 0x5f4   : > { %v5025_v30 = vadd.f32 %v6883_v0, %v2834_v11  ;;  %v5029_v25 = vadd.f32 %v6873_v47, %v3495_v44  ;;  %3533 = vmatmul.bf16.gmra.mxu1 %v7982_v16 }
 0x5f6   : > { %5409 = vst [vmem:[%s6269_s19 + $0x950] sm:$0xff] %v5025_v30  ;;  %2875 = vmatmul.bf16.gmra.mxu3 %v7982_v16  ;;  %v2507_v56 = vpop.f32.mrf.mxu2 }
 0x5f7   : > { %5413 = vst [vmem:[%s6269_s19 + $0x970] sm:$0xff] %v5029_v25 }
 0x5f8   : > { %v3167_v39 = vpop.f32.mrf.mxu0 }
 0x5f9   : > { %v2836_v42 = vpop.f32.mrf.mxu3  ;;  %v3496_v37 = vpop.f32.mrf.mxu1 }
 0x5fa   : > { %v2837_v49 = vadd.f32 %v2836_v42, %v2507_v56  ;;  %v3497_v23 = vadd.f32 %v3496_v37, %v3167_v39 }
 0x5fc   : > { %v5028_v40 = vadd.f32 %v6883_v0, %v2837_v49  ;;  %v5032_v2 = vadd.f32 %v6873_v47, %v3497_v23 }
 0x5fe   : > { %5412 = vst [vmem:[%s6269_s19 + $0x968] sm:$0xff] %v5028_v40  ;;  %v2509_v27 = vpop.f32.mrf.mxu2 }
 0x5ff   : > { %5416 = vst [vmem:[%s6269_s19 + $0x988] sm:$0xff] %v5032_v2 }
 0x600   : > { %v3170_v36 = vpop.f32.mrf.mxu0 }
 0x601   : > { %v2838_v10 = vpop.f32.mrf.mxu3  ;;  %v3499_v33 = vpop.f32.mrf.mxu1 }
 0x602   : > { %v2839_v21 = vadd.f32 %v2838_v10, %v2509_v27  ;;  %v3500_v46 = vadd.f32 %v3499_v33, %v3170_v36  ;;  %v7989_v10 = vld [vmem:[#allocation91_spill] sm:$0xff]  ;;  %v7990_v36 = vld [vmem:[#allocation93_spill] sm:$0xff] }
 0x603   : > { %2551 = vmatmul.bf16.gmra.mxu2 %v7983_v53  ;;  %3209 = vmatmul.bf16.gmra.mxu0 %v7983_v53 }
 0x604   : > { %v5031_v18 = vadd.f32 %v6883_v0, %v2839_v21  ;;  %v5035_v6 = vadd.f32 %v6873_v47, %v3500_v46  ;;  %3538 = vmatmul.bf16.gmra.mxu1 %v7984_v58 }
 0x606   : > { %5415 = vst [vmem:[%s6269_s19 + $0x980] sm:$0xff] %v5031_v18  ;;  %2880 = vmatmul.bf16.gmra.mxu3 %v7984_v58  ;;  %v2512_v45 = vpop.f32.mrf.mxu2 }
 0x607   : > { %5419 = vst [vmem:[%s6269_s19 + $0x9a0] sm:$0xff] %v5035_v6 }
 0x608   : > { %v3172_v59 = vpop.f32.mrf.mxu0 }
 0x609   : > { %v2841_v3 = vpop.f32.mrf.mxu3  ;;  %v3501_v38 = vpop.f32.mrf.mxu1 }
 0x60a   : > { %v2842_v41 = vadd.f32 %v2841_v3, %v2512_v45  ;;  %v3502_v60 = vadd.f32 %v3501_v38, %v3172_v59 }
 0x60c   : > { %v5034_v48 = vadd.f32 %v6883_v0, %v2842_v41  ;;  %v5038_v17 = vadd.f32 %v6873_v47, %v3502_v60 }
 0x60e   : > { %5418 = vst [vmem:[%s6269_s19 + $0x998] sm:$0xff] %v5034_v48  ;;  %v2514_v4 = vpop.f32.mrf.mxu2 }
 0x60f   : > { %5422 = vst [vmem:[%s6269_s19 + $0x9b8] sm:$0xff] %v5038_v17 }
 0x610   : > { %v3175_v55 = vpop.f32.mrf.mxu0 }
 0x611   : > { %v2843_v51 = vpop.f32.mrf.mxu3  ;;  %v3504_v29 = vpop.f32.mrf.mxu1 }
 0x612   : > { %v2844_v52 = vadd.f32 %v2843_v51, %v2514_v4  ;;  %v3505_v62 = vadd.f32 %v3504_v29, %v3175_v55 }
 0x613   : > { %2556 = vmatmul.bf16.gmra.mxu2 %v7985_v63  ;;  %3214 = vmatmul.bf16.gmra.mxu0 %v7985_v63 }
 0x614   : > { %v5037_v12 = vadd.f32 %v6883_v0, %v2844_v52  ;;  %v5041_v54 = vadd.f32 %v6873_v47, %v3505_v62  ;;  %3543 = vmatmul.bf16.gmra.mxu1 %v7986_v35 }
 0x616   : > { %5421 = vst [vmem:[%s6269_s19 + $0x9b0] sm:$0xff] %v5037_v12  ;;  %2885 = vmatmul.bf16.gmra.mxu3 %v7986_v35  ;;  %v2517_v20 = vpop.f32.mrf.mxu2 }
 0x617   : > { %5425 = vst [vmem:[%s6269_s19 + $0x9d0] sm:$0xff] %v5041_v54 }
 0x618   : > { %v3177_v13 = vpop.f32.mrf.mxu0 }
 0x619   : > { %v2846_v14 = vpop.f32.mrf.mxu3  ;;  %v3506_v57 = vpop.f32.mrf.mxu1 }
 0x61a   : > { %v2847_v43 = vadd.f32 %v2846_v14, %v2517_v20  ;;  %v3507_v61 = vadd.f32 %v3506_v57, %v3177_v13 }
 0x61c   : > { %v5040_v24 = vadd.f32 %v6883_v0, %v2847_v43  ;;  %v5044_v50 = vadd.f32 %v6873_v47, %v3507_v61 }
 0x61e   : > { %5424 = vst [vmem:[%s6269_s19 + $0x9c8] sm:$0xff] %v5040_v24  ;;  %v2519_v1 = vpop.f32.mrf.mxu2 }
 0x61f   : > { %5428 = vst [vmem:[%s6269_s19 + $0x9e8] sm:$0xff] %v5044_v50 }
 0x620   : > { %v3180_v32 = vpop.f32.mrf.mxu0 }
 0x621   : > { %v2848_v28 = vpop.f32.mrf.mxu3  ;;  %v3509_v9 = vpop.f32.mrf.mxu1 }
 0x622   : > { %v2849_v31 = vadd.f32 %v2848_v28, %v2519_v1  ;;  %v3510_v7 = vadd.f32 %v3509_v9, %v3180_v32 }
 0x623   : > { %2561 = vmatmul.bf16.gmra.mxu2 %v7987_v8  ;;  %3219 = vmatmul.bf16.gmra.mxu0 %v7987_v8 }
 0x624   : > { %v5043_v22 = vadd.f32 %v6883_v0, %v2849_v31  ;;  %v5047_v11 = vadd.f32 %v6873_v47, %v3510_v7  ;;  %3548 = vmatmul.bf16.gmra.mxu1 %v7988_v26 }
 0x626   : > { %5427 = vst [vmem:[%s6269_s19 + $0x9e0] sm:$0xff] %v5043_v22  ;;  %2890 = vmatmul.bf16.gmra.mxu3 %v7988_v26  ;;  %v2522_v15 = vpop.f32.mrf.mxu2 }
 0x627   : > { %5431 = vst [vmem:[%s6269_s19 + $0xa00] sm:$0xff] %v5047_v11 }
 0x628   : > { %v3182_v19 = vpop.f32.mrf.mxu0 }
 0x629   : > { %v2851_v30 = vpop.f32.mrf.mxu3  ;;  %v3511_v25 = vpop.f32.mrf.mxu1 }
 0x62a   : > { %v2852_v44 = vadd.f32 %v2851_v30, %v2522_v15  ;;  %v3512_v56 = vadd.f32 %v3511_v25, %v3182_v19 }
 0x62c   : > { %v5046_v16 = vadd.f32 %v6883_v0, %v2852_v44  ;;  %v5050_v42 = vadd.f32 %v6873_v47, %v3512_v56 }
 0x62e   : > { %5430 = vst [vmem:[%s6269_s19 + $0x9f8] sm:$0xff] %v5046_v16  ;;  %v2524_v49 = vpop.f32.mrf.mxu2 }
 0x62f   : > { %5434 = vst [vmem:[%s6269_s19 + $0xa18] sm:$0xff] %v5050_v42 }
 0x630   : > { %v3185_v40 = vpop.f32.mrf.mxu0 }
 0x631   : > { %v2853_v39 = vpop.f32.mrf.mxu3  ;;  %v3514_v23 = vpop.f32.mrf.mxu1 }
 0x632   : > { %v2854_v37 = vadd.f32 %v2853_v39, %v2524_v49  ;;  %v3515_v27 = vadd.f32 %v3514_v23, %v3185_v40 }
 0x633   : > { %2566 = vmatmul.bf16.gmra.mxu2 %v7989_v10  ;;  %3224 = vmatmul.bf16.gmra.mxu0 %v7989_v10 }
 0x634   : > { %v5049_v2 = vadd.f32 %v6883_v0, %v2854_v37  ;;  %v5053_v21 = vadd.f32 %v6873_v47, %v3515_v27  ;;  %3553 = vmatmul.bf16.gmra.mxu1 %v7990_v36 }
 0x636   : > { %5433 = vst [vmem:[%s6269_s19 + $0xa10] sm:$0xff] %v5049_v2  ;;  %2895 = vmatmul.bf16.gmra.mxu3 %v7990_v36  ;;  %v2527_v33 = vpop.f32.mrf.mxu2 }
 0x637   : > { %5437 = vst [vmem:[%s6269_s19 + $0xa30] sm:$0xff] %v5053_v21 }
 0x638   : > { %v3187_v53 = vpop.f32.mrf.mxu0 }
 0x639   : > { %v2856_v18 = vpop.f32.mrf.mxu3  ;;  %v3516_v6 = vpop.f32.mrf.mxu1 }
 0x63a   : > { %v2857_v46 = vadd.f32 %v2856_v18, %v2527_v33  ;;  %v3517_v45 = vadd.f32 %v3516_v6, %v3187_v53 }
 0x63c   : > { %v5052_v58 = vadd.f32 %v6883_v0, %v2857_v46  ;;  %v5056_v3 = vadd.f32 %v6873_v47, %v3517_v45 }
 0x63e   : > { %5436 = vst [vmem:[%s6269_s19 + $0xa28] sm:$0xff] %v5052_v58  ;;  %v2529_v41 = vpop.f32.mrf.mxu2 }
 0x63f   : > { %5440 = vst [vmem:[%s6269_s19 + $0xa48] sm:$0xff] %v5056_v3 }
 0x640   : > { %v3190_v48 = vpop.f32.mrf.mxu0 }
 0x641   : > { %v2858_v59 = vpop.f32.mrf.mxu3  ;;  %v3519_v60 = vpop.f32.mrf.mxu1 }
 0x642   : > { %v2859_v38 = vadd.f32 %v2858_v59, %v2529_v41  ;;  %v3520_v4 = vadd.f32 %v3519_v60, %v3190_v48 }
 0x643   : > { %2571 = vmatmul.bf16.gmra.mxu2 %v6758_v34  ;;  %3229 = vmatmul.bf16.gmra.mxu0 %v6758_v34 }
 0x644   : > { %v5055_v17 = vadd.f32 %v6883_v0, %v2859_v38  ;;  %v5059_v51 = vadd.f32 %v6873_v47, %v3520_v4  ;;  %3558 = vmatmul.bf16.gmra.mxu1 %v6762_v5 }
 0x646   : > { %5439 = vst [vmem:[%s6269_s19 + $0xa40] sm:$0xff] %v5055_v17  ;;  %2900 = vmatmul.bf16.gmra.mxu3 %v6762_v5  ;;  %v2532_v52 = vpop.f32.mrf.mxu2 }
 0x647   : > { %5443 = vst [vmem:[%s6269_s19 + $0xa60] sm:$0xff] %v5059_v51 }
 0x648   : > { %v3192_v12 = vpop.f32.mrf.mxu0 }
 0x649   : > { %v2861_v55 = vpop.f32.mrf.mxu3  ;;  %v3521_v62 = vpop.f32.mrf.mxu1 }
 0x64a   : > { %v2862_v29 = vadd.f32 %v2861_v55, %v2532_v52  ;;  %v3522_v54 = vadd.f32 %v3521_v62, %v3192_v12 }
 0x64c   : > { %v5058_v63 = vadd.f32 %v6883_v0, %v2862_v29  ;;  %v5062_v34 = vadd.f32 %v6873_v47, %v3522_v54 }
 0x64e   : > { %5442 = vst [vmem:[%s6269_s19 + $0xa58] sm:$0xff] %v5058_v63  ;;  %v2534_v35 = vpop.f32.mrf.mxu2 }
 0x64f   : > { %5446 = vst [vmem:[%s6269_s19 + $0xa78] sm:$0xff] %v5062_v34 }
 0x650   : > { %v3195_v5 = vpop.f32.mrf.mxu0 }
 0x651   : > { %v2863_v20 = vpop.f32.mrf.mxu3  ;;  %v3524_v43 = vpop.f32.mrf.mxu1 }
 0x652   : > { %v2864_v14 = vadd.f32 %v2863_v20, %v2534_v35  ;;  %v3525_v57 = vadd.f32 %v3524_v43, %v3195_v5 }
 0x654   : > { %v5061_v13 = vadd.f32 %v6883_v0, %v2864_v14  ;;  %v5065_v24 = vadd.f32 %v6873_v47, %v3525_v57 }
 0x656   : > { %5445 = vst [vmem:[%s6269_s19 + $0xa70] sm:$0xff] %v5061_v13  ;;  %v2537_v61 = vpop.f32.mrf.mxu2 }
 0x657   : > { %5449 = vst [vmem:[%s6269_s19 + $0xa90] sm:$0xff] %v5065_v24 }
 0x658   : > { %v3197_v28 = vpop.f32.mrf.mxu0 }
 0x659   : > { %v2866_v50 = vpop.f32.mrf.mxu3  ;;  %v3526_v31 = vpop.f32.mrf.mxu1 }
 0x65a   : > { %v2867_v1 = vadd.f32 %v2866_v50, %v2537_v61  ;;  %v3527_v9 = vadd.f32 %v3526_v31, %v3197_v28 }
 0x65c   : > { %v5064_v32 = vadd.f32 %v6883_v0, %v2867_v1  ;;  %v5068_v22 = vadd.f32 %v6873_v47, %v3527_v9 }
 0x65e   : > { %5448 = vst [vmem:[%s6269_s19 + $0xa88] sm:$0xff] %v5064_v32  ;;  %v2539_v7 = vpop.f32.mrf.mxu2 }
 0x65f   : > { %5452 = vst [vmem:[%s6269_s19 + $0xaa8] sm:$0xff] %v5068_v22 }
 0x660   : > { %v3200_v26 = vpop.f32.mrf.mxu0 }
 0x661   : > { %v2868_v8 = vpop.f32.mrf.mxu3  ;;  %v3529_v15 = vpop.f32.mrf.mxu1 }
 0x662   : > { %v2869_v11 = vadd.f32 %v2868_v8, %v2539_v7  ;;  %v3530_v44 = vadd.f32 %v3529_v15, %v3200_v26 }
 0x664   : > { %v5067_v30 = vadd.f32 %v6883_v0, %v2869_v11  ;;  %v5071_v19 = vadd.f32 %v6873_v47, %v3530_v44 }
 0x666   : > { %5451 = vst [vmem:[%s6269_s19 + $0xaa0] sm:$0xff] %v5067_v30  ;;  %v2542_v25 = vpop.f32.mrf.mxu2 }
 0x667   : > { %5455 = vst [vmem:[%s6269_s19 + $0xac0] sm:$0xff] %v5071_v19 }
 0x668   : > { %v3202_v42 = vpop.f32.mrf.mxu0 }
 0x669   : > { %v2871_v16 = vpop.f32.mrf.mxu3  ;;  %v3531_v49 = vpop.f32.mrf.mxu1 }
 0x66a   : > { %v2872_v56 = vadd.f32 %v2871_v16, %v2542_v25  ;;  %v3532_v37 = vadd.f32 %v3531_v49, %v3202_v42 }
 0x66c   : > { %v5070_v39 = vadd.f32 %v6883_v0, %v2872_v56  ;;  %v5074_v40 = vadd.f32 %v6873_v47, %v3532_v37 }
 0x66e   : > { %5454 = vst [vmem:[%s6269_s19 + $0xab8] sm:$0xff] %v5070_v39  ;;  %v2544_v23 = vpop.f32.mrf.mxu2 }
 0x66f   : > { %5458 = vst [vmem:[%s6269_s19 + $0xad8] sm:$0xff] %v5074_v40 }
 0x670   : > { %v3205_v10 = vpop.f32.mrf.mxu0 }
 0x671   : > { %v2873_v2 = vpop.f32.mrf.mxu3  ;;  %v3534_v21 = vpop.f32.mrf.mxu1 }
 0x672   : > { %v2874_v27 = vadd.f32 %v2873_v2, %v2544_v23  ;;  %v3535_v33 = vadd.f32 %v3534_v21, %v3205_v10 }
 0x674   : > { %v5073_v36 = vadd.f32 %v6883_v0, %v2874_v27  ;;  %v5077_v18 = vadd.f32 %v6873_v47, %v3535_v33 }
 0x676   : > { %5457 = vst [vmem:[%s6269_s19 + $0xad0] sm:$0xff] %v5073_v36  ;;  %v2547_v46 = vpop.f32.mrf.mxu2 }
 0x677   : > { %5461 = vst [vmem:[%s6269_s19 + $0xaf0] sm:$0xff] %v5077_v18 }
 0x678   : > { %v3207_v58 = vpop.f32.mrf.mxu0 }
 0x679   : > { %v2876_v53 = vpop.f32.mrf.mxu3  ;;  %v3536_v45 = vpop.f32.mrf.mxu1 }
 0x67a   : > { %v2877_v6 = vadd.f32 %v2876_v53, %v2547_v46  ;;  %v3537_v41 = vadd.f32 %v3536_v45, %v3207_v58 }
 0x67c   : > { %v5076_v3 = vadd.f32 %v6883_v0, %v2877_v6  ;;  %v5080_v59 = vadd.f32 %v6873_v47, %v3537_v41 }
 0x67e   : > { %5460 = vst [vmem:[%s6269_s19 + $0xae8] sm:$0xff] %v5076_v3  ;;  %v2549_v38 = vpop.f32.mrf.mxu2 }
 0x67f   : > { %5464 = vst [vmem:[%s6269_s19 + $0xb08] sm:$0xff] %v5080_v59 }
 0x680   : > { %v3210_v17 = vpop.f32.mrf.mxu0 }
 0x681   : > { %v2878_v48 = vpop.f32.mrf.mxu3  ;;  %v3539_v4 = vpop.f32.mrf.mxu1 }
 0x682   : > { %v2879_v60 = vadd.f32 %v2878_v48, %v2549_v38  ;;  %v3540_v52 = vadd.f32 %v3539_v4, %v3210_v17 }
 0x684   : > { %v5079_v51 = vadd.f32 %v6883_v0, %v2879_v60  ;;  %v5083_v55 = vadd.f32 %v6873_v47, %v3540_v52 }
 0x686   : > { %5463 = vst [vmem:[%s6269_s19 + $0xb00] sm:$0xff] %v5079_v51  ;;  %v2552_v29 = vpop.f32.mrf.mxu2 }
 0x687   : > { %5467 = vst [vmem:[%s6269_s19 + $0xb20] sm:$0xff] %v5083_v55 }
 0x688   : > { %v3212_v63 = vpop.f32.mrf.mxu0 }
 0x689   : > { %v2881_v12 = vpop.f32.mrf.mxu3  ;;  %v3541_v54 = vpop.f32.mrf.mxu1 }
 0x68a   : > { %v2882_v62 = vadd.f32 %v2881_v12, %v2552_v29  ;;  %v3542_v35 = vadd.f32 %v3541_v54, %v3212_v63 }
 0x68c   : > { %v5082_v34 = vadd.f32 %v6883_v0, %v2882_v62  ;;  %v5086_v20 = vadd.f32 %v6873_v47, %v3542_v35 }
 0x68e   : > { %5466 = vst [vmem:[%s6269_s19 + $0xb18] sm:$0xff] %v5082_v34  ;;  %v2554_v14 = vpop.f32.mrf.mxu2 }
 0x68f   : > { %5470 = vst [vmem:[%s6269_s19 + $0xb38] sm:$0xff] %v5086_v20 }
 0x690   : > { %v3215_v13 = vpop.f32.mrf.mxu0 }
 0x691   : > { %v2883_v5 = vpop.f32.mrf.mxu3  ;;  %v3544_v57 = vpop.f32.mrf.mxu1 }
 0x692   : > { %v2884_v43 = vadd.f32 %v2883_v5, %v2554_v14  ;;  %v3545_v61 = vadd.f32 %v3544_v57, %v3215_v13 }
 0x694   : > { %v5085_v24 = vadd.f32 %v6883_v0, %v2884_v43  ;;  %v5089_v50 = vadd.f32 %v6873_v47, %v3545_v61 }
 0x696   : > { %5469 = vst [vmem:[%s6269_s19 + $0xb30] sm:$0xff] %v5085_v24  ;;  %v2557_v1 = vpop.f32.mrf.mxu2 }
 0x697   : > { %5473 = vst [vmem:[%s6269_s19 + $0xb50] sm:$0xff] %v5089_v50 }
 0x698   : > { %v3217_v32 = vpop.f32.mrf.mxu0 }
 0x699   : > { %v2886_v28 = vpop.f32.mrf.mxu3  ;;  %v3546_v9 = vpop.f32.mrf.mxu1 }
 0x69a   : > { %v2887_v31 = vadd.f32 %v2886_v28, %v2557_v1  ;;  %v3547_v7 = vadd.f32 %v3546_v9, %v3217_v32 }
 0x69c   : > { %v5088_v22 = vadd.f32 %v6883_v0, %v2887_v31  ;;  %v5092_v8 = vadd.f32 %v6873_v47, %v3547_v7 }
 0x69e   : > { %5472 = vst [vmem:[%s6269_s19 + $0xb48] sm:$0xff] %v5088_v22  ;;  %v2559_v11 = vpop.f32.mrf.mxu2 }
 0x69f   : > { %5476 = vst [vmem:[%s6269_s19 + $0xb68] sm:$0xff] %v5092_v8 }
 0x6a0   : > { %v3220_v30 = vpop.f32.mrf.mxu0 }
 0x6a1   : > { %v2888_v26 = vpop.f32.mrf.mxu3  ;;  %v3549_v44 = vpop.f32.mrf.mxu1 }
 0x6a2   : > { %v2889_v15 = vadd.f32 %v2888_v26, %v2559_v11  ;;  %v3550_v25 = vadd.f32 %v3549_v44, %v3220_v30 }
 0x6a4   : > { %v5091_v19 = vadd.f32 %v6883_v0, %v2889_v15  ;;  %v5095_v16 = vadd.f32 %v6873_v47, %v3550_v25 }
 0x6a6   : > { %5475 = vst [vmem:[%s6269_s19 + $0xb60] sm:$0xff] %v5091_v19  ;;  %v2562_v56 = vpop.f32.mrf.mxu2 }
 0x6a7   : > { %5479 = vst [vmem:[%s6269_s19 + $0xb80] sm:$0xff] %v5095_v16 }
 0x6a8   : > { %v3222_v39 = vpop.f32.mrf.mxu0 }
 0x6a9   : > { %v2891_v42 = vpop.f32.mrf.mxu3  ;;  %v3551_v37 = vpop.f32.mrf.mxu1 }
 0x6aa   : > { %v2892_v49 = vadd.f32 %v2891_v42, %v2562_v56  ;;  %v3552_v23 = vadd.f32 %v3551_v37, %v3222_v39 }
 0x6ac   : > { %v5094_v40 = vadd.f32 %v6883_v0, %v2892_v49  ;;  %v5098_v2 = vadd.f32 %v6873_v47, %v3552_v23 }
 0x6ae   : > { %5478 = vst [vmem:[%s6269_s19 + $0xb78] sm:$0xff] %v5094_v40  ;;  %v2564_v27 = vpop.f32.mrf.mxu2 }
 0x6af   : > { %5482 = vst [vmem:[%s6269_s19 + $0xb98] sm:$0xff] %v5098_v2 }
 0x6b0   : > { %v3225_v36 = vpop.f32.mrf.mxu0 }
 0x6b1   : > { %v2893_v10 = vpop.f32.mrf.mxu3  ;;  %v3554_v33 = vpop.f32.mrf.mxu1 }
 0x6b2   : > { %v2894_v21 = vadd.f32 %v2893_v10, %v2564_v27  ;;  %v3555_v46 = vadd.f32 %v3554_v33, %v3225_v36 }
 0x6b4   : > { %v5097_v18 = vadd.f32 %v6883_v0, %v2894_v21  ;;  %v5101_v53 = vadd.f32 %v6873_v47, %v3555_v46 }
 0x6b6   : > { %5481 = vst [vmem:[%s6269_s19 + $0xb90] sm:$0xff] %v5097_v18  ;;  %v2567_v6 = vpop.f32.mrf.mxu2 }
 0x6b7   : > { %5485 = vst [vmem:[%s6269_s19 + $0xbb0] sm:$0xff] %v5101_v53 }
 0x6b8   : > { %v3227_v3 = vpop.f32.mrf.mxu0 }
 0x6b9   : > { %v2896_v58 = vpop.f32.mrf.mxu3  ;;  %v3556_v41 = vpop.f32.mrf.mxu1 }
 0x6ba   : > { %v2897_v45 = vadd.f32 %v2896_v58, %v2567_v6  ;;  %v3557_v38 = vadd.f32 %v3556_v41, %v3227_v3 }
 0x6bc   : > { %v5100_v59 = vadd.f32 %v6883_v0, %v2897_v45  ;;  %v5104_v48 = vadd.f32 %v6873_v47, %v3557_v38 }
 0x6be   : > { %5484 = vst [vmem:[%s6269_s19 + $0xba8] sm:$0xff] %v5100_v59  ;;  %v2569_v60 = vpop.f32.mrf.mxu2 }
 0x6bf   : > { %5488 = vst [vmem:[%s6269_s19 + $0xbc8] sm:$0xff] %v5104_v48 }
 0x6c0   : > { %v3230_v51 = vpop.f32.mrf.mxu0 }
 0x6c1   : > { %v2898_v17 = vpop.f32.mrf.mxu3  ;;  %v3559_v52 = vpop.f32.mrf.mxu1 }
 0x6c2   : > { %v2899_v4 = vadd.f32 %v2898_v17, %v2569_v60  ;;  %v3560_v29 = vadd.f32 %v3559_v52, %v3230_v51 }
 0x6c4   : > { %v5103_v55 = vadd.f32 %v6883_v0, %v2899_v4  ;;  %v5107_v12 = vadd.f32 %v6873_v47, %v3560_v29 }
 0x6c6   : > { %5487 = vst [vmem:[%s6269_s19 + $0xbc0] sm:$0xff] %v5103_v55  ;;  %v2572_v62 = vpop.f32.mrf.mxu2 }
 0x6c7   : > { %5491 = vst [vmem:[%s6269_s19 + $0xbe0] sm:$0xff] %v5107_v12 }
 0x6c8   : > { %v3232_v34 = vpop.f32.mrf.mxu0 }
 0x6c9   : > { %v2901_v63 = vpop.f32.mrf.mxu3  ;;  %v3561_v35 = vpop.f32.mrf.mxu1 }
 0x6ca   : > { %v2902_v54 = vadd.f32 %v2901_v63, %v2572_v62  ;;  %v3562_v14 = vadd.f32 %v3561_v35, %v3232_v34 }
 0x6cc   : > { %v5106_v20 = vadd.f32 %v6883_v0, %v2902_v54  ;;  %v5110_v5 = vadd.f32 %v6873_v47, %v3562_v14 }
 0x6ce   : > { %5490 = vst [vmem:[%s6269_s19 + $0xbd8] sm:$0xff] %v5106_v20  ;;  %v2574_v43 = vpop.f32.mrf.mxu2 }
 0x6cf   : > { %5494 = vst [vmem:[%s6269_s19 + $0xbf8] sm:$0xff] %v5110_v5 }
 0x6d1   : > { %v2903_v13 = vpop.f32.mrf.mxu3 }
 0x6d2   : > { %v2904_v57 = vadd.f32 %v2903_v13, %v2574_v43 }
 0x6d4   : > { %v5109_v24 = vadd.f32 %v6883_v0, %v2904_v57 }
 0x6d6   : > { %5493 = vst [vmem:[%s6269_s19 + $0xbf0] sm:$0xff] %v5109_v24 }
 0x6d7   : > { %5879 = shalt.err (!%p5876_p13)
}
 0x6d8   : > { %s5946_s26 = smov 384   ;;  %s5947_s30 = smov 768  }
 0x6d9   : > { %s5948_s1 = smov 24  }
 0x6da   : > { %5683 = dma.vmem_to_hbm [thread:$0]  (%p6051_p0), %s5512_s7, 49152, %s5514_s15, %s5496_s8, %s5946_s26, %s5947_s30, %s5948_s1  }
 0x6db PF: > { %s5528_s6 = sand.u32 1, %s5918_s12   ;;  %p5697_p4 = pnand %p5645_p3, %p6055_p2 }
 0x6dc   : > { %s5529_s10 = scalar_lea.sflag [#allocation5], %s5528_s6 }
 0x6dd   : > { %p5698_p5 = pneg %p5697_p4 }
 0x6df   : > { %5913 = dma.done.wait (%p5698_p5), %s5529_s10, 49152  }
 0x6e0   : > { %5915 = vsyncadd (%p5698_p5), %s5529_s10, 4294918144  ;;  %s20_s17 = sadd.s32 1, %s5938_s17   ;;  %s7991_s12 = smov %s5922_s13 }
 0x6e1   : > { %p17_p1 = scmp.ge.s32.totalorder %s20_s17, 4   ;;  %s7992_s13 = smov %s5926_s14 }
 0x6e2   : > { %s7993_s14 = smov %s6017_s24  ;;  %s7994_s15 = smov %s5934_s16 }
 0x6e3   : > { %s7995_s16 = smov %s7997_s18  ;;  %19 = sbr.rel (!%p17_p1) target bundleno = 10 (0xa), region = 102 }
 0x6e8   :  { %5535 = vsyncpa [#allocation4], 1 }
 0x6e9   :  { %5537 = vsyncpa [#allocation4 + $0x1], 1 }
 0x6ea   :  { %5538 = vsyncpa [#allocation7], 1 }
 0x6eb   :  { %5540 = vsyncpa [#allocation7 + $0x1], 1 }
 0x6ec   :  { %5541 = vsyncpa [#allocation5], 1 }
 0x6ed   :  { %5543 = vsyncpa [#allocation5 + $0x1], 1 }

</bundles_post_ra>
